<compile_context>
chip_gen: v7x
topology: tpu7x:2x2x1
jax: 0.10.0
libtpu: 0.0.40
codegen_flags: <defaults>
</compile_context>

<pallas_src>
import jax
import jax.numpy as jnp
from jax.experimental import pallas as pl
from jax.experimental.pallas import tpu as pltpu

BN_EPS = 1e-5
ENC_PAD = 256    # 192-wide encoder dims padded to two full lane tiles
HEAD_PAD = 128   # fusion-head dims padded to one full lane tile
MM_PREC = jax.lax.Precision.HIGHEST  # explicit: fp32 fidelity on every generation


def nkf_kernel(x_ref, w1_ref, w2fw1_ref, fw2fw3_ref, bnfb_ref, out_ref):
    # x_ref:      (B, 14)    concat(imu(10), dvl(3), pressure(1))
    # w1_ref:     (14, 256)  block-diagonal encoder layer 1 (cols 192:256 zero)
    # w2fw1_ref:  (256, 384) [ block-diag encoder layer 2 (256x256) | fusion fc1 (256x128) ]
    # fw2fw3_ref: (128, 256) [ fusion fc2 (128x128) | fusion fc3 (128x128) ]
    # bnfb_ref:   (8, 256)   rows = [gamma1, beta1, gamma2, beta2, fb1, fb2, fb3, 0]
    # out_ref:    (B, 128)   lane-dense; real output in the first `output_dim` lanes
    x = x_ref[...]
    inv_b = 1.0 / x.shape[0]  # static

    def bn_relu(h, g_row, b_row):
        # Folded BatchNorm1d (training mode, biased variance) + ReLU.
        # Two independent reductions -> shorter critical chain than mean/center/square.
        s1 = jnp.sum(h, axis=0, keepdims=True)
        s2 = jnp.sum(h * h, axis=0, keepdims=True)
        mean = s1 * inv_b
        var = s2 * inv_b - mean * mean
        gamma = bnfb_ref[g_row:g_row + 1, :]
        beta = bnfb_ref[b_row:b_row + 1, :]
        scale = gamma * jax.lax.rsqrt(var + BN_EPS)
        return jnp.maximum(h * scale + (beta - mean * scale), 0.0)

    # Fused encoders: two block-diagonal matmuls + BN + ReLU (lane-dense 256).
    h = jnp.dot(x, w1_ref[...], preferred_element_type=jnp.float32, precision=MM_PREC)
    h = bn_relu(h, 0, 1)
    h = jnp.dot(h, w2fw1_ref[:, 0:ENC_PAD],
                preferred_element_type=jnp.float32, precision=MM_PREC)
    fused = bn_relu(h, 2, 3)  # (B, 256): imu|dvl|pressure in cols 0:192, exact zeros beyond

    # Fusion head (lane-padded to 128).
    a = jnp.dot(fused, w2fw1_ref[:, ENC_PAD:],
                preferred_element_type=jnp.float32, precision=MM_PREC)
    a = jnp.maximum(a + bnfb_ref[4:5, 0:HEAD_PAD], 0.0)
    a = jnp.dot(a, fw2fw3_ref[:, 0:HEAD_PAD],
                preferred_element_type=jnp.float32, precision=MM_PREC)
    a = jnp.maximum(a + bnfb_ref[5:6, 0:HEAD_PAD], 0.0)
    out_ref[...] = (
        jnp.dot(a, fw2fw3_ref[:, HEAD_PAD:],
                preferred_element_type=jnp.float32, precision=MM_PREC)
        + bnfb_ref[6:7, 0:HEAD_PAD])


def pack_params(p, hidden_dim, output_dim):
    """Pack PyTorch-layout params into the 4 fused / lane-padded weight slabs.

    Encoder Linear biases are intentionally NOT packed: BatchNorm cancels them.
    """
    f32 = jnp.float32

    # Encoder layer 1, block-diagonal, padded to 256 output lanes.
    w1 = jnp.zeros((14, ENC_PAD), f32)
    w1 = w1.at[0:10, 0:128].set(p["i_w1"])
    w1 = w1.at[10:13, 128:160].set(p["d_w1"])
    w1 = w1.at[13:14, 160:192].set(p["p_w1"])

    # Slab: encoder layer 2 block-diag (256x256) | fusion fc1 (256x128).
    w2fw1 = jnp.zeros((ENC_PAD, ENC_PAD + HEAD_PAD), f32)
    w2fw1 = w2fw1.at[0:128, 0:64].set(p["i_w2"])
    w2fw1 = w2fw1.at[128:160, 64:128].set(p["d_w2"])
    w2fw1 = w2fw1.at[160:192, 128:192].set(p["p_w2"])
    w2fw1 = w2fw1.at[0:192, ENC_PAD:ENC_PAD + hidden_dim].set(p["f_w1"])

    # Slab: fusion fc2 (128x128) | fusion fc3 (128x128).
    fw2fw3 = jnp.zeros((HEAD_PAD, 2 * HEAD_PAD), f32)
    fw2fw3 = fw2fw3.at[0:hidden_dim, 0:hidden_dim].set(p["f_w2"])
    fw2fw3 = fw2fw3.at[0:hidden_dim, HEAD_PAD:HEAD_PAD + output_dim].set(p["f_w3"])

    # Slab: BN params + fusion biases, (8, 256).
    # Padded BN columns get gamma=1, beta=0 so zero inputs stay exactly zero.
    ones_pad = jnp.ones((1, ENC_PAD - 192), f32)
    zero_pad = jnp.zeros((1, ENC_PAD - 192), f32)
    g1 = jnp.concatenate([p["i_g1"], p["d_g1"], p["p_g1"], ones_pad], axis=1)
    be1 = jnp.concatenate([p["i_be1"], p["d_be1"], p["p_be1"], zero_pad], axis=1)
    g2 = jnp.concatenate([p["i_g2"], p["d_g2"], p["p_g2"], ones_pad], axis=1)
    be2 = jnp.concatenate([p["i_be2"], p["d_be2"], p["p_be2"], zero_pad], axis=1)
    fb = jnp.zeros((4, ENC_PAD), f32)
    fb = fb.at[0, 0:hidden_dim].set(p["f_b1"][0])
    fb = fb.at[1, 0:hidden_dim].set(p["f_b2"][0])
    fb = fb.at[2, 0:output_dim].set(p["f_b3"][0])
    bnfb = jnp.concatenate([g1, be1, g2, be2, fb], axis=0)  # (8, 256)

    return {"w1": w1, "w2fw1": w2fw1, "fw2fw3": fw2fw3, "bnfb": bnfb}


def neural_kalman_filter(imu, dvl, pressure, packed, output_dim):
    B = imu.shape[0]
    x = jnp.concatenate([imu, dvl, pressure], axis=1)  # (B, 14)
    vmem = pl.BlockSpec(memory_space=pltpu.MemorySpace.VMEM)
    out_padded = pl.pallas_call(
        nkf_kernel,
        out_shape=jax.ShapeDtypeStruct((B, HEAD_PAD), jnp.float32),
        in_specs=[vmem] * 5,
        out_specs=vmem,
    )(x, packed["w1"], packed["w2fw1"], packed["fw2fw3"], packed["bnfb"])
    return out_padded[:, :output_dim]


def init_params(key, hidden_dim, output_dim):
    """Deterministic synthetic parameter init (shapes match the PyTorch module,
    including encoder biases — which the kernel provably does not need)."""
    def nrm(k, shape, scale=0.1):
        return scale * jax.random.normal(k, shape, dtype=jnp.float32)

    keys = iter(jax.random.split(key, 64))
    p = {}

    def enc(prefix, in_dim, mid_dim, out_dim):
        p[f"{prefix}_w1"] = nrm(next(keys), (in_dim, mid_dim))
        p[f"{prefix}_b1"] = nrm(next(keys), (1, mid_dim))         # dropped in kernel (BN cancels)
        p[f"{prefix}_g1"] = 1.0 + nrm(next(keys), (1, mid_dim))   # BN gamma
        p[f"{prefix}_be1"] = nrm(next(keys), (1, mid_dim))        # BN beta
        p[f"{prefix}_w2"] = nrm(next(keys), (mid_dim, out_dim))
        p[f"{prefix}_b2"] = nrm(next(keys), (1, out_dim))         # dropped in kernel (BN cancels)
        p[f"{prefix}_g2"] = 1.0 + nrm(next(keys), (1, out_dim))
        p[f"{prefix}_be2"] = nrm(next(keys), (1, out_dim))

    enc("i", 10, 128, 64)   # IMUEncoder:      Linear(10,128) -> Linear(128,64)
    enc("d", 3, 32, 64)     # DVLEncoder:      Linear(3,32)   -> Linear(32,64)
    enc("p", 1, 32, 64)     # PressureEncoder: Linear(1,32)   -> Linear(32,64)

    p["f_w1"] = nrm(next(keys), (64 * 3, hidden_dim))
    p["f_b1"] = nrm(next(keys), (1, hidden_dim))
    p["f_w2"] = nrm(next(keys), (hidden_dim, hidden_dim))
    p["f_b2"] = nrm(next(keys), (1, hidden_dim))
    p["f_w3"] = nrm(next(keys), (hidden_dim, output_dim))
    p["f_b3"] = nrm(next(keys), (1, output_dim))
    return p


def reference_forward(imu, dvl, pressure, p):
    """Pure-JAX reference mirroring the PyTorch forward (with encoder biases)."""
    def dot(a, b):
        return jnp.dot(a, b, precision=MM_PREC)

    def bn_relu(x, g, b):
        m = jnp.mean(x, axis=0, keepdims=True)
        v = jnp.mean((x - m) ** 2, axis=0, keepdims=True)
        return jnp.maximum((x - m) / jnp.sqrt(v + BN_EPS) * g + b, 0.0)

    def enc(x, pre):
        h = bn_relu(dot(x, p[f"{pre}_w1"]) + p[f"{pre}_b1"], p[f"{pre}_g1"], p[f"{pre}_be1"])
        return bn_relu(dot(h, p[f"{pre}_w2"]) + p[f"{pre}_b2"], p[f"{pre}_g2"], p[f"{pre}_be2"])

    fused = jnp.concatenate([enc(imu, "i"), enc(dvl, "d"), enc(pressure, "p")], axis=1)
    x = jnp.maximum(dot(fused, p["f_w1"]) + p["f_b1"], 0.0)
    x = jnp.maximum(dot(x, p["f_w2"]) + p["f_b2"], 0.0)
    return dot(x, p["f_w3"]) + p["f_b3"]


if __name__ == "__main__":
    B = 8
    HIDDEN_DIM = 32
    OUTPUT_DIM = 8

    key = jax.random.PRNGKey(0)
    k_imu, k_dvl, k_pr, k_par = jax.random.split(key, 4)

    imu_data = jax.random.normal(k_imu, (B, 10), dtype=jnp.float32)
    dvl_data = jax.random.normal(k_dvl, (B, 3), dtype=jnp.float32)
    pressure_data = jax.random.normal(k_pr, (B, 1), dtype=jnp.float32)

    params = init_params(k_par, HIDDEN_DIM, OUTPUT_DIM)
    packed = pack_params(params, HIDDEN_DIM, OUTPUT_DIM)

    out = neural_kalman_filter(imu_data, dvl_data, pressure_data, packed, OUTPUT_DIM)
    out = jax.block_until_ready(out)

    ref = reference_forward(imu_data, dvl_data, pressure_data, params)
    assert out.shape == (B, OUTPUT_DIM)
    assert jnp.allclose(out, ref, atol=1e-4, rtol=1e-4), "kernel mismatch vs reference"

    print("KERNEL_OK")
</pallas_src>

<mosaic_0001>
module attributes {stable_mosaic.version = 11 : i64} {
  func.func @nkf_kernel(%arg0: memref<8x14xf32, #tpu.memory_space<vmem>>, %arg1: memref<14x256xf32, #tpu.memory_space<vmem>>, %arg2: memref<256x384xf32, #tpu.memory_space<vmem>>, %arg3: memref<128x256xf32, #tpu.memory_space<vmem>>, %arg4: memref<8x256xf32, #tpu.memory_space<vmem>>, %arg5: memref<8x128xf32, #tpu.memory_space<vmem>>) attributes {dimension_semantics = [], scalar_prefetch = 0 : i64, scratch_operands = 0 : i64, tpu.core_type = #tpu.core_type<tc>} {
    %c0 = arith.constant 0 : index
    %c0_0 = arith.constant 0 : index
    %0 = vector.load %arg0[%c0, %c0_0] : memref<8x14xf32, #tpu.memory_space<vmem>>, vector<8x14xf32>
    %c0_1 = arith.constant 0 : index
    %c0_2 = arith.constant 0 : index
    %1 = vector.load %arg1[%c0_1, %c0_2] : memref<14x256xf32, #tpu.memory_space<vmem>>, vector<14x256xf32>
    %cst = arith.constant dense<0.000000e+00> : vector<8x256xf32>
    %2 = tpu.matmul %0, %1, %cst {dimension_numbers = #tpu.dot_dimension_numbers<[1], [0], [0], [1], [0, 0, 1, 1], [], []>, precision = #tpu.contract_precision<fp32>} : vector<8x14xf32>, vector<14x256xf32>, vector<8x256xf32> -> vector<8x256xf32>
    %cst_3 = arith.constant dense<0.000000e+00> : vector<256xf32>
    %3 = vector.multi_reduction <add>, %2, %cst_3 [0] : vector<8x256xf32> to vector<256xf32>
    %4 = vector.shape_cast %3 : vector<256xf32> to vector<1x256xf32>
    %5 = arith.mulf %2, %2 : vector<8x256xf32>
    %cst_4 = arith.constant dense<0.000000e+00> : vector<256xf32>
    %6 = vector.multi_reduction <add>, %5, %cst_4 [0] : vector<8x256xf32> to vector<256xf32>
    %7 = vector.shape_cast %6 : vector<256xf32> to vector<1x256xf32>
    %cst_5 = arith.constant 1.250000e-01 : f32
    %8 = vector.broadcast %cst_5 : f32 to vector<1x256xf32>
    %9 = arith.mulf %4, %8 : vector<1x256xf32>
    %cst_6 = arith.constant 1.250000e-01 : f32
    %10 = vector.broadcast %cst_6 : f32 to vector<1x256xf32>
    %11 = arith.mulf %7, %10 : vector<1x256xf32>
    %12 = arith.mulf %9, %9 : vector<1x256xf32>
    %13 = arith.subf %11, %12 : vector<1x256xf32>
    %c0_7 = arith.constant 0 : index
    %c0_8 = arith.constant 0 : index
    %14 = vector.load %arg4[%c0_7, %c0_8] : memref<8x256xf32, #tpu.memory_space<vmem>>, vector<1x256xf32>
    %c1 = arith.constant 1 : index
    %c0_9 = arith.constant 0 : index
    %15 = vector.load %arg4[%c1, %c0_9] : memref<8x256xf32, #tpu.memory_space<vmem>>, vector<1x256xf32>
    %cst_10 = arith.constant 9.99999974E-6 : f32
    %16 = vector.broadcast %cst_10 : f32 to vector<1x256xf32>
    %17 = arith.addf %13, %16 : vector<1x256xf32>
    %18 = math.rsqrt %17 : vector<1x256xf32>
    %19 = arith.mulf %14, %18 : vector<1x256xf32>
    %20 = vector.broadcast %19 : vector<1x256xf32> to vector<8x256xf32>
    %21 = arith.mulf %2, %20 : vector<8x256xf32>
    %22 = arith.mulf %9, %19 : vector<1x256xf32>
    %23 = arith.subf %15, %22 : vector<1x256xf32>
    %24 = vector.broadcast %23 : vector<1x256xf32> to vector<8x256xf32>
    %25 = arith.addf %21, %24 : vector<8x256xf32>
    %cst_11 = arith.constant 0.000000e+00 : f32
    %26 = vector.broadcast %cst_11 : f32 to vector<8x256xf32>
    %27 = arith.maximumf %25, %26 : vector<8x256xf32>
    %c0_12 = arith.constant 0 : index
    %c0_13 = arith.constant 0 : index
    %28 = vector.load %arg2[%c0_12, %c0_13] : memref<256x384xf32, #tpu.memory_space<vmem>>, vector<256x256xf32>
    %cst_14 = arith.constant dense<0.000000e+00> : vector<8x256xf32>
    %29 = tpu.matmul %27, %28, %cst_14 {dimension_numbers = #tpu.dot_dimension_numbers<[1], [0], [0], [1], [0, 0, 1, 1], [], []>, precision = #tpu.contract_precision<fp32>} : vector<8x256xf32>, vector<256x256xf32>, vector<8x256xf32> -> vector<8x256xf32>
    %cst_15 = arith.constant dense<0.000000e+00> : vector<256xf32>
    %30 = vector.multi_reduction <add>, %29, %cst_15 [0] : vector<8x256xf32> to vector<256xf32>
    %31 = vector.shape_cast %30 : vector<256xf32> to vector<1x256xf32>
    %32 = arith.mulf %29, %29 : vector<8x256xf32>
    %cst_16 = arith.constant dense<0.000000e+00> : vector<256xf32>
    %33 = vector.multi_reduction <add>, %32, %cst_16 [0] : vector<8x256xf32> to vector<256xf32>
    %34 = vector.shape_cast %33 : vector<256xf32> to vector<1x256xf32>
    %cst_17 = arith.constant 1.250000e-01 : f32
    %35 = vector.broadcast %cst_17 : f32 to vector<1x256xf32>
    %36 = arith.mulf %31, %35 : vector<1x256xf32>
    %cst_18 = arith.constant 1.250000e-01 : f32
    %37 = vector.broadcast %cst_18 : f32 to vector<1x256xf32>
    %38 = arith.mulf %34, %37 : vector<1x256xf32>
    %39 = arith.mulf %36, %36 : vector<1x256xf32>
    %40 = arith.subf %38, %39 : vector<1x256xf32>
    %c2 = arith.constant 2 : index
    %c0_19 = arith.constant 0 : index
    %41 = vector.load %arg4[%c2, %c0_19] : memref<8x256xf32, #tpu.memory_space<vmem>>, vector<1x256xf32>
    %c3 = arith.constant 3 : index
    %c0_20 = arith.constant 0 : index
    %42 = vector.load %arg4[%c3, %c0_20] : memref<8x256xf32, #tpu.memory_space<vmem>>, vector<1x256xf32>
    %cst_21 = arith.constant 9.99999974E-6 : f32
    %43 = vector.broadcast %cst_21 : f32 to vector<1x256xf32>
    %44 = arith.addf %40, %43 : vector<1x256xf32>
    %45 = math.rsqrt %44 : vector<1x256xf32>
    %46 = arith.mulf %41, %45 : vector<1x256xf32>
    %47 = vector.broadcast %46 : vector<1x256xf32> to vector<8x256xf32>
    %48 = arith.mulf %29, %47 : vector<8x256xf32>
    %49 = arith.mulf %36, %46 : vector<1x256xf32>
    %50 = arith.subf %42, %49 : vector<1x256xf32>
    %51 = vector.broadcast %50 : vector<1x256xf32> to vector<8x256xf32>
    %52 = arith.addf %48, %51 : vector<8x256xf32>
    %cst_22 = arith.constant 0.000000e+00 : f32
    %53 = vector.broadcast %cst_22 : f32 to vector<8x256xf32>
    %54 = arith.maximumf %52, %53 : vector<8x256xf32>
    %c0_23 = arith.constant 0 : index
    %c256 = arith.constant 256 : index
    %55 = vector.load %arg2[%c0_23, %c256] : memref<256x384xf32, #tpu.memory_space<vmem>>, vector<256x128xf32>
    %cst_24 = arith.constant dense<0.000000e+00> : vector<8x128xf32>
    %56 = tpu.matmul %54, %55, %cst_24 {dimension_numbers = #tpu.dot_dimension_numbers<[1], [0], [0], [1], [0, 0, 1, 1], [], []>, precision = #tpu.contract_precision<fp32>} : vector<8x256xf32>, vector<256x128xf32>, vector<8x128xf32> -> vector<8x128xf32>
    %c4 = arith.constant 4 : index
    %c0_25 = arith.constant 0 : index
    %57 = vector.load %arg4[%c4, %c0_25] : memref<8x256xf32, #tpu.memory_space<vmem>>, vector<1x128xf32>
    %58 = vector.broadcast %57 : vector<1x128xf32> to vector<8x128xf32>
    %59 = arith.addf %56, %58 : vector<8x128xf32>
    %cst_26 = arith.constant 0.000000e+00 : f32
    %60 = vector.broadcast %cst_26 : f32 to vector<8x128xf32>
    %61 = arith.maximumf %59, %60 : vector<8x128xf32>
    %c0_27 = arith.constant 0 : index
    %c0_28 = arith.constant 0 : index
    %62 = vector.load %arg3[%c0_27, %c0_28] : memref<128x256xf32, #tpu.memory_space<vmem>>, vector<128x128xf32>
    %cst_29 = arith.constant dense<0.000000e+00> : vector<8x128xf32>
    %63 = tpu.matmul %61, %62, %cst_29 {dimension_numbers = #tpu.dot_dimension_numbers<[1], [0], [0], [1], [0, 0, 1, 1], [], []>, precision = #tpu.contract_precision<fp32>} : vector<8x128xf32>, vector<128x128xf32>, vector<8x128xf32> -> vector<8x128xf32>
    %c5 = arith.constant 5 : index
    %c0_30 = arith.constant 0 : index
    %64 = vector.load %arg4[%c5, %c0_30] : memref<8x256xf32, #tpu.memory_space<vmem>>, vector<1x128xf32>
    %65 = vector.broadcast %64 : vector<1x128xf32> to vector<8x128xf32>
    %66 = arith.addf %63, %65 : vector<8x128xf32>
    %cst_31 = arith.constant 0.000000e+00 : f32
    %67 = vector.broadcast %cst_31 : f32 to vector<8x128xf32>
    %68 = arith.maximumf %66, %67 : vector<8x128xf32>
    %c0_32 = arith.constant 0 : index
    %c128 = arith.constant 128 : index
    %69 = vector.load %arg3[%c0_32, %c128] : memref<128x256xf32, #tpu.memory_space<vmem>>, vector<128x128xf32>
    %cst_33 = arith.constant dense<0.000000e+00> : vector<8x128xf32>
    %70 = tpu.matmul %68, %69, %cst_33 {dimension_numbers = #tpu.dot_dimension_numbers<[1], [0], [0], [1], [0, 0, 1, 1], [], []>, precision = #tpu.contract_precision<fp32>} : vector<8x128xf32>, vector<128x128xf32>, vector<8x128xf32> -> vector<8x128xf32>
    %c6 = arith.constant 6 : index
    %c0_34 = arith.constant 0 : index
    %71 = vector.load %arg4[%c6, %c0_34] : memref<8x256xf32, #tpu.memory_space<vmem>>, vector<1x128xf32>
    %72 = vector.broadcast %71 : vector<1x128xf32> to vector<8x128xf32>
    %73 = arith.addf %70, %72 : vector<8x128xf32>
    %c0_35 = arith.constant 0 : index
    %c0_36 = arith.constant 0 : index
    %74 = vector.load %arg5[%c0_35, %c0_36] : memref<8x128xf32, #tpu.memory_space<vmem>>, vector<8x128xf32>
    tpu.vector_store %arg5[%c0_35, %c0_36], %73 {strides = array<i32>} : memref<8x128xf32, #tpu.memory_space<vmem>>, vector<8x128xf32>,
    return
  }
}

</mosaic_0001>

<bundles_post_ra>
// kernel: tpu_custom_call.1
= control target key start
LH: loop header
LB: loop body
LE: loop exit
PB: predicated region body
PF: predicated region fallthrough
CT: control target
= control target key end

     0   :  { %10 = vsyncpa [#allocation3], 0  ;;  %s8850_s0 = inlined_call_operand.hbm [shape: f32[8,14], index: 0, kind: input, shape index: {}]   ;;  %s8851_s1 = inlined_call_operand.hbm [shape: f32[14,256], index: 1, kind: input, shape index: {}]   ;;  %s8852_s2 = inlined_call_operand.hbm [shape: f32[256,384], index: 2, kind: input, shape index: {}]   ;;  %s8853_s3 = inlined_call_operand.hbm [shape: f32[128,256], index: 3, kind: input, shape index: {}]   ;;  %s8854_s4 = inlined_call_operand.hbm [shape: f32[8,256], index: 4, kind: input, shape index: {}]   ;;  %s8855_s5 = inlined_call_operand.hbm [shape: f32[8,128], index: 5, kind: output, shape index: {}]  }
   0x1   :  { %11 = vsyncpa [#allocation6], 0 }
   0x2   :  { %12 = vsyncpa [#allocation9], 0 }
   0x3   :  { %13 = vsyncpa [#allocation4], 0  ;;  %s6315_s18 = smov [#allocation5]   ;;  %s6175_s22 = scalar_lea.hbm %s8851_s1, 512 }
   0x4   :  { %s29_s19 = sshll.u32 %s6315_s18, 4  ;;  %p6176_p0 = scmp.ne.s32.totalorder %s8851_s1, %s6175_s22  ;;  %s30_s19 = int_to_ptr.vmem [resolvable:$true] %s29_s19 }
   0x5   :  { %p6179_p1 = scmp.lt.u32.totalorder %s6175_s22, %s8851_s1 }
   0x7   :  { %p6181_p2 = pnand %p6179_p1, %p6176_p0 }
   0x9   :  { %6184 = shalt.err (!%p6181_p2)
}
   0xa   :  { %s6185_s27 = scalar_lea.vmem %s30_s19, 512  ;;  %p6190_p4 = scmp.lt.s32.totalorder %s30_s19, %s30_s19 }
   0xb   :  { %p6186_p3 = scmp.ne.s32.totalorder %s30_s19, %s6185_s27  ;;  %p6191_p5 = scmp.lt.s32.totalorder %s6185_s27, %s6185_s27 }
   0xd   :  { %p6192_p6 = por %p6191_p5, %p6190_p4 }
   0xf   :  { %p6193_p7 = pnand %p6192_p6, %p6186_p3 }
  0x11   :  { %6196 = shalt.err (!%p6193_p7)
}
  0x12   :  { %s6316_s28 = smov 256   ;;  %s6317_s29 = smov 16  }
  0x13   :  { %35 = dma.hbm_to_vmem [thread:$0]  %s8851_s1, 512, %s30_s19, [#allocation6], %s6316_s28, %s6316_s28, %s6317_s29  }
  0x14   :  { %s6318_s7 = smov [#allocation8]   ;;  %s6319_s9 = smov [#allocation2]  }
  0x15   :  { %s53_s8 = sshll.u32 %s6318_s7, 4  ;;  %s20_s10 = sshll.u32 %s6319_s9, 4  ;;  %s54_s8 = int_to_ptr.vmem [resolvable:$true] %s53_s8  ;;  %s21_s10 = int_to_ptr.vmem [resolvable:$true] %s20_s10 }
  0x16   :  { %s6197_s13 = scalar_lea.hbm %s8853_s3, 4096 }
  0x17   :  { %p6198_p8 = scmp.ne.s32.totalorder %s8853_s3, %s6197_s13  ;;  %p6201_p9 = scmp.lt.u32.totalorder %s6197_s13, %s8853_s3 }
  0x19   :  { %p6203_p10 = pnand %p6201_p9, %p6198_p8 }
  0x1b   :  { %6206 = shalt.err (!%p6203_p10)
}
  0x1c   :  { %s6207_s1 = scalar_lea.vmem %s54_s8, 4096  ;;  %p6212_p12 = scmp.lt.s32.totalorder %s54_s8, %s54_s8 }
  0x1d   :  { %p6208_p11 = scmp.ne.s32.totalorder %s54_s8, %s6207_s1  ;;  %p6213_p13 = scmp.lt.s32.totalorder %s6207_s1, %s6207_s1 }
  0x1f   :  { %p6214_p0 = por %p6213_p13, %p6212_p12 }
  0x21   :  { %p6215_p1 = pnand %p6214_p0, %p6208_p11 }
  0x23   :  { %6218 = shalt.err (!%p6215_p1)
}
  0x24   :  { %59 = dma.hbm_to_vmem [thread:$0]  %s8853_s3, 4096, %s54_s8, [#allocation9], %s6316_s28, %s6316_s28, %s6317_s29  }
  0x25   :  { %s6219_s22 = scalar_lea.hbm %s8850_s0, 128 }
  0x26   :  { %p6220_p2 = scmp.ne.s32.totalorder %s8850_s0, %s6219_s22  ;;  %p6223_p3 = scmp.lt.u32.totalorder %s6219_s22, %s8850_s0 }
  0x28   :  { %p6225_p4 = pnand %p6223_p3, %p6220_p2 }
  0x2a   :  { %6228 = shalt.err (!%p6225_p4)
}
  0x2b   :  { %s6229_s27 = scalar_lea.vmem %s21_s10, 128  ;;  %p6234_p6 = scmp.lt.s32.totalorder %s21_s10, %s21_s10 }
  0x2c   :  { %p6230_p5 = scmp.ne.s32.totalorder %s21_s10, %s6229_s27  ;;  %p6235_p7 = scmp.lt.s32.totalorder %s6229_s27, %s6229_s27 }
  0x2e   :  { %p6236_p8 = por %p6235_p7, %p6234_p6 }
  0x30   :  { %p6237_p9 = pnand %p6236_p8, %p6230_p5 }
  0x32   :  { %6240 = shalt.err (!%p6237_p9)
}
  0x33   :  { %23 = dma.hbm_to_vmem [thread:$0]  %s8850_s0, 128, %s21_s10, [#allocation3]  }
  0x34   :  { %s6320_s29 = smov [#allocation7]   ;;  %s6241_s8 = scalar_lea.hbm %s8852_s2, 12288 }
  0x35   :  { %s41_s30 = sshll.u32 %s6320_s29, 4  ;;  %p6242_p10 = scmp.ne.s32.totalorder %s8852_s2, %s6241_s8  ;;  %s42_s30 = int_to_ptr.vmem [resolvable:$true] %s41_s30 }
  0x36   :  { %p6245_p11 = scmp.lt.u32.totalorder %s6241_s8, %s8852_s2 }
  0x38   :  { %p6247_p12 = pnand %p6245_p11, %p6242_p10 }
  0x3a   :  { %6250 = shalt.err (!%p6247_p12)
}
  0x3b   :  { %s6251_s14 = scalar_lea.vmem %s42_s30, 12288  ;;  %p6256_p0 = scmp.lt.s32.totalorder %s42_s30, %s42_s30 }
  0x3c   :  { %p6252_p13 = scmp.ne.s32.totalorder %s42_s30, %s6251_s14  ;;  %p6257_p1 = scmp.lt.s32.totalorder %s6251_s14, %s6251_s14 }
  0x3e   :  { %p6258_p2 = por %p6257_p1, %p6256_p0 }
  0x40   :  { %p6259_p3 = pnand %p6258_p2, %p6252_p13 }
  0x42   :  { %6262 = shalt.err (!%p6259_p3)
}
  0x43   :  { %s6321_s0 = smov 384   ;;  %s6322_s10 = smov 24  }
  0x44   :  { %47 = dma.hbm_to_vmem [thread:$0]  %s8852_s2, 12288, %s42_s30, [#allocation6], %s6321_s0, %s6321_s0, %s6322_s10  }
  0x45   :  { %s6323_s17 = smov [#allocation10]   ;;  %s6263_s20 = scalar_lea.hbm %s8854_s4, 256 }
  0x46   :  { %s66_s1 = sshll.u32 %s6323_s17, 4  ;;  %p6264_p4 = scmp.ne.s32.totalorder %s8854_s4, %s6263_s20  ;;  %s67_s1 = int_to_ptr.vmem [resolvable:$true] %s66_s1 }
  0x47   :  { %p6267_p5 = scmp.lt.u32.totalorder %s6263_s20, %s8854_s4 }
  0x49   :  { %p6269_p6 = pnand %p6267_p5, %p6264_p4 }
  0x4b   :  { %6272 = shalt.err (!%p6269_p6)
}
  0x4c   :  { %s6273_s25 = scalar_lea.vmem %s67_s1, 256  ;;  %p6278_p8 = scmp.lt.s32.totalorder %s67_s1, %s67_s1 }
  0x4d   :  { %p6274_p7 = scmp.ne.s32.totalorder %s67_s1, %s6273_s25  ;;  %p6279_p9 = scmp.lt.s32.totalorder %s6273_s25, %s6273_s25 }
  0x4f   :  { %p6280_p10 = por %p6279_p9, %p6278_p8 }
  0x51   :  { %p6281_p11 = pnand %p6280_p10, %p6274_p7 }
  0x53   :  { %6284 = shalt.err (!%p6281_p11)
}
  0x54   :  { %69 = dma.hbm_to_vmem [thread:$0]  %s8854_s4, 256, %s67_s1, [#allocation9]  }
  0x55   :  { %6307 = dma.done.wait [#allocation3], 128  }
  0x56   :  { %6308 = vsyncadd [#allocation3], 4294967168 }
  0x57   :  { %6309 = dma.done.wait [#allocation6], 12800  }
  0x58   :  { %6310 = vsyncadd [#allocation6], 4294954496 }
  0x59   :  { %6311 = dma.done.wait [#allocation9], 4352  }
  0x5a   :  { %6312 = vsyncadd [#allocation9], 4294962944  ;;  %v8856_v0 = vmov 0.0   ;;  %vm94_vm0 = vcmask 1045504   ;;  %vm90_vm1 = vcmask 113664   ;;  %v87_v1 = vld [vmem:[#allocation5 + $0x8] sm:$0xff] }
  0x5b   :  { %422 = vmatprep.mubr.f32.mxu0 %v8856_v0  ;;  %169 = vmatprep.mubr.f32.mxu1 %v8856_v0  ;;  %v89_v2 = vld [vmem:[#allocation5 + $0x18] sm:$0x3f]  ;;  %v86_v3 = vld [vmem:[#allocation5] sm:$0xff]  ;;  %v101_v5 = vand.u32 4294901760, %v87_v1  ;;  %v88_v6 = vld [vmem:[#allocation5 + $0x10] sm:$0x3f] }
  0x5c   :  { %v99_v4 = vsel %vm94_vm0, %v89_v2, 0  ;;  %v103_v7 = vand.u32 4294901760, %v86_v3  ;;  %v85_v8 = vld [vmem:[#allocation2] sm:$0xff]  ;;  %v96_v10 = vsel %vm94_vm0, %v88_v6, 0  ;;  %v6425_v42 = vld [vmem:[#allocation7 + $0x8] sm:$0xff]  ;;  %v6427_v43 = vld [vmem:[#allocation7 + $0x20] sm:$0xff] }
  0x5d   :  { %v105_v9 = vand.u32 4294901760, %v99_v4  ;;  %v92_v11 = vsel %vm90_vm1, %v85_v8, 0  ;;  %v182_v12 = vsub.f32 %v87_v1, %v101_v5  ;;  %v107_v13 = vand.u32 4294901760, %v96_v10  ;;  %v6431_v46 = vld [vmem:[#allocation7] sm:$0xff]  ;;  %v6433_v47 = vld [vmem:[#allocation7 + $0x18] sm:$0xff]  ;;  %v6459_v55 = vld [vmem:[#allocation7 + $0x50] sm:$0xff] }
  0x5e   :  { %v188_v14 = vsub.f32 %v86_v3, %v103_v7  ;;  %v170_v15 = vand.u32 4294901760, %v92_v11  ;;  %v765_v44 = vand.u32 4294901760, %v6425_v42  ;;  %v769_v45 = vand.u32 4294901760, %v6427_v43  ;;  %v6457_v54 = vld [vmem:[#allocation7 + $0x38] sm:$0xff]  ;;  %v6465_v60 = vld [vmem:[#allocation7 + $0x30] sm:$0xff]  ;;  %v6467_v61 = vld [vmem:[#allocation7 + $0x48] sm:$0xff] }
  0x5f   :  { %v5224_v16 = vpack.c.bf16 %v105_v9, %v101_v5  ;;  %v194_v17 = vsub.f32 %v99_v4, %v105_v9  ;;  %v5226_v18 = vpack.c.bf16 %v107_v13, %v103_v7  ;;  %v200_v19 = vsub.f32 %v96_v10, %v107_v13  ;;  %s6328_s4 = smov [#allocation11]  }
  0x60   :  { %v171_v20 = vsub.f32 %v92_v11, %v170_v15  ;;  %v183_v21 = vand.u32 4294901760, %v182_v12  ;;  %v189_v23 = vand.u32 4294901760, %v188_v14  ;;  %v767_v48 = vand.u32 4294901760, %v6431_v46  ;;  %v6505_v11 = vld [vmem:[#allocation7 + $0x68] sm:$0xff]  ;;  %s4379_s27 = sshll.u32 %s6328_s4, 4  ;;  %s4380_s27 = int_to_ptr.vmem [resolvable:$true] %s4379_s27 }
  0x61   :  { %5237 = vmatprep.subr.bf16.mxu0 %v5224_v16  ;;  %5225 = vmatprep.subr.bf16.mxu1 %v5224_v16  ;;  %v195_v22 = vand.u32 4294901760, %v194_v17  ;;  %v201_v26 = vand.u32 4294901760, %v200_v19  ;;  %v5232_v39 = vpack.c.bf16 %v194_v17, %v182_v12  ;;  %v5234_v41 = vpack.c.bf16 %v200_v19, %v188_v14  ;;  %s6285_s3 = scalar_lea.vmem %s4380_s27, 128  ;;  %p6290_p13 = scmp.lt.s32.totalorder %s4380_s27, %s4380_s27 }
  0x62   :  { %5239 = vmatpush1.bf16.msra.mxu0 %v5226_v18  ;;  %5227 = vmatpush1.bf16.msra.mxu1 %v5226_v18  ;;  %v172_v24 = vand.u32 4294901760, %v171_v20  ;;  %v184_v25 = vsub.f32 %v182_v12, %v183_v21  ;;  %v190_v29 = vsub.f32 %v188_v14, %v189_v23  ;;  %v771_v49 = vand.u32 4294901760, %v6433_v47  ;;  %p6286_p12 = scmp.ne.s32.totalorder %s4380_s27, %s6285_s3  ;;  %p6291_p0 = scmp.lt.s32.totalorder %s6285_s3, %s6285_s3 }
  0x63   :  { %v196_v27 = vsub.f32 %v194_v17, %v195_v22  ;;  %v5240_v28 = vpack.c.bf16 %v195_v22, %v183_v21  ;;  %v202_v32 = vsub.f32 %v200_v19, %v201_v26  ;;  %v5242_v33 = vpack.c.bf16 %v201_v26, %v189_v23  ;;  %v6513_v21 = vld [vmem:[#allocation7 + $0x60] sm:$0xff]  ;;  %v6522_v26 = vld [vmem:[#allocation7 + $0x78] sm:$0xff] }
  0x64   :  { %v173_v30 = vsub.f32 %v171_v20, %v172_v24  ;;  %v185_v31 = vand.u32 4294901760, %v184_v25  ;;  %v191_v35 = vand.u32 4294901760, %v190_v29  ;;  %v6440_v50 = vsub.f32 %v6425_v42, %v765_v44  ;;  %p6292_p1 = por %p6291_p0, %p6290_p13 }
  0x65   :  { %426 = vmatmul.mubr.f32.vlgmr.msra.gmra.mrb[0].mxu0 %v172_v24  ;;  %v197_v34 = vand.u32 4294901760, %v196_v27  ;;  %5241 = vmatprep.subr.bf16.mxu0 %v5240_v28  ;;  %v203_v37 = vand.u32 4294901760, %v202_v32  ;;  %v6445_v51 = vsub.f32 %v6427_v43, %v769_v45  ;;  %v6450_v52 = vsub.f32 %v6431_v46, %v767_v48 }
  0x66   :  { %v174_v36 = vand.u32 4294901760, %v173_v30  ;;  %5243 = vmatpush1.bf16.msra.mxu0 %v5242_v33  ;;  %508 = vmatprep.mubr.f32.mxu0 %v8856_v0  ;;  %9191 = vst [vmem:[#allocation16_spill] sm:$0xff] %v6440_v50  ;;  %v6455_v53 = vsub.f32 %v6433_v47, %v771_v49  ;;  %v8877_v56 = vand.u32 4294901760, %v6440_v50  ;;  %v773_v58 = vand.u32 4294901760, %v6457_v54  ;;  %p6293_p2 = pnand %p6292_p1, %p6286_p12 }
  0x67   :  { %v5228_v38 = vpack.c.bf16 %v197_v34, %v185_v31  ;;  %5245 = vmatprep.subr.bf16.mxu0 %v5224_v16  ;;  %v5230_v40 = vpack.c.bf16 %v203_v37, %v191_v35  ;;  %9192 = vst [vmem:[#allocation17_spill] sm:$0xff] %v6445_v51  ;;  %9193 = vst [vmem:[#allocation18_spill] sm:$0xff] %v6450_v52  ;;  %v8874_v57 = vand.u32 4294901760, %v6445_v51  ;;  %v777_v59 = vand.u32 4294901760, %v6459_v55  ;;  %v6509_v16 = vld [vmem:[#allocation7 + $0x80] sm:$0xff]  ;;  %v6531_v31 = vld [vmem:[#allocation7 + $0x98] sm:$0xff] }
  0x68   :  { %175 = vmatmul.mubr.f32.vlgmr.msra.gmra.mrb[0].mxu1 %v174_v36  ;;  %9194 = vst [vmem:[#allocation19_spill] sm:$0xff] %v6455_v53  ;;  %v8873_v62 = vand.u32 4294901760, %v6450_v52  ;;  %v8869_v63 = vand.u32 4294901760, %v6455_v53  ;;  %v775_v1 = vand.u32 4294901760, %v6465_v60  ;;  %v779_v2 = vand.u32 4294901760, %v6467_v61  ;;  %v6539_v36 = vld [vmem:[#allocation7 + $0xb0] sm:$0xff] }
  0x69   :  { %5229 = vmatprep.subr.bf16.mxu1 %v5228_v38  ;;  %265 = vmatprep.mubr.f32.mxu1 %v8856_v0  ;;  %v913_v3 = vsub.f32 %v6440_v50, %v8877_v56  ;;  %v925_v4 = vsub.f32 %v6445_v51, %v8874_v57  ;;  %v6482_v5 = vsub.f32 %v6457_v54, %v773_v58  ;;  %v781_v25 = vand.u32 4294901760, %v6505_v11  ;;  %v6747_v56 = vld [vmem:[#allocation7 + $0x140] sm:$0xff] }
  0x6a   :  { %5231 = vmatpush1.bf16.msra.mxu1 %v5230_v40  ;;  %v6487_v6 = vsub.f32 %v6459_v55, %v777_v59  ;;  %v919_v7 = vsub.f32 %v6450_v52, %v8873_v62  ;;  %v931_v8 = vsub.f32 %v6455_v53, %v8869_v63  ;;  %v6498_v9 = vsub.f32 %v6465_v60, %v775_v1 }
  0x6b   :  { %5233 = vmatprep.subr.bf16.mxu1 %v5232_v39  ;;  %9195 = vst [vmem:[#allocation20_spill] sm:$0xff] %v6482_v5  ;;  %v6503_v10 = vsub.f32 %v6467_v61, %v779_v2  ;;  %v914_v12 = vand.u32 4294901760, %v913_v3  ;;  %v926_v13 = vand.u32 4294901760, %v925_v4  ;;  %v8868_v14 = vand.u32 4294901760, %v6482_v5 }
  0x6c   :  { %9196 = vst [vmem:[#allocation21_spill] sm:$0xff] %v6487_v6  ;;  %9197 = vst [vmem:[#allocation22_spill] sm:$0xff] %v6498_v9  ;;  %v920_v17 = vand.u32 4294901760, %v919_v7  ;;  %v8862_v19 = vand.u32 4294901760, %v6498_v9  ;;  %v785_v30 = vand.u32 4294901760, %v6509_v16  ;;  %v6536_v34 = vsub.f32 %v6505_v11, %v781_v25 }
  0x6d   :  { %510 = vmatmul.mubr.f32.vlgmr.msra.gmra.mrb[0].mxu0 %v170_v15  ;;  %9198 = vst [vmem:[#allocation23_spill] sm:$0xff] %v6503_v10  ;;  %v5312_v22 = vpack.c.bf16 %v926_v13, %v914_v12  ;;  %v937_v23 = vsub.f32 %v6482_v5, %v8868_v14  ;;  %v783_v35 = vand.u32 4294901760, %v6513_v21  ;;  %v787_v40 = vand.u32 4294901760, %v6522_v26  ;;  %v6556_v12 = vld [vmem:[#allocation7 + $0xa8] sm:$0xff]  ;;  %v6646_v14 = vld [vmem:[#allocation7 + $0x110] sm:$0xff] }
  0x6e   :  { %5247 = vmatpush1.bf16.msra.mxu0 %v5226_v18  ;;  %584 = vmatprep.mubr.f32.mxu0 %v8856_v0  ;;  %v932_v18 = vand.u32 4294901760, %v931_v8  ;;  %v943_v28 = vsub.f32 %v6498_v9, %v8862_v19  ;;  %9199 = vst [vmem:[#allocation24_spill] sm:$0xff] %v6536_v34  ;;  %v6544_v39 = vsub.f32 %v6509_v16, %v785_v30  ;;  %v8859_v4 = vand.u32 4294901760, %v6536_v34  ;;  %v6606_v19 = vld [vmem:[#allocation7 + $0xe0] sm:$0xff] }
  0x6f   :  { %v938_v32 = vand.u32 4294901760, %v937_v23  ;;  %v6553_v7 = vsub.f32 %v6513_v21, %v783_v35  ;;  %v789_v8 = vand.u32 4294901760, %v6531_v31  ;;  %v6612_v42 = vpack.c.bf16 %v771_v49, %v767_v48 }
  0x70   :  { %267 = vmatmul.mubr.f32.vlgmr.msra.gmra.mrb[0].mxu1 %v170_v15  ;;  %v5314_v27 = vpack.c.bf16 %v932_v18, %v920_v17  ;;  %v944_v37 = vand.u32 4294901760, %v943_v28  ;;  %9200 = vst [vmem:[#allocation25_spill] sm:$0xff] %v6544_v39  ;;  %v8858_v17 = vand.u32 4294901760, %v6544_v39  ;;  %v6562_v18 = vsub.f32 %v6522_v26, %v787_v40  ;;  %v6718_v26 = vld [vmem:[#allocation7 + $0x108] sm:$0xff] }
  0x71   :  { %5235 = vmatpush1.bf16.msra.mxu1 %v5234_v41  ;;  %345 = vmatprep.mubr.f32.mxu1 %v8856_v0  ;;  %v6547_v41 = vld [vmem:[#allocation7 + $0x90] sm:$0xff]  ;;  %9201 = vst [vmem:[#allocation26_spill] sm:$0xff] %v6553_v7  ;;  %v961_v23 = vsub.f32 %v6536_v34, %v8859_v4  ;;  %v6598_v4 = vpack.c.bf16 %v769_v45, %v765_v44  ;;  %9207 = vst [vmem:[#allocation32_spill] sm:$0xff] %v6612_v42  ;;  %vm6327_vm2 = vmmov 0  }
  0x72   :  { %5313 = vmatprep.subr.bf16.mxu1 %v5312_v22  ;;  %9202 = vst [vmem:[#allocation27_spill] sm:$0xff] %v6562_v18  ;;  %v793_v22 = vand.u32 4294901760, %v6539_v36  ;;  %v791_v28 = vand.u32 4294901760, %v6547_v41 }
  0x73   :  { %9206 = vst [vmem:[#allocation31_spill] sm:$0xff] %v6598_v4  ;;  %5249 = vmatprep.subr.bf16.mxu0 %v6598_v4 }
  0x74   :  { %v6592_v0 = vsub.f32 %v6547_v41, %v791_v28 }
  0x75   :  { %586 = vmatmul.mubr.f32.vlgmr.msra.gmra.mrb[0].mxu0 %v170_v15  ;;  %v8863_v15 = vand.u32 4294901760, %v6487_v6 }
  0x76   :  { %9205 = vst [vmem:[#allocation30_spill] sm:$0xff] %v6592_v0  ;;  %v8867_v44 = vand.u32 4294901760, %v6592_v0  ;;  %5251 = vmatpush1.bf16.msra.mxu0 %v6612_v42 }
  0x77   :  { %v949_v24 = vsub.f32 %v6487_v6, %v8863_v15 }
  0x78   :  { %348 = vmatmul.mubr.f32.vlgmr.msra.gmra.mrb[0].mxu1 %v171_v20  ;;  %v8861_v20 = vand.u32 4294901760, %v6503_v10  ;;  %v991_v48 = vsub.f32 %v6592_v0, %v8867_v44  ;;  %v6644_v44 = vld [vmem:[#allocation7 + $0xf8] sm:$0xff] }
  0x79   :  { %v950_v33 = vand.u32 4294901760, %v949_v24  ;;  %5315 = vmatpush1.bf16.msra.mxu1 %v5314_v27  ;;  %v8860_v24 = vand.u32 4294901760, %v6553_v7  ;;  %v6572_v27 = vsub.f32 %v6531_v31, %v789_v8 }
  0x7a   :  { %v955_v29 = vsub.f32 %v6503_v10, %v8861_v20  ;;  %v6604_v20 = vld [vmem:[#allocation7 + $0xc8] sm:$0xff]  ;;  %v992_v63 = vand.u32 4294901760, %v991_v48  ;;  %v6691_v48 = vld [vmem:[#allocation7 + $0xf0] sm:$0xff] }
  0x7b   :  { %v5316_v3 = vpack.c.bf16 %v950_v33, %v938_v32  ;;  %9203 = vst [vmem:[#allocation28_spill] sm:$0xff] %v6572_v27  ;;  %v8866_v32 = vand.u32 4294901760, %v6562_v18  ;;  %v6582_v33 = vsub.f32 %v6539_v36, %v793_v22  ;;  %v797_v49 = vand.u32 4294901760, %v6604_v20 }
  0x7c   :  { %v956_v38 = vand.u32 4294901760, %v955_v29  ;;  %v973_v29 = vsub.f32 %v6544_v39, %v8858_v17 }
  0x7d   :  { %5317 = vmatprep.subr.bf16.mxu1 %v5316_v3  ;;  %9204 = vst [vmem:[#allocation29_spill] sm:$0xff] %v6582_v33  ;;  %v967_v3 = vsub.f32 %v6553_v7, %v8860_v24  ;;  %v8864_v24 = vand.u32 4294901760, %v6582_v33  ;;  %v6657_v54 = vsub.f32 %v6604_v20, %v797_v49  ;;  %v6790_v20 = vld [vmem:[#allocation7 + $0x170] sm:$0xff] }
  0x7e   :  { %v5318_v13 = vpack.c.bf16 %v956_v38, %v944_v37  ;;  %v795_v37 = vand.u32 4294901760, %v6556_v12  ;;  %v962_v38 = vand.u32 4294901760, %v961_v23  ;;  %v974_v17 = vand.u32 4294901760, %v973_v29 }
  0x7f   :  { %v979_v23 = vsub.f32 %v6562_v18, %v8866_v32  ;;  %v968_v15 = vand.u32 4294901760, %v967_v3  ;;  %v997_v3 = vsub.f32 %v6582_v33, %v8864_v24  ;;  %9211 = vst [vmem:[#allocation36_spill] sm:$0xff] %v6657_v54 }
  0x80   :  { %5319 = vmatpush1.bf16.msra.mxu1 %v5318_v13  ;;  %v8865_v13 = vand.u32 4294901760, %v6572_v27  ;;  %v5320_v45 = vpack.c.bf16 %v974_v17, %v962_v38  ;;  %v6625_v46 = vsub.f32 %v6556_v12, %v795_v37  ;;  %v801_v17 = vand.u32 4294901760, %v6606_v19  ;;  %v6633_v38 = vld [vmem:[#allocation7 + $0xc0] sm:$0xff] }
  0x81   :  { %v980_v29 = vand.u32 4294901760, %v979_v23  ;;  %v6635_v23 = vld [vmem:[#allocation7 + $0xd8] sm:$0xff]  ;;  %v799_v60 = vand.u32 4294901760, %v6633_v38  ;;  %v8882_v12 = vand.u32 4294901760, %v6747_v56 }
  0x82   :  { %v985_v43 = vsub.f32 %v6572_v27, %v8865_v13  ;;  %9208 = vst [vmem:[#allocation33_spill] sm:$0xff] %v6625_v46  ;;  %5321 = vmatprep.subr.bf16.mxu1 %v5320_v45  ;;  %v998_v13 = vand.u32 4294901760, %v997_v3  ;;  %v8872_v32 = vand.u32 4294901760, %v6625_v46  ;;  %v6652_v45 = vpack.c.bf16 %v779_v2, %v775_v1 }
  0x83   :  { %v5322_v24 = vpack.c.bf16 %v980_v29, %v968_v15  ;;  %v6662_v55 = vsub.f32 %v6606_v19, %v801_v17  ;;  %v803_v61 = vand.u32 4294901760, %v6635_v23  ;;  %v8870_v1 = vand.u32 4294901760, %v6657_v54 }
  0x84   :  { %v986_v47 = vand.u32 4294901760, %v985_v43  ;;  %v6641_v43 = vpack.c.bf16 %v777_v59, %v773_v58  ;;  %9210 = vst [vmem:[#allocation35_spill] sm:$0xff] %v6652_v45  ;;  %v1003_v59 = vsub.f32 %v6625_v46, %v8872_v32  ;;  %v805_v15 = vand.u32 4294901760, %v6644_v44 }
  0x85   :  { %9212 = vst [vmem:[#allocation37_spill] sm:$0xff] %v6662_v55  ;;  %5323 = vmatpush1.bf16.msra.mxu1 %v5322_v24  ;;  %v8871_v2 = vand.u32 4294901760, %v6662_v55  ;;  %v809_v24 = vand.u32 4294901760, %v6646_v14  ;;  %v6679_v29 = vpack.c.bf16 %v785_v30, %v781_v25  ;;  %v6684_v3 = vsub.f32 %v6633_v38, %v799_v60 }
  0x86   :  { %9209 = vst [vmem:[#allocation34_spill] sm:$0xff] %v6641_v43  ;;  %v5324_v58 = vpack.c.bf16 %v998_v13, %v986_v47  ;;  %5253 = vmatprep.subr.bf16.mxu0 %v6641_v43  ;;  %v1004_v13 = vand.u32 4294901760, %v1003_v59  ;;  %v6689_v47 = vsub.f32 %v6635_v23, %v803_v61  ;;  %v1009_v11 = vsub.f32 %v6657_v54, %v8870_v1 }
  0x87   :  { %5255 = vmatpush1.bf16.msra.mxu0 %v6652_v45  ;;  %9213 = vst [vmem:[#allocation38_spill] sm:$0xff] %v6679_v29  ;;  %9214 = vst [vmem:[#allocation39_spill] sm:$0xff] %v6684_v3  ;;  %v1021_v16 = vsub.f32 %v6662_v55, %v8871_v2  ;;  %v6703_v25 = vpack.c.bf16 %v787_v40, %v783_v35  ;;  %v6708_v30 = vsub.f32 %v6644_v44, %v805_v15 }
  0x88   :  { %5325 = vmatprep.subr.bf16.mxu1 %v5324_v58  ;;  %9215 = vst [vmem:[#allocation40_spill] sm:$0xff] %v6689_v47  ;;  %v5326_v58 = vpack.c.bf16 %v1004_v13, %v992_v63  ;;  %5257 = vmatprep.subr.bf16.mxu0 %v6679_v29  ;;  %v8875_v59 = vand.u32 4294901760, %v6684_v3  ;;  %v8876_v1 = vand.u32 4294901760, %v6689_v47  ;;  %v6716_v21 = vsub.f32 %v6646_v14, %v809_v24 }
  0x89   :  { %9216 = vst [vmem:[#allocation41_spill] sm:$0xff] %v6703_v25  ;;  %9217 = vst [vmem:[#allocation42_spill] sm:$0xff] %v6708_v30  ;;  %v1010_v35 = vand.u32 4294901760, %v1009_v11  ;;  %v1022_v40 = vand.u32 4294901760, %v1021_v16  ;;  %v8878_v2 = vand.u32 4294901760, %v6708_v30  ;;  %v8880_v63 = vand.u32 4294901760, %v6691_v48 }
  0x8a   :  { %9218 = vst [vmem:[#allocation43_spill] sm:$0xff] %v6716_v21  ;;  %5327 = vmatpush1.bf16.msra.mxu1 %v5326_v58  ;;  %v1015_v13 = vsub.f32 %v6684_v3, %v8875_v59  ;;  %v1027_v32 = vsub.f32 %v6689_v47, %v8876_v1  ;;  %v8879_v62 = vand.u32 4294901760, %v6716_v21  ;;  %v6734_v11 = vpack.c.bf16 %v793_v22, %v789_v8  ;;  %v6736_v16 = vld [vmem:[#allocation7 + $0x128] sm:$0xff] }
  0x8b   :  { %5259 = vmatpush1.bf16.msra.mxu0 %v6703_v25  ;;  %v5328_v57 = vpack.c.bf16 %v1022_v40, %v1010_v35  ;;  %v1033_v58 = vsub.f32 %v6708_v30, %v8878_v2  ;;  %v8889_v59 = vand.u32 4294901760, %v6718_v26  ;;  %v6745_v1 = vsub.f32 %v6691_v48, %v8880_v63  ;;  %v6759_v35 = vld [vmem:[#allocation7 + $0x120] sm:$0xff] }
  0x8c   :  { %9219 = vst [vmem:[#allocation44_spill] sm:$0xff] %v6734_v11  ;;  %v1016_v31 = vand.u32 4294901760, %v1015_v13  ;;  %v1028_v36 = vand.u32 4294901760, %v1027_v32  ;;  %v1045_v8 = vsub.f32 %v6716_v21, %v8879_v62  ;;  %5261 = vmatprep.subr.bf16.mxu0 %v6734_v11  ;;  %v6757_v22 = vpack.c.bf16 %v795_v37, %v791_v28  ;;  %v6768_v62 = vld [vmem:[#allocation7 + $0x138] sm:$0xff] }
  0x8d   :  { %9220 = vst [vmem:[#allocation45_spill] sm:$0xff] %v6745_v1  ;;  %5329 = vmatprep.subr.bf16.mxu1 %v5328_v57  ;;  %v1034_v40 = vand.u32 4294901760, %v1033_v58  ;;  %v8881_v2 = vand.u32 4294901760, %v6745_v1  ;;  %v6765_v32 = vsub.f32 %v6718_v26, %v8889_v59  ;;  %v8886_v13 = vand.u32 4294901760, %v6736_v16 }
  0x8e   :  { %9221 = vst [vmem:[#allocation46_spill] sm:$0xff] %v6757_v22  ;;  %v5330_v41 = vpack.c.bf16 %v1028_v36, %v1016_v31  ;;  %v1046_v63 = vand.u32 4294901760, %v1045_v8  ;;  %v6776_v57 = vpack.c.bf16 %v801_v17, %v797_v49  ;;  %v8885_v31 = vand.u32 4294901760, %v6759_v35  ;;  %v6788_v36 = vld [vmem:[#allocation7 + $0x158] sm:$0xff] }
  0x8f   :  { %9222 = vst [vmem:[#allocation47_spill] sm:$0xff] %v6765_v32  ;;  %5263 = vmatpush1.bf16.msra.mxu0 %v6757_v22  ;;  %v1039_v28 = vsub.f32 %v6745_v1, %v8881_v2  ;;  %v8883_v37 = vand.u32 4294901760, %v6765_v32  ;;  %v6785_v58 = vsub.f32 %v6736_v16, %v8886_v13  ;;  %v6795_v49 = vsub.f32 %v6747_v56, %v8882_v12  ;;  %v7080_v1 = vld [vmem:[#allocation7 + $0x228] sm:$0xff] }
  0x90   :  { %9223 = vst [vmem:[#allocation48_spill] sm:$0xff] %v6776_v57  ;;  %5331 = vmatpush1.bf16.msra.mxu1 %v5330_v41  ;;  %v5332_v19 = vpack.c.bf16 %v1046_v63, %v1034_v40  ;;  %5265 = vmatprep.subr.bf16.mxu0 %v6776_v57  ;;  %v8884_v17 = vand.u32 4294901760, %v6768_v62  ;;  %v6803_v8 = vpack.c.bf16 %v803_v61, %v799_v60  ;;  %v8890_v23 = vand.u32 4294901760, %v6788_v36  ;;  %v6823_v61 = vld [vmem:[#allocation7 + $0x150] sm:$0xff] }
  0x91   :  { %9224 = vst [vmem:[#allocation49_spill] sm:$0xff] %v6785_v58  ;;  %9225 = vst [vmem:[#allocation50_spill] sm:$0xff] %v6795_v49  ;;  %v1040_v2 = vand.u32 4294901760, %v1039_v28  ;;  %v1051_v63 = vsub.f32 %v6765_v32, %v8883_v37  ;;  %v8887_v40 = vand.u32 4294901760, %v6785_v58  ;;  %v6812_v41 = vsub.f32 %v6759_v35, %v8885_v31 }
  0x92   :  { %9226 = vst [vmem:[#allocation51_spill] sm:$0xff] %v6803_v8  ;;  %5333 = vmatprep.subr.bf16.mxu1 %v5332_v19  ;;  %v8888_v12 = vand.u32 4294901760, %v6795_v49  ;;  %v6818_v38 = vsub.f32 %v6768_v62, %v8884_v17  ;;  %v8891_v60 = vand.u32 4294901760, %v6790_v20  ;;  %v6833_v17 = vpack.c.bf16 %v809_v24, %v805_v15  ;;  %v6853_v24 = vld [vmem:[#allocation7 + $0x168] sm:$0xff] }
  0x93   :  { %5267 = vmatpush1.bf16.msra.mxu0 %v6803_v8  ;;  %v1052_v28 = vand.u32 4294901760, %v1051_v63  ;;  %v1057_v19 = vsub.f32 %v6785_v58, %v8887_v40  ;;  %v8894_v37 = vand.u32 4294901760, %v6812_v41  ;;  %v6842_v63 = vsub.f32 %v6788_v36, %v8890_v23 }
  0x94   :  { %9227 = vst [vmem:[#allocation52_spill] sm:$0xff] %v6833_v17  ;;  %v1069_v31 = vsub.f32 %v6795_v49, %v8888_v12  ;;  %v8897_v13 = vand.u32 4294901760, %v6818_v38  ;;  %v6847_v40 = vsub.f32 %v6790_v20, %v8891_v60  ;;  %5269 = vmatprep.subr.bf16.mxu0 %v6833_v17  ;;  %v8908_v17 = vand.u32 4294901760, %v6853_v24  ;;  %v6865_v12 = vld [vmem:[#allocation7 + $0x188] sm:$0xff]  ;;  %v6985_v49 = vld [vmem:[#allocation7 + $0x200] sm:$0xff] }
  0x95   :  { %v5334_v44 = vpack.c.bf16 %v1052_v28, %v1040_v2  ;;  %v1058_v14 = vand.u32 4294901760, %v1057_v19  ;;  %v1063_v15 = vsub.f32 %v6812_v41, %v8894_v37  ;;  %v8898_v60 = vand.u32 4294901760, %v6842_v63 }
  0x96   :  { %v1070_v59 = vand.u32 4294901760, %v1069_v31  ;;  %v1075_v23 = vsub.f32 %v6818_v38, %v8897_v13  ;;  %v8901_v28 = vand.u32 4294901760, %v6847_v40  ;;  %v9228_v13 = vand.u32 4294901760, %v6823_v61 }
  0x97   :  { %5335 = vmatpush1.bf16.msra.mxu1 %v5334_v44  ;;  %v1064_v2 = vand.u32 4294901760, %v1063_v15  ;;  %v1081_v37 = vsub.f32 %v6842_v63, %v8898_v60  ;;  %v6875_v15 = vld [vmem:[#allocation7 + $0x1a0] sm:$0xff]  ;;  %v6882_v60 = vsub.f32 %v6853_v24, %v8908_v17  ;;  %v9229_v57 = vand.u32 4294901760, %v6691_v48 }
  0x98   :  { %v5336_v19 = vpack.c.bf16 %v1070_v59, %v1058_v14  ;;  %v1076_v8 = vand.u32 4294901760, %v1075_v23  ;;  %v1093_v31 = vsub.f32 %v6847_v40, %v8901_v28  ;;  %v6873_v44 = vsub.f32 %v6823_v61, %v9228_v13  ;;  %v6877_v59 = vld [vmem:[#allocation7 + $0x180] sm:$0xff]  ;;  %v6890_v13 = vld [vmem:[#allocation7 + $0x198] sm:$0xff] }
  0x99   :  { %v1082_v14 = vand.u32 4294901760, %v1081_v37  ;;  %v9230_v28 = vand.u32 4294901760, %v6718_v26  ;;  %v8911_v37 = vand.u32 4294901760, %v6882_v60  ;;  %v9232_v48 = vand.u32 4294901760, %v6736_v16 }
  0x9a   :  { %5337 = vmatprep.subr.bf16.mxu1 %v5336_v19  ;;  %v5338_v23 = vpack.c.bf16 %v1076_v8, %v1064_v2  ;;  %v1094_v11 = vand.u32 4294901760, %v1093_v31  ;;  %v8909_v25 = vand.u32 4294901760, %v6873_v44  ;;  %v8910_v19 = vand.u32 4294901760, %v6865_v12  ;;  %v6915_v8 = vld [vmem:[#allocation7 + $0x1d0] sm:$0xff] }
  0x9b   :  { %v6888_v22 = vpack.c.bf16 %v9230_v28, %v9229_v57  ;;  %v9233_v26 = vand.u32 4294901760, %v6747_v56  ;;  %v8918_v2 = vand.u32 4294901760, %v6877_v59  ;;  %v6904_v28 = vld [vmem:[#allocation7 + $0x1b8] sm:$0xff]  ;;  %v1099_v56 = vsub.f32 %v6882_v60, %v8911_v37 }
  0x9c   :  { %5339 = vmatpush1.bf16.msra.mxu1 %v5338_v23  ;;  %v5340_v31 = vpack.c.bf16 %v1094_v11, %v1082_v14  ;;  %v1087_v23 = vsub.f32 %v6873_v44, %v8909_v25  ;;  %v6912_v17 = vsub.f32 %v6865_v12, %v8910_v19  ;;  %v9237_v25 = vand.u32 4294901760, %v6768_v62 }
  0x9d   :  { %9231 = vst [vmem:[#allocation53_spill] sm:$0xff] %v6888_v22  ;;  %5271 = vmatpush1.bf16.msra.mxu0 %v6888_v22  ;;  %v6901_v57 = vpack.c.bf16 %v9233_v26, %v9232_v48  ;;  %v9235_v48 = vand.u32 4294901760, %v6875_v15  ;;  %v6929_v14 = vsub.f32 %v6877_v59, %v8918_v2  ;;  %v9236_v26 = vand.u32 4294901760, %v6759_v35 }
  0x9e   :  { %5341 = vmatprep.subr.bf16.mxu1 %v5340_v31  ;;  %v1088_v37 = vand.u32 4294901760, %v1087_v23  ;;  %v8921_v16 = vand.u32 4294901760, %v6912_v17  ;;  %v1100_v29 = vand.u32 4294901760, %v1099_v56  ;;  %v6952_v23 = vld [vmem:[#allocation7 + $0x1b0] sm:$0xff]  ;;  %v9241_v45 = vand.u32 4294901760, %v6788_v36 }
  0x9f   :  { %9234 = vst [vmem:[#allocation54_spill] sm:$0xff] %v6901_v57  ;;  %v6923_v11 = vsub.f32 %v6875_v15, %v9235_v48  ;;  %5273 = vmatprep.subr.bf16.mxu0 %v6901_v57  ;;  %v6935_v19 = vpack.c.bf16 %v9237_v25, %v9236_v26  ;;  %v9239_v48 = vand.u32 4294901760, %v6890_v13  ;;  %v8928_v57 = vand.u32 4294901760, %v6904_v28 }
  0xa0   :  { %v8925_v35 = vand.u32 4294901760, %v6929_v14  ;;  %v1105_v25 = vsub.f32 %v6912_v17, %v8921_v16  ;;  %v5342_v26 = vpack.c.bf16 %v1100_v29, %v1088_v37  ;;  %v9240_v37 = vand.u32 4294901760, %v6915_v8 }
  0xa1   :  { %9238 = vst [vmem:[#allocation55_spill] sm:$0xff] %v6935_v19  ;;  %v6941_v22 = vsub.f32 %v6890_v13, %v9239_v48  ;;  %v8922_v2 = vand.u32 4294901760, %v6923_v11  ;;  %5275 = vmatpush1.bf16.msra.mxu0 %v6935_v19  ;;  %v6963_v62 = vsub.f32 %v6904_v28, %v8928_v57  ;;  %v6965_v19 = vld [vmem:[#allocation7 + $0x1c8] sm:$0xff] }
  0xa2   :  { %v1111_v48 = vsub.f32 %v6929_v14, %v8925_v35  ;;  %v1106_v16 = vand.u32 4294901760, %v1105_v25  ;;  %v9242_v35 = vand.u32 4294901760, %v6790_v20  ;;  %v6981_v57 = vld [vmem:[#allocation7 + $0x1e8] sm:$0xff]  ;;  %5343 = vmatpush1.bf16.msra.mxu1 %v5342_v26  ;;  %v9245_v20 = vand.u32 4294901760, %v6853_v24 }
  0xa3   :  { %v8933_v31 = vand.u32 4294901760, %v6941_v22  ;;  %v1117_v56 = vsub.f32 %v6923_v11, %v8922_v2  ;;  %v6973_v2 = vsub.f32 %v6915_v8, %v9240_v37  ;;  %v8938_v4 = vand.u32 4294901760, %v6963_v62  ;;  %v7005_v37 = vld [vmem:[#allocation7 + $0x1e0] sm:$0xff] }
  0xa4   :  { %v6979_v43 = vpack.c.bf16 %v9242_v35, %v9241_v45  ;;  %v1112_v25 = vand.u32 4294901760, %v1111_v48  ;;  %v9244_v45 = vand.u32 4294901760, %v6823_v61 }
  0xa5   :  { %v1123_v29 = vsub.f32 %v6941_v22, %v8933_v31  ;;  %v1118_v42 = vand.u32 4294901760, %v1117_v56  ;;  %v8939_v31 = vand.u32 4294901760, %v6952_v23  ;;  %v1129_v56 = vsub.f32 %v6963_v62, %v8938_v4 }
  0xa6   :  { %9243 = vst [vmem:[#allocation56_spill] sm:$0xff] %v6979_v43  ;;  %5277 = vmatprep.subr.bf16.mxu0 %v6979_v43  ;;  %v6994_v35 = vpack.c.bf16 %v9245_v20, %v9244_v45  ;;  %v9247_v61 = vand.u32 4294901760, %v6973_v2  ;;  %v7017_v20 = vld [vmem:[#allocation7 + $0x1f8] sm:$0xff] }
  0xa7   :  { %v1124_v58 = vand.u32 4294901760, %v1123_v29  ;;  %v5344_v26 = vpack.c.bf16 %v1118_v42, %v1106_v16  ;;  %v7002_v48 = vsub.f32 %v6952_v23, %v8939_v31  ;;  %v8944_v29 = vand.u32 4294901760, %v6981_v57  ;;  %v7038_v43 = vld [vmem:[#allocation7 + $0x218] sm:$0xff] }
  0xa8   :  { %9246 = vst [vmem:[#allocation57_spill] sm:$0xff] %v6994_v35  ;;  %v1141_v24 = vsub.f32 %v6973_v2, %v9247_v61  ;;  %v9248_v42 = vand.u32 4294901760, %v6965_v19  ;;  %5279 = vmatpush1.bf16.msra.mxu0 %v6994_v35  ;;  %v1130_v4 = vand.u32 4294901760, %v1129_v56  ;;  %v9250_v61 = vand.u32 4294901760, %v6875_v15 }
  0xa9   :  { %v5346_v36 = vpack.c.bf16 %v1124_v58, %v1112_v25  ;;  %5345 = vmatprep.subr.bf16.mxu1 %v5344_v26  ;;  %v7023_v58 = vsub.f32 %v6981_v57, %v8944_v29  ;;  %v9249_v25 = vand.u32 4294901760, %v6865_v12  ;;  %v9252_v26 = vand.u32 4294901760, %v6985_v49 }
  0xaa   :  { %v7013_v16 = vsub.f32 %v6965_v19, %v9248_v42  ;;  %v1142_v35 = vand.u32 4294901760, %v1141_v24  ;;  %v9253_v29 = vand.u32 4294901760, %v7002_v48  ;;  %v9254_v24 = vand.u32 4294901760, %v6877_v59 }
  0xab   :  { %v7029_v42 = vpack.c.bf16 %v9250_v61, %v9249_v25  ;;  %5347 = vmatpush1.bf16.msra.mxu1 %v5346_v36  ;;  %v7035_v56 = vsub.f32 %v6985_v49, %v9252_v26  ;;  %v9255_v25 = vand.u32 4294901760, %v6890_v13  ;;  %v7052_v26 = vld [vmem:[#allocation7 + $0x230] sm:$0xff]  ;;  %v9257_v15 = vand.u32 4294901760, %v7005_v37 }
  0xac   :  { %v8949_v45 = vand.u32 4294901760, %v7013_v16  ;;  %v1135_v12 = vsub.f32 %v7002_v48, %v9253_v29  ;;  %v5348_v31 = vpack.c.bf16 %v1142_v35, %v1130_v4  ;;  %v9258_v59 = vand.u32 4294901760, %v7023_v58 }
  0xad   :  { %9251 = vst [vmem:[#allocation58_spill] sm:$0xff] %v7029_v42  ;;  %5281 = vmatprep.subr.bf16.mxu0 %v7029_v42  ;;  %v7050_v61 = vpack.c.bf16 %v9255_v25, %v9254_v24  ;;  %v8954_v29 = vand.u32 4294901760, %v7035_v56  ;;  %v7061_v42 = vsub.f32 %v7005_v37, %v9257_v15  ;;  %v9259_v24 = vand.u32 4294901760, %v7017_v20 }
  0xae   :  { %v1147_v32 = vsub.f32 %v7013_v16, %v8949_v45  ;;  %v1136_v36 = vand.u32 4294901760, %v1135_v12  ;;  %v1153_v13 = vsub.f32 %v7023_v58, %v9258_v59  ;;  %v8961_v35 = vand.u32 4294901760, %v7038_v43  ;;  %5349 = vmatprep.subr.bf16.mxu1 %v5348_v31  ;;  %v7078_v59 = vld [vmem:[#allocation7 + $0x210] sm:$0xff] }
  0xaf   :  { %9256 = vst [vmem:[#allocation59_spill] sm:$0xff] %v7050_v61  ;;  %v7069_v4 = vsub.f32 %v7017_v20, %v9259_v24  ;;  %5283 = vmatpush1.bf16.msra.mxu0 %v7050_v61  ;;  %v1165_v15 = vsub.f32 %v7035_v56, %v8954_v29  ;;  %v9261_v29 = vand.u32 4294901760, %v6915_v8  ;;  %v9263_v30 = vand.u32 4294901760, %v7061_v42 }
  0xb0   :  { %v1148_v25 = vand.u32 4294901760, %v1147_v32  ;;  %v1154_v24 = vand.u32 4294901760, %v1153_v13  ;;  %v7086_v31 = vsub.f32 %v7038_v43, %v8961_v35  ;;  %v9260_v32 = vand.u32 4294901760, %v6904_v28 }
  0xb1   :  { %v1166_v45 = vand.u32 4294901760, %v1165_v15  ;;  %v1159_v47 = vsub.f32 %v7061_v42, %v9263_v30  ;;  %v9264_v13 = vand.u32 4294901760, %v7052_v26  ;;  %v9265_v35 = vand.u32 4294901760, %v7069_v4  ;;  %v7111_v30 = vld [vmem:[#allocation7 + $0x260] sm:$0xff] }
  0xb2   :  { %v7092_v61 = vpack.c.bf16 %v9261_v29, %v9260_v32  ;;  %v5350_v12 = vpack.c.bf16 %v1148_v25, %v1136_v36  ;;  %v7109_v29 = vld [vmem:[#allocation7 + $0x248] sm:$0xff]  ;;  %v9269_v8 = vand.u32 4294901760, %v7086_v31  ;;  %v9270_v55 = vand.u32 4294901760, %v7078_v59 }
  0xb3   :  { %v7100_v21 = vsub.f32 %v7052_v26, %v9264_v13  ;;  %v1171_v3 = vsub.f32 %v7069_v4, %v9265_v35  ;;  %v5352_v25 = vpack.c.bf16 %v1166_v45, %v1154_v24  ;;  %v1160_v15 = vand.u32 4294901760, %v1159_v47 }
  0xb4   :  { %9262 = vst [vmem:[#allocation60_spill] sm:$0xff] %v7092_v61  ;;  %5285 = vmatprep.subr.bf16.mxu0 %v7092_v61  ;;  %5351 = vmatpush1.bf16.msra.mxu1 %v5350_v12  ;;  %v9266_v13 = vand.u32 4294901760, %v6952_v23  ;;  %v9267_v35 = vand.u32 4294901760, %v6965_v19  ;;  %v1177_v36 = vsub.f32 %v7086_v31, %v9269_v8  ;;  %v7126_v54 = vsub.f32 %v7078_v59, %v9270_v55  ;;  %v7133_v23 = vld [vmem:[#allocation7 + $0x240] sm:$0xff] }
  0xb5   :  { %v8970_v32 = vand.u32 4294901760, %v7100_v21  ;;  %v1172_v61 = vand.u32 4294901760, %v1171_v3  ;;  %v9271_v47 = vand.u32 4294901760, %v7080_v1  ;;  %5353 = vmatprep.subr.bf16.mxu1 %v5352_v25  ;;  %v8976_v19 = vand.u32 4294901760, %v7109_v29 }
  0xb6   :  { %v7118_v28 = vpack.c.bf16 %v9267_v35, %v9266_v13  ;;  %v8975_v12 = vand.u32 4294901760, %v7111_v30  ;;  %v9272_v55 = vand.u32 4294901760, %v6981_v57  ;;  %v9273_v24 = vand.u32 4294901760, %v6985_v49  ;;  %v7147_v13 = vld [vmem:[#allocation7 + $0x258] sm:$0xff] }
  0xb7   :  { %v7131_v45 = vsub.f32 %v7080_v1, %v9271_v47  ;;  %v1189_v3 = vsub.f32 %v7100_v21, %v8970_v32  ;;  %v5354_v35 = vpack.c.bf16 %v1172_v61, %v1160_v15  ;;  %v1178_v25 = vand.u32 4294901760, %v1177_v36  ;;  %v7163_v61 = vld [vmem:[#allocation7 + $0x278] sm:$0xff] }
  0xb8   :  { %9268 = vst [vmem:[#allocation61_spill] sm:$0xff] %v7118_v28  ;;  %5287 = vmatpush1.bf16.msra.mxu0 %v7118_v28  ;;  %v7145_v8 = vpack.c.bf16 %v9273_v24, %v9272_v55  ;;  %v8979_v47 = vand.u32 4294901760, %v7126_v54  ;;  %v7154_v28 = vsub.f32 %v7109_v29, %v8976_v19  ;;  %v7159_v49 = vsub.f32 %v7111_v30, %v8975_v12  ;;  %v7178_v19 = vld [vmem:[#allocation7 + $0x290] sm:$0xff] }
  0xb9   :  { %v8982_v32 = vand.u32 4294901760, %v7131_v45  ;;  %v1190_v46 = vand.u32 4294901760, %v1189_v3  ;;  %5355 = vmatpush1.bf16.msra.mxu1 %v5354_v35  ;;  %v9275_v55 = vand.u32 4294901760, %v7005_v37  ;;  %v9276_v24 = vand.u32 4294901760, %v7017_v20 }
  0xba   :  { %9274 = vst [vmem:[#allocation62_spill] sm:$0xff] %v7145_v8  ;;  %5289 = vmatprep.subr.bf16.mxu0 %v7145_v8  ;;  %v1183_v36 = vsub.f32 %v7126_v54, %v8979_v47  ;;  %v8985_v35 = vand.u32 4294901760, %v7154_v28  ;;  %v8986_v8 = vand.u32 4294901760, %v7159_v49  ;;  %v9278_v47 = vand.u32 4294901760, %v7133_v23 }
  0xbb   :  { %v1195_v15 = vsub.f32 %v7131_v45, %v8982_v32  ;;  %v7176_v12 = vpack.c.bf16 %v9276_v24, %v9275_v55  ;;  %v5356_v57 = vpack.c.bf16 %v1190_v46, %v1178_v25  ;;  %v9279_v37 = vand.u32 4294901760, %v7147_v13  ;;  %v7202_v55 = vld [vmem:[#allocation7 + $0x270] sm:$0xff]  ;;  %v7204_v24 = vld [vmem:[#allocation7 + $0x288] sm:$0xff] }
  0xbc   :  { %v7185_v0 = vsub.f32 %v7133_v23, %v9278_v47  ;;  %v1184_v32 = vand.u32 4294901760, %v1183_v36  ;;  %v1201_v25 = vsub.f32 %v7154_v28, %v8985_v35  ;;  %v1213_v47 = vsub.f32 %v7159_v49, %v8986_v8 }
  0xbd   :  { %9277 = vst [vmem:[#allocation63_spill] sm:$0xff] %v7176_v12  ;;  %v1196_v3 = vand.u32 4294901760, %v1195_v15  ;;  %v7190_v20 = vsub.f32 %v7147_v13, %v9279_v37  ;;  %5291 = vmatpush1.bf16.msra.mxu0 %v7176_v12  ;;  %5357 = vmatprep.subr.bf16.mxu1 %v5356_v57  ;;  %v9281_v57 = vand.u32 4294901760, %v7163_v61  ;;  %v9282_v35 = vand.u32 4294901760, %v7038_v43 }
  0xbe   :  { %v9283_v8 = vand.u32 4294901760, %v7052_v26  ;;  %v1202_v36 = vand.u32 4294901760, %v1201_v25  ;;  %v1214_v15 = vand.u32 4294901760, %v1213_v47  ;;  %v9285_v27 = vand.u32 4294901760, %v7185_v0  ;;  %v7233_v25 = vld [vmem:[#allocation7 + $0x2a8] sm:$0xff] }
  0xbf   :  { %9280 = vst [vmem:[#allocation64_spill] sm:$0xff] %v7190_v20  ;;  %v5358_v37 = vpack.c.bf16 %v1196_v3, %v1184_v32  ;;  %v8993_v46 = vand.u32 4294901760, %v7190_v20  ;;  %v7210_v12 = vsub.f32 %v7163_v61, %v9281_v57  ;;  %v9286_v32 = vand.u32 4294901760, %v7178_v19 }
  0xc0   :  { %v7216_v33 = vpack.c.bf16 %v9283_v8, %v9282_v35  ;;  %v1207_v18 = vsub.f32 %v7185_v0, %v9285_v27  ;;  %v7235_v27 = vld [vmem:[#allocation7 + $0x2c0] sm:$0xff]  ;;  %v5360_v47 = vpack.c.bf16 %v1214_v15, %v1202_v36  ;;  %v9292_v35 = vand.u32 4294901760, %v7202_v55 }
  0xc1   :  { %v7224_v3 = vsub.f32 %v7178_v19, %v9286_v32  ;;  %5359 = vmatpush1.bf16.msra.mxu1 %v5358_v37  ;;  %v1219_v43 = vsub.f32 %v7190_v20, %v8993_v46  ;;  %v9288_v32 = vand.u32 4294901760, %v7078_v59  ;;  %v9289_v46 = vand.u32 4294901760, %v7080_v1  ;;  %v7257_v59 = vld [vmem:[#allocation7 + $0x2a0] sm:$0xff] }
  0xc2   :  { %9284 = vst [vmem:[#allocation65_spill] sm:$0xff] %v7216_v33  ;;  %5293 = vmatprep.subr.bf16.mxu0 %v7216_v33  ;;  %v1208_v57 = vand.u32 4294901760, %v1207_v18  ;;  %v9291_v33 = vand.u32 4294901760, %v7210_v12  ;;  %v7250_v39 = vsub.f32 %v7202_v55, %v9292_v35  ;;  %v9293_v18 = vand.u32 4294901760, %v7204_v24  ;;  %5361 = vmatprep.subr.bf16.mxu1 %v5360_v47 }
  0xc3   :  { %9287 = vst [vmem:[#allocation66_spill] sm:$0xff] %v7224_v3  ;;  %v9002_v37 = vand.u32 4294901760, %v7224_v3  ;;  %v7242_v7 = vpack.c.bf16 %v9289_v46, %v9288_v32  ;;  %v1220_v26 = vand.u32 4294901760, %v1219_v43  ;;  %v881_v46 = vand.u32 4294901760, %v7235_v27  ;;  %v7271_v32 = vld [vmem:[#allocation7 + $0x2b8] sm:$0xff] }
  0xc4   :  { %v1225_v8 = vsub.f32 %v7210_v12, %v9291_v33  ;;  %v7255_v36 = vsub.f32 %v7204_v24, %v9293_v18  ;;  %v877_v33 = vand.u32 4294901760, %v7233_v25  ;;  %v9294_v15 = vand.u32 4294901760, %v7109_v29 }
  0xc5   :  { %9290 = vst [vmem:[#allocation67_spill] sm:$0xff] %v7242_v7  ;;  %v1237_v1 = vsub.f32 %v7224_v3, %v9002_v37  ;;  %5295 = vmatpush1.bf16.msra.mxu0 %v7242_v7  ;;  %v9295_v43 = vand.u32 4294901760, %v7111_v30  ;;  %v5362_v18 = vpack.c.bf16 %v1220_v26, %v1208_v57  ;;  %v9011_v34 = vand.u32 4294901760, %v7250_v39  ;;  %v762_v30 = vld [vmem:[#allocation7 + $0x2d8] sm:$0xff] }
  0xc6   :  { %v1226_v47 = vand.u32 4294901760, %v1225_v8  ;;  %v9016_v37 = vand.u32 4294901760, %v7255_v36  ;;  %v7276_v7 = vsub.f32 %v7233_v25, %v877_v33  ;;  %v7279_v9 = vsub.f32 %v7235_v27, %v881_v46 }
  0xc7   :  { %v7269_v35 = vpack.c.bf16 %v9295_v43, %v9294_v15  ;;  %v1238_v10 = vand.u32 4294901760, %v1237_v1  ;;  %v879_v29 = vand.u32 4294901760, %v7257_v59  ;;  %5363 = vmatpush1.bf16.msra.mxu1 %v5362_v18  ;;  %v1231_v26 = vsub.f32 %v7250_v39, %v9011_v34  ;;  %v764_v15 = vld [vmem:[#allocation7 + $0x2f0] sm:$0xff] }
  0xc8   :  { %9297 = vst [vmem:[#allocation69_spill] sm:$0xff] %v7279_v9  ;;  %v1243_v8 = vsub.f32 %v7255_v36, %v9016_v37  ;;  %v883_v25 = vand.u32 4294901760, %v7271_v32  ;;  %v9298_v57 = vand.u32 4294901760, %v7133_v23  ;;  %v9299_v27 = vand.u32 4294901760, %v7147_v13 }
  0xc9   :  { %9296 = vst [vmem:[#allocation68_spill] sm:$0xff] %v7269_v35  ;;  %5297 = vmatprep.subr.bf16.mxu0 %v7269_v35  ;;  %v5364_v43 = vpack.c.bf16 %v1238_v10, %v1226_v47  ;;  %v9021_v18 = vand.u32 4294901760, %v7276_v7  ;;  %v9024_v35 = vand.u32 4294901760, %v7279_v9  ;;  %v7299_v34 = vsub.f32 %v7257_v59, %v879_v29 }
  0xca   :  { %v7294_v1 = vpack.c.bf16 %v9299_v27, %v9298_v57  ;;  %v1232_v6 = vand.u32 4294901760, %v1231_v26  ;;  %v1244_v5 = vand.u32 4294901760, %v1243_v8  ;;  %v7302_v37 = vsub.f32 %v7271_v32, %v883_v25  ;;  %v761_v26 = vld [vmem:[#allocation7 + $0x2d0] sm:$0xff]  ;;  %v763_v8 = vld [vmem:[#allocation7 + $0x2e8] sm:$0xff] }
  0xcb   :  { %v885_v23 = vand.u32 4294901760, %v762_v30  ;;  %5365 = vmatprep.subr.bf16.mxu1 %v5364_v43  ;;  %v1249_v10 = vsub.f32 %v7276_v7, %v9021_v18  ;;  %v1261_v13 = vsub.f32 %v7279_v9, %v9024_v35  ;;  %v9028_v59 = vand.u32 4294901760, %v7299_v34 }
  0xcc   :  { %9300 = vst [vmem:[#allocation70_spill] sm:$0xff] %v7294_v1  ;;  %9301 = vst [vmem:[#allocation71_spill] sm:$0xff] %v7302_v37  ;;  %5299 = vmatpush1.bf16.msra.mxu0 %v7294_v1  ;;  %v889_v47 = vand.u32 4294901760, %v764_v15  ;;  %v5366_v57 = vpack.c.bf16 %v1244_v5, %v1232_v6  ;;  %v9027_v32 = vand.u32 4294901760, %v7302_v37  ;;  %v9303_v43 = vand.u32 4294901760, %v7163_v61 }
  0xcd   :  { %v7313_v27 = vsub.f32 %v762_v30, %v885_v23  ;;  %v9304_v1 = vand.u32 4294901760, %v7178_v19  ;;  %v1250_v18 = vand.u32 4294901760, %v1249_v10  ;;  %v1262_v52 = vand.u32 4294901760, %v1261_v13 }
  0xce   :  { %v1255_v35 = vsub.f32 %v7299_v34, %v9028_v59  ;;  %v7324_v9 = vsub.f32 %v764_v15, %v889_v47  ;;  %5367 = vmatpush1.bf16.msra.mxu1 %v5366_v57  ;;  %v1267_v5 = vsub.f32 %v7302_v37, %v9027_v32  ;;  %v887_v19 = vand.u32 4294901760, %v761_v26 }
  0xcf   :  { %9302 = vst [vmem:[#allocation72_spill] sm:$0xff] %v7313_v27  ;;  %v7319_v53 = vpack.c.bf16 %v9304_v1, %v9303_v43  ;;  %v9034_v6 = vand.u32 4294901760, %v7313_v27  ;;  %v891_v61 = vand.u32 4294901760, %v763_v8  ;;  %v5368_v30 = vpack.c.bf16 %v1262_v52, %v1250_v18 }
  0xd0   :  { %9306 = vst [vmem:[#allocation74_spill] sm:$0xff] %v7324_v9  ;;  %v1256_v1 = vand.u32 4294901760, %v1255_v35  ;;  %v9033_v10 = vand.u32 4294901760, %v7324_v9  ;;  %v9307_v13 = vand.u32 4294901760, %v7202_v55  ;;  %v9308_v15 = vand.u32 4294901760, %v7204_v24 }
  0xd1   :  { %9305 = vst [vmem:[#allocation73_spill] sm:$0xff] %v7319_v53  ;;  %5301 = vmatprep.subr.bf16.mxu0 %v7319_v53  ;;  %v1268_v57 = vand.u32 4294901760, %v1267_v5  ;;  %v1273_v32 = vsub.f32 %v7313_v27, %v9034_v6  ;;  %v7341_v59 = vsub.f32 %v761_v26, %v887_v19  ;;  %v7343_v53 = vsub.f32 %v763_v8, %v891_v61 }
  0xd2   :  { %v7336_v43 = vpack.c.bf16 %v9308_v15, %v9307_v13  ;;  %5369 = vmatprep.subr.bf16.mxu1 %v5368_v30  ;;  %v1285_v52 = vsub.f32 %v7324_v9, %v9033_v10  ;;  %v7349_v55 = vpack.c.bf16 %v881_v46, %v877_v33  ;;  %v7354_v26 = vpack.c.bf16 %v883_v25, %v879_v29 }
  0xd3   :  { %9310 = vst [vmem:[#allocation76_spill] sm:$0xff] %v7341_v59  ;;  %9311 = vst [vmem:[#allocation77_spill] sm:$0xff] %v7343_v53  ;;  %v5370_v24 = vpack.c.bf16 %v1268_v57, %v1256_v1  ;;  %v1274_v35 = vand.u32 4294901760, %v1273_v32  ;;  %v9032_v18 = vand.u32 4294901760, %v7341_v59  ;;  %v9031_v5 = vand.u32 4294901760, %v7343_v53 }
  0xd4   :  { %9309 = vst [vmem:[#allocation75_spill] sm:$0xff] %v7336_v43  ;;  %5303 = vmatpush1.bf16.msra.mxu0 %v7336_v43  ;;  %9312 = vst [vmem:[#allocation78_spill] sm:$0xff] %v7349_v55  ;;  %v1286_v13 = vand.u32 4294901760, %v1285_v52  ;;  %v7362_v46 = vpack.c.bf16 %v889_v47, %v885_v23  ;;  %v7365_v30 = vpack.c.bf16 %v891_v61, %v887_v19 }
  0xd5   :  { %5305 = vmatprep.subr.bf16.mxu0 %v7349_v55  ;;  %9313 = vst [vmem:[#allocation79_spill] sm:$0xff] %v7354_v26  ;;  %5371 = vmatpush1.bf16.msra.mxu1 %v5370_v24  ;;  %v1279_v8 = vsub.f32 %v7341_v59, %v9032_v18  ;;  %v1291_v33 = vsub.f32 %v7343_v53, %v9031_v5 }
  0xd6   :  { %9314 = vst [vmem:[#allocation80_spill] sm:$0xff] %v7362_v46  ;;  %v5372_v32 = vpack.c.bf16 %v1286_v13, %v1274_v35  ;;  %9315 = vst [vmem:[#allocation81_spill] sm:$0xff] %v7365_v30  ;;  %v5376_v29 = vpack.c.bf16 %v6445_v51, %v6440_v50 }
  0xd7   :  { %v1280_v1 = vand.u32 4294901760, %v1279_v8  ;;  %v1292_v15 = vand.u32 4294901760, %v1291_v33 }
  0xd8   :  { %5307 = vmatpush1.bf16.msra.mxu0 %v7354_v26  ;;  %5373 = vmatprep.subr.bf16.mxu1 %v5372_v32 }
  0xd9   :  { %5309 = vmatprep.subr.bf16.mxu0 %v7362_v46  ;;  %v5374_v25 = vpack.c.bf16 %v1292_v15, %v1280_v1 }
  0xdb   :  { %5375 = vmatpush1.bf16.msra.mxu1 %v5374_v25  ;;  %v9316_v25 = vld [vmem:[#allocation69_spill] sm:$0xff] }
  0xdc   :  { %5311 = vmatpush1.bf16.msra.mxu0 %v7365_v30  ;;  %5377 = vmatprep.subr.bf16.mxu1 %v5376_v29 }
 0x148   :  { %v587_v32 = vpop.f32.mrb[0].mxu0 }
 0x149   :  { %v589_v1 = vpop.f32.mrb[1].mxu0 }
 0x14b   :  { %v349_v33 = vpop.f32.mrb[0].mxu1 }
 0x14c   :  { %v6112_v8 = vadd.f32 %v587_v32, %v349_v33  ;;  %v351_v15 = vpop.f32.mrb[1].mxu1 }
 0x14d   :  { %v6113_v13 = vadd.f32 %v589_v1, %v351_v15 }
 0x14e   :  { %v592_v35 = vrot.slane %v6112_v8, 4  ;;  %v604_v29 = vmul.f32 %v6112_v8, %v6112_v8 }
 0x14f   :  { %v598_v24 = vrot.slane %v6113_v13, 4  ;;  %v605_v52 = vmul.f32 %v6113_v13, %v6113_v13 }
 0x150   :  { %v593_v5 = vadd.f32 %v6112_v8, %v592_v35  ;;  %v606_v61 = vrot.slane %v604_v29, 4 }
 0x151   :  { %v599_v19 = vadd.f32 %v6113_v13, %v598_v24  ;;  %v612_v18 = vrot.slane %v605_v52, 4 }
 0x152   :  { %v594_v47 = vrot.slane %v593_v5, 2  ;;  %v607_v23 = vadd.f32 %v606_v61, %v604_v29 }
 0x153   :  { %v600_v10 = vrot.slane %v599_v19, 2  ;;  %v613_v57 = vadd.f32 %v612_v18, %v605_v52  ;;  %v626_v52 = vld [vmem:[#allocation10] ss:$8 sm:$0x3] }
 0x154   :  { %v595_v30 = vadd.f32 %v594_v47, %v593_v5  ;;  %v608_v6 = vrot.slane %v607_v23, 2 }
 0x155   :  { %v601_v51 = vadd.f32 %v600_v10, %v599_v19  ;;  %v614_v50 = vrot.slane %v613_v57, 2 }
 0x156   :  { %v596_v46 = vrot.slane %v595_v30, 1  ;;  %v609_v33 = vadd.f32 %v608_v6, %v607_v23  ;;  %v6325_v6 = vmov 1966171168  }
 0x157   :  { %v602_v32 = vrot.slane %v601_v51, 1  ;;  %v615_v1 = vadd.f32 %v614_v50, %v613_v57  ;;  %v637_v50 = vunpack.c.l.s4 %v6325_v6 }
 0x158   :  { %v597_v15 = vadd.f32 %v596_v46, %v595_v30  ;;  %v610_v26 = vrot.slane %v609_v33, 1  ;;  %v639_v46 = vlaneseq }
 0x159   :  { %v603_v55 = vadd.f32 %v602_v32, %v601_v51  ;;  %v616_v43 = vrot.slane %v615_v1, 1  ;;  %v638_v30 = vunpack.c.0.s8 %v637_v50 }
 0x15a   :  { %v611_v35 = vadd.f32 %v610_v26, %v609_v33  ;;  %v618_v59 = vmul.f32 0.125, %v597_v15  ;;  %v640_v51 = vshrl.u32 %v639_v46, 7 }
 0x15b   :  { %v617_v24 = vadd.f32 %v616_v43, %v615_v1  ;;  %v619_v53 = vmul.f32 0.125, %v603_v55 }
 0x15c   :  { %v620_v27 = vmul.f32 0.125, %v611_v35  ;;  %v622_v61 = vmul.f32 %v618_v59, %v618_v59  ;;  %v7409_v26 = vsub.s32 %v638_v30, %v640_v51  ;;  %v7413_v33 = vsub.s32 0, %v640_v51 }
 0x15d   :  { %v621_v29 = vmul.f32 0.125, %v617_v24  ;;  %v623_v18 = vmul.f32 %v619_v53, %v619_v53  ;;  %v7415_v32 = vsub.s32 1, %v640_v51 }
 0x15e   :  { %v624_v5 = vsub.f32 %v620_v27, %v622_v61  ;;  %9317 = vst [vmem:[#allocation82_spill] sm:$0xff] %v7409_v26  ;;  %9318 = vst [vmem:[#allocation83_spill] sm:$0xff] %v7413_v33 }
 0x15f   :  { %v625_v47 = vsub.f32 %v621_v29, %v623_v18  ;;  %9319 = vst [vmem:[#allocation84_spill] sm:$0xff] %v7415_v32 }
 0x160   :  { %v629_v10 = vadd.f32 1e-05, %v624_v5 }
 0x161   :  { %v630_v19 = vadd.f32 1e-05, %v625_v47 }
 0x162   :  { %6167 = vrsqrt.f32 %v629_v10  ;;  %v628_v10 = vld [vmem:[#allocation10 + $0x1] ss:$8 sm:$0x3] }
 0x163   :  { %6169 = vrsqrt.f32 %v630_v19 }
 0x16c   :  { %v6168_v57 = vpop.eup %6167 }
 0x16d   :  { %v6170_v43 = vpop.eup %6169 }
 0x16e   :  { %v635_v55 = vcombine.low %v6168_v57, %v6170_v43 }
 0x170   :  { %v642_v23 = vrot.slane %v635_v55, %v7409_v26 }
 0x172   :  { %v649_v27 = vrot.slane %v642_v23, %v7409_v26  ;;  %v9323_v23 = vld [vmem:[#allocation20_spill] sm:$0xff] }
 0x174   :  { %v651_v1 = vmul.f32 %v649_v27, %v626_v52  ;;  %v9324_v52 = vld [vmem:[#allocation21_spill] sm:$0xff] }
 0x175   :  { %v5380_v27 = vpack.c.bf16 %v9324_v52, %v9323_v23 }
 0x176   :  { %v656_v15 = vrot.slane %v651_v1, %v7413_v33  ;;  %v660_v35 = vrot.slane %v651_v1, %v7415_v32 }
 0x178   :  { %v664_v24 = vmul.f32 %v6113_v13, %v660_v35  ;;  %v665_v61 = vmul.f32 %v656_v15, %v618_v59  ;;  %v666_v29 = vmul.f32 %v660_v35, %v619_v53  ;;  %v663_v18 = vmul.f32 %v6112_v8, %v656_v15  ;;  %v9321_v53 = vld [vmem:[#allocation18_spill] sm:$0xff]  ;;  %v9322_v13 = vld [vmem:[#allocation19_spill] sm:$0xff] }
 0x179   :  { %v5378_v8 = vpack.c.bf16 %v9322_v13, %v9321_v53  ;;  %v9325_v35 = vld [vmem:[#allocation22_spill] sm:$0xff] }
 0x17a   :  { %v669_v5 = vcombine.low %v665_v61, %v666_v29 }
 0x17c   :  { %v676_v47 = vrot.slane %v669_v5, %v7409_v26  ;;  %v9327_v5 = vld [vmem:[#allocation24_spill] sm:$0xff] }
 0x17e   :  { %v683_v19 = vrot.slane %v676_v47, %v7409_v26  ;;  %v9328_v47 = vld [vmem:[#allocation25_spill] sm:$0xff]  ;;  %v9335_v26 = vld [vmem:[#allocation36_spill] sm:$0xff] }
 0x180   :  { %v685_v6 = vsub.f32 %v628_v10, %v683_v19  ;;  %v5384_v10 = vpack.c.bf16 %v9328_v47, %v9327_v5 }
 0x182   :  { %v694_v50 = vrot.slane %v685_v6, %v7415_v32  ;;  %v690_v46 = vrot.slane %v685_v6, %v7413_v33  ;;  %v9334_v33 = vld [vmem:[#allocation33_spill] sm:$0xff] }
 0x184   :  { %v698_v30 = vadd.f32 %v694_v50, %v664_v24  ;;  %v697_v51 = vadd.f32 %v690_v46, %v663_v18  ;;  %v9326_v24 = vld [vmem:[#allocation23_spill] sm:$0xff] }
 0x185   :  { %v5382_v61 = vpack.c.bf16 %v9326_v24, %v9325_v35 }
 0x186   :  { %v700_v57 = vmax.f32 %v698_v30, 0.0  ;;  %v699_v43 = vmax.f32 %v697_v51, 0.0  ;;  %v9329_v30 = vld [vmem:[#allocation26_spill] sm:$0xff]  ;;  %v9330_v51 = vld [vmem:[#allocation27_spill] sm:$0xff] }
 0x188   :  { %v7423_v55 = vand.u32 4294901760, %v700_v57  ;;  %v7425_v59 = vand.u32 4294901760, %v699_v43 }
 0x18a   :  { %9320 = vst [vmem:[#allocation85_spill] sm:$0xff] %v7425_v59  ;;  %1295 = vmatprep.mubr.f32.mxu1 %v7423_v55  ;;  %v7433_v1 = vsub.f32 %v699_v43, %v7425_v59  ;;  %v894_v15 = vsub.f32 %v700_v57, %v7423_v55  ;;  %v5386_v57 = vpack.c.bf16 %v9330_v51, %v9329_v30  ;;  %v9331_v43 = vld [vmem:[#allocation28_spill] sm:$0xff]  ;;  %v9339_v51 = vld [vmem:[#allocation42_spill] sm:$0xff] }
 0x18b   :  { %1297 = vmatmul.mubr.f32.vlgmr.msra.gmra.mrb[2].mxu1 %v7425_v59  ;;  %v9336_v59 = vld [vmem:[#allocation37_spill] sm:$0xff] }
 0x18c   :  { %5379 = vmatpush1.bf16.msra.mxu1 %v5378_v8  ;;  %1497 = vmatprep.mubr.f32.mxu1 %v894_v15  ;;  %v895_v29 = vand.u32 4294901760, %v894_v15  ;;  %v9061_v18 = vand.u32 4294901760, %v7433_v1  ;;  %v9332_v8 = vld [vmem:[#allocation29_spill] sm:$0xff] }
 0x18d   :  { %5381 = vmatprep.subr.bf16.mxu1 %v5380_v27  ;;  %v5388_v32 = vpack.c.bf16 %v9332_v8, %v9331_v43  ;;  %v9333_v27 = vld [vmem:[#allocation30_spill] sm:$0xff]  ;;  %v9341_v8 = vld [vmem:[#allocation45_spill] sm:$0xff] }
 0x18e   :  { %v896_v19 = vsub.f32 %v894_v15, %v895_v29  ;;  %v902_v6 = vsub.f32 %v7433_v1, %v9061_v18  ;;  %v5390_v15 = vpack.c.bf16 %v9334_v33, %v9333_v27  ;;  %v5392_v18 = vpack.c.bf16 %v9336_v59, %v9335_v26  ;;  %v9344_v43 = vld [vmem:[#allocation50_spill] sm:$0xff] }
 0x190   :  { %5383 = vmatpush1.bf16.msra.mxu1 %v5382_v61  ;;  %v897_v50 = vand.u32 4294901760, %v896_v19  ;;  %v903_v46 = vand.u32 4294901760, %v902_v6  ;;  %v9337_v61 = vld [vmem:[#allocation39_spill] sm:$0xff]  ;;  %v9338_v19 = vld [vmem:[#allocation40_spill] sm:$0xff] }
 0x191   :  { %5385 = vmatprep.subr.bf16.mxu1 %v5384_v10  ;;  %v5394_v6 = vpack.c.bf16 %v9338_v19, %v9337_v61  ;;  %v9340_v10 = vld [vmem:[#allocation43_spill] sm:$0xff] }
 0x192   :  { %898 = vmatprep.mubr.f32.mxu0 %v897_v50  ;;  %v5396_v30 = vpack.c.bf16 %v9340_v10, %v9339_v51  ;;  %v9342_v50 = vld [vmem:[#allocation47_spill] sm:$0xff] }
 0x193   :  { %904 = vmatmul.mubr.f32.vlgmr.msra.gmra.mrb[2].mxu0 %v903_v46  ;;  %v5398_v46 = vpack.c.bf16 %v9342_v50, %v9341_v8 }
 0x194   :  { %5387 = vmatpush1.bf16.msra.mxu1 %v5386_v57  ;;  %v9343_v57 = vld [vmem:[#allocation49_spill] sm:$0xff] }
 0x195   :  { %5389 = vmatprep.subr.bf16.mxu1 %v5388_v32  ;;  %v5400_v33 = vpack.c.bf16 %v9344_v43, %v9343_v57  ;;  %v9345_v32 = vpack.c.bf16 %v6818_v38, %v6812_v41 }
 0x198   :  { %5391 = vmatpush1.bf16.msra.mxu1 %v5390_v15  ;;  %v9347_v15 = vpack.c.bf16 %v6882_v60, %v6873_v44 }
 0x199   :  { %5393 = vmatprep.subr.bf16.mxu1 %v5392_v18  ;;  %v9346_v18 = vpack.c.bf16 %v6847_v40, %v6842_v63 }
 0x19c   :  { %5395 = vmatpush1.bf16.msra.mxu1 %v5394_v6  ;;  %v9349_v6 = vpack.c.bf16 %v6941_v22, %v6929_v14 }
 0x19d   :  { %5397 = vmatprep.subr.bf16.mxu1 %v5396_v30  ;;  %v9348_v30 = vpack.c.bf16 %v6923_v11, %v6912_v17 }
 0x1a0   :  { %5399 = vmatpush1.bf16.msra.mxu1 %v5398_v46  ;;  %v9351_v46 = vpack.c.bf16 %v7013_v16, %v7002_v48 }
 0x1a1   :  { %5401 = vmatprep.subr.bf16.mxu1 %v5400_v33  ;;  %v9350_v33 = vpack.c.bf16 %v6973_v2, %v6963_v62 }
 0x1a4   :  { %5403 = vmatpush1.bf16.msra.mxu1 %v9345_v32  ;;  %v9352_v32 = vpack.c.bf16 %v7035_v56, %v7023_v58 }
 0x1a5   :  { %5405 = vmatprep.subr.bf16.mxu1 %v9346_v18  ;;  %v9353_v18 = vpack.c.bf16 %v7069_v4, %v7061_v42 }
 0x1a8   :  { %5407 = vmatpush1.bf16.msra.mxu1 %v9347_v15  ;;  %v9354_v15 = vpack.c.bf16 %v7100_v21, %v7086_v31 }
 0x1a9   :  { %5409 = vmatprep.subr.bf16.mxu1 %v9348_v30  ;;  %v9355_v30 = vpack.c.bf16 %v7131_v45, %v7126_v54 }
 0x1ac   :  { %5411 = vmatpush1.bf16.msra.mxu1 %v9349_v6  ;;  %v9356_v6 = vpack.c.bf16 %v7159_v49, %v7154_v28 }
 0x1ad   :  { %5413 = vmatprep.subr.bf16.mxu1 %v9350_v33  ;;  %v9357_v33 = vpack.c.bf16 %v7190_v20, %v7185_v0  ;;  %v9365_v20 = vld [vmem:[#allocation76_spill] sm:$0xff] }
 0x1b0   :  { %5415 = vmatpush1.bf16.msra.mxu1 %v9351_v46  ;;  %v9358_v46 = vpack.c.bf16 %v7224_v3, %v7210_v12 }
 0x1b1   :  { %5417 = vmatprep.subr.bf16.mxu1 %v9352_v32  ;;  %v9359_v32 = vpack.c.bf16 %v7255_v36, %v7250_v39 }
 0x1b4   :  { %5419 = vmatpush1.bf16.msra.mxu1 %v9353_v18  ;;  %v9360_v18 = vpack.c.bf16 %v9316_v25, %v7276_v7  ;;  %v9370_v25 = vld [vmem:[#allocation35_spill] sm:$0xff] }
 0x1b5   :  { %5421 = vmatprep.subr.bf16.mxu1 %v9354_v15  ;;  %v9361_v15 = vpack.c.bf16 %v7302_v37, %v7299_v34  ;;  %v9372_v37 = vld [vmem:[#allocation41_spill] sm:$0xff] }
 0x1b8   :  { %5423 = vmatpush1.bf16.msra.mxu1 %v9355_v30  ;;  %v9362_v30 = vld [vmem:[#allocation72_spill] sm:$0xff] }
 0x1b9   :  { %5425 = vmatprep.subr.bf16.mxu1 %v9356_v6  ;;  %v9363_v6 = vpack.c.bf16 %v7324_v9, %v9362_v30  ;;  %v9374_v9 = vld [vmem:[#allocation46_spill] sm:$0xff] }
 0x1bc   :  { %5427 = vmatpush1.bf16.msra.mxu1 %v9357_v33  ;;  %v9364_v33 = vld [vmem:[#allocation77_spill] sm:$0xff] }
 0x1bd   :  { %5429 = vmatprep.subr.bf16.mxu1 %v9358_v46  ;;  %v9366_v3 = vpack.c.bf16 %v9364_v33, %v9365_v20  ;;  %v9367_v46 = vld [vmem:[#allocation31_spill] sm:$0xff]  ;;  %v9377_v33 = vld [vmem:[#allocation52_spill] sm:$0xff]  ;;  %v9400_v20 = vld [vmem:[#allocation17_spill] sm:$0xff] }
 0x1c0   :  { %5431 = vmatpush1.bf16.msra.mxu1 %v9359_v32  ;;  %v9368_v32 = vld [vmem:[#allocation32_spill] sm:$0xff] }
 0x1c1   :  { %5433 = vmatprep.subr.bf16.mxu1 %v9360_v18  ;;  %v9369_v18 = vld [vmem:[#allocation34_spill] sm:$0xff] }
 0x1c4   :  { %5435 = vmatpush1.bf16.msra.mxu1 %v9361_v15  ;;  %v9371_v15 = vld [vmem:[#allocation38_spill] sm:$0xff] }
 0x1c5   :  { %5437 = vmatprep.subr.bf16.mxu1 %v9363_v6  ;;  %v9373_v6 = vld [vmem:[#allocation44_spill] sm:$0xff] }
 0x1c8   :  { %5439 = vmatpush1.bf16.msra.mxu1 %v9366_v3  ;;  %v9375_v3 = vld [vmem:[#allocation48_spill] sm:$0xff] }
 0x1c9   :  { %5441 = vmatprep.subr.bf16.mxu1 %v9367_v46  ;;  %v9376_v46 = vld [vmem:[#allocation51_spill] sm:$0xff] }
 0x1cb   :  { %1500 = vmatmul.mubr.f32.vlgmr.msra.gmra.mrb[2].mxu1 %v7433_v1 }
 0x1cc   :  { %5443 = vmatpush1.bf16.msra.mxu1 %v9368_v32  ;;  %1637 = vmatprep.mubr.f32.mxu1 %v895_v29  ;;  %v9378_v32 = vld [vmem:[#allocation53_spill] sm:$0xff]  ;;  %v9379_v29 = vld [vmem:[#allocation54_spill] sm:$0xff] }
 0x1cd   :  { %5445 = vmatprep.subr.bf16.mxu1 %v9369_v18  ;;  %v9380_v18 = vld [vmem:[#allocation55_spill] sm:$0xff] }
 0x1d0   :  { %5447 = vmatpush1.bf16.msra.mxu1 %v9370_v25  ;;  %v9381_v25 = vld [vmem:[#allocation56_spill] sm:$0xff] }
 0x1d1   :  { %5449 = vmatprep.subr.bf16.mxu1 %v9371_v15  ;;  %v9382_v15 = vld [vmem:[#allocation57_spill] sm:$0xff] }
 0x1d4   :  { %5451 = vmatpush1.bf16.msra.mxu1 %v9372_v37  ;;  %v9383_v37 = vld [vmem:[#allocation58_spill] sm:$0xff] }
 0x1d5   :  { %5453 = vmatprep.subr.bf16.mxu1 %v9373_v6  ;;  %v9384_v6 = vld [vmem:[#allocation59_spill] sm:$0xff] }
 0x1d8   :  { %5455 = vmatpush1.bf16.msra.mxu1 %v9374_v9  ;;  %v9385_v9 = vld [vmem:[#allocation60_spill] sm:$0xff] }
 0x1d9   :  { %5457 = vmatprep.subr.bf16.mxu1 %v9375_v3  ;;  %v9386_v3 = vld [vmem:[#allocation61_spill] sm:$0xff] }
 0x1dc   :  { %5459 = vmatpush1.bf16.msra.mxu1 %v9376_v46  ;;  %v9387_v46 = vld [vmem:[#allocation62_spill] sm:$0xff] }
 0x1dd   :  { %5461 = vmatprep.subr.bf16.mxu1 %v9377_v33  ;;  %v9388_v33 = vld [vmem:[#allocation63_spill] sm:$0xff] }
 0x1e0   :  { %5463 = vmatpush1.bf16.msra.mxu1 %v9378_v32  ;;  %v9389_v32 = vld [vmem:[#allocation65_spill] sm:$0xff] }
 0x1e1   :  { %5465 = vmatprep.subr.bf16.mxu1 %v9379_v29  ;;  %v9390_v29 = vld [vmem:[#allocation67_spill] sm:$0xff] }
 0x1e4   :  { %5467 = vmatpush1.bf16.msra.mxu1 %v9380_v18  ;;  %v9391_v18 = vld [vmem:[#allocation68_spill] sm:$0xff] }
 0x1e5   :  { %5469 = vmatprep.subr.bf16.mxu1 %v9381_v25  ;;  %v9392_v25 = vld [vmem:[#allocation70_spill] sm:$0xff] }
 0x1e8   :  { %5471 = vmatpush1.bf16.msra.mxu1 %v9382_v15  ;;  %v9393_v15 = vld [vmem:[#allocation73_spill] sm:$0xff] }
 0x1e9   :  { %5473 = vmatprep.subr.bf16.mxu1 %v9383_v37  ;;  %v9394_v37 = vld [vmem:[#allocation75_spill] sm:$0xff] }
 0x1ec   :  { %5475 = vmatpush1.bf16.msra.mxu1 %v9384_v6  ;;  %v9395_v6 = vld [vmem:[#allocation78_spill] sm:$0xff] }
 0x1ed   :  { %5477 = vmatprep.subr.bf16.mxu1 %v9385_v9  ;;  %v9396_v9 = vld [vmem:[#allocation79_spill] sm:$0xff] }
 0x1f0   :  { %5479 = vmatpush1.bf16.msra.mxu1 %v9386_v3  ;;  %v9397_v3 = vld [vmem:[#allocation80_spill] sm:$0xff] }
 0x1f1   :  { %5481 = vmatprep.subr.bf16.mxu1 %v9387_v46  ;;  %v9398_v46 = vld [vmem:[#allocation16_spill] sm:$0xff] }
 0x1f4   :  { %5483 = vmatpush1.bf16.msra.mxu1 %v9388_v33  ;;  %v9399_v33 = vand.u32 4294901760, %v9398_v46 }
 0x1f5   :  { %5485 = vmatprep.subr.bf16.mxu1 %v9389_v32  ;;  %v9401_v32 = vand.u32 4294901760, %v9400_v20  ;;  %v9408_v20 = vand.u32 4294901760, %v9325_v35 }
 0x1f7   :  { %v5504_v30 = vpack.c.bf16 %v9401_v32, %v9399_v33  ;;  %v9409_v33 = vand.u32 4294901760, %v9326_v24  ;;  %v9416_v32 = vld [vmem:[#allocation28_spill] sm:$0xff]  ;;  %v9421_v24 = vld [vmem:[#allocation33_spill] sm:$0xff] }
 0x1f8   :  { %5487 = vmatpush1.bf16.msra.mxu1 %v9390_v29  ;;  %v9402_v29 = vld [vmem:[#allocation81_spill] sm:$0xff] }
 0x1f9   :  { %5489 = vmatprep.subr.bf16.mxu1 %v9391_v18  ;;  %v9403_v18 = vand.u32 4294901760, %v9321_v53  ;;  %v5510_v53 = vpack.c.bf16 %v9409_v33, %v9408_v20  ;;  %v9424_v20 = vand.u32 4294901760, %v9336_v59  ;;  %v9431_v59 = vand.u32 4294901760, %v9343_v57 }
 0x1fa   :  { %v9438_v57 = vand.u32 4294901760, %v6882_v60  ;;  %v9445_v60 = vand.u32 4294901760, %v7002_v48  ;;  %v9452_v48 = vand.u32 4294901760, %v7100_v21  ;;  %v9460_v21 = vand.u32 4294901760, %v7210_v12 }
 0x1fc   :  { %5491 = vmatpush1.bf16.msra.mxu1 %v9392_v25  ;;  %v9404_v25 = vand.u32 4294901760, %v9322_v13  ;;  %v9411_v13 = vand.u32 4294901760, %v9328_v47  ;;  %v9423_v47 = vand.u32 4294901760, %v9335_v26  ;;  %v9430_v26 = vand.u32 4294901760, %v9342_v50 }
 0x1fd   :  { %5493 = vmatprep.subr.bf16.mxu1 %v9393_v15  ;;  %v9437_v50 = vand.u32 4294901760, %v6873_v44  ;;  %v9444_v44 = vand.u32 4294901760, %v6973_v2  ;;  %v9451_v2 = vand.u32 4294901760, %v7086_v31 }
 0x1fe   :  { %v5506_v15 = vpack.c.bf16 %v9404_v25, %v9403_v18  ;;  %v9410_v25 = vand.u32 4294901760, %v9327_v5  ;;  %v9417_v18 = vand.u32 4294901760, %v9416_v32  ;;  %v9422_v5 = vand.u32 4294901760, %v9421_v24 }
 0x1ff   :  { %v5520_v33 = vpack.c.bf16 %v9424_v20, %v9423_v47 }
 0x200   :  { %5495 = vmatpush1.bf16.msra.mxu1 %v9394_v37  ;;  %v9405_v37 = vand.u32 4294901760, %v9323_v23  ;;  %v5512_v23 = vpack.c.bf16 %v9411_v13, %v9410_v25  ;;  %v9426_v25 = vand.u32 4294901760, %v9338_v19  ;;  %v9433_v19 = vand.u32 4294901760, %v6812_v41 }
 0x201   :  { %5497 = vmatprep.subr.bf16.mxu1 %v9395_v6  ;;  %v9406_v6 = vand.u32 4294901760, %v9324_v52  ;;  %v9412_v52 = vld [vmem:[#allocation26_spill] sm:$0xff]  ;;  %v9440_v41 = vand.u32 4294901760, %v6923_v11  ;;  %v9447_v11 = vand.u32 4294901760, %v7023_v58  ;;  %v9454_v58 = vand.u32 4294901760, %v7131_v45 }
 0x202   :  { %v9463_v45 = vand.u32 4294901760, %v7250_v39 }
 0x204   :  { %5499 = vmatpush1.bf16.msra.mxu1 %v9396_v9  ;;  %v5508_v9 = vpack.c.bf16 %v9406_v6, %v9405_v37  ;;  %v9413_v37 = vand.u32 4294901760, %v9412_v52 }
 0x205   :  { %5501 = vmatprep.subr.bf16.mxu1 %v9397_v3  ;;  %v9407_v3 = vand.u32 4294901760, %v7433_v1 }
 0x208   :  { %5503 = vmatpush1.bf16.msra.mxu1 %v9402_v29 }
 0x209   :  { %5505 = vmatprep.subr.bf16.mxu1 %v5504_v30  ;;  %v9414_v30 = vld [vmem:[#allocation27_spill] sm:$0xff] }
 0x20a   :  { %v9415_v1 = vand.u32 4294901760, %v9414_v30 }
 0x20b   :  { %1641 = vmatmul.mubr.f32.vlgmr.msra.gmra.mrb[2].mxu1 %v9407_v3 }
 0x20c   :  { %5507 = vmatpush1.bf16.msra.mxu1 %v5506_v15  ;;  %1904 = vmatprep.mubr.f32.mxu1 %v7423_v55  ;;  %v5514_v46 = vpack.c.bf16 %v9415_v1, %v9413_v37  ;;  %v9418_v15 = vld [vmem:[#allocation29_spill] sm:$0xff]  ;;  %v9429_v37 = vand.u32 4294901760, %v9341_v8  ;;  %v9436_v8 = vand.u32 4294901760, %v6847_v40  ;;  %v9443_v40 = vand.u32 4294901760, %v6963_v62 }
 0x20d   :  { %5509 = vmatprep.subr.bf16.mxu1 %v5508_v9  ;;  %v9419_v35 = vand.u32 4294901760, %v9418_v15  ;;  %v9420_v9 = vand.u32 4294901760, %v9333_v27  ;;  %v9428_v27 = vand.u32 4294901760, %v9340_v10  ;;  %v9435_v10 = vand.u32 4294901760, %v6842_v63 }
 0x20e   :  { %v5526_v30 = vpack.c.bf16 %v9430_v26, %v9429_v37  ;;  %v9442_v63 = vand.u32 4294901760, %v6941_v22  ;;  %v9449_v22 = vand.u32 4294901760, %v7061_v42  ;;  %v9450_v62 = vand.u32 4294901760, %v7069_v4  ;;  %v9469_v26 = vld [vmem:[#allocation71_spill] sm:$0xff] }
 0x20f   :  { %v5516_v6 = vpack.c.bf16 %v9419_v35, %v9417_v18  ;;  %v5518_v3 = vpack.c.bf16 %v9422_v5, %v9420_v9  ;;  %v5532_v32 = vpack.c.bf16 %v9436_v8, %v9435_v10  ;;  %v5534_v18 = vpack.c.bf16 %v9438_v57, %v9437_v50  ;;  %v9479_v8 = vld [vmem:[#allocation31_spill] sm:$0xff]  ;;  %v9482_v50 = vld [vmem:[#allocation34_spill] sm:$0xff] }
 0x210   :  { %5511 = vmatpush1.bf16.msra.mxu1 %v5510_v53  ;;  %v9425_v53 = vand.u32 4294901760, %v9337_v61  ;;  %v9432_v61 = vand.u32 4294901760, %v9344_v43  ;;  %v9439_v43 = vand.u32 4294901760, %v6912_v17  ;;  %v9446_v17 = vand.u32 4294901760, %v7013_v16  ;;  %v9483_v57 = vld [vmem:[#allocation35_spill] sm:$0xff] }
 0x211   :  { %5513 = vmatprep.subr.bf16.mxu1 %v5512_v23  ;;  %v9427_v23 = vand.u32 4294901760, %v9339_v51  ;;  %v9434_v51 = vand.u32 4294901760, %v6818_v38  ;;  %v9441_v38 = vand.u32 4294901760, %v6929_v14  ;;  %v9448_v14 = vand.u32 4294901760, %v7035_v56 }
 0x212   :  { %v5522_v13 = vpack.c.bf16 %v9426_v25, %v9425_v53  ;;  %v5528_v1 = vpack.c.bf16 %v9432_v61, %v9431_v59  ;;  %v5536_v15 = vpack.c.bf16 %v9440_v41, %v9439_v43  ;;  %v5542_v9 = vpack.c.bf16 %v9446_v17, %v9445_v60  ;;  %v9461_v25 = vld [vmem:[#allocation66_spill] sm:$0xff]  ;;  %v9471_v59 = vld [vmem:[#allocation72_spill] sm:$0xff]  ;;  %v9485_v43 = vld [vmem:[#allocation41_spill] sm:$0xff] }
 0x213   :  { %v5524_v52 = vpack.c.bf16 %v9428_v27, %v9427_v23  ;;  %v5538_v35 = vpack.c.bf16 %v9442_v63, %v9441_v38  ;;  %v5544_v24 = vpack.c.bf16 %v9448_v14, %v9447_v11  ;;  %v5546_v5 = vpack.c.bf16 %v9450_v62, %v9449_v22  ;;  %v9466_v27 = vld [vmem:[#allocation69_spill] sm:$0xff]  ;;  %v9486_v41 = vld [vmem:[#allocation44_spill] sm:$0xff]  ;;  %v9489_v63 = vld [vmem:[#allocation51_spill] sm:$0xff] }
 0x214   :  { %5515 = vmatpush1.bf16.msra.mxu1 %v5514_v46  ;;  %v5530_v46 = vpack.c.bf16 %v9434_v51, %v9433_v19  ;;  %v9453_v16 = vand.u32 4294901760, %v7126_v54  ;;  %v9455_v56 = vand.u32 4294901760, %v7154_v28  ;;  %v9456_v42 = vand.u32 4294901760, %v7159_v49  ;;  %v9488_v38 = vld [vmem:[#allocation48_spill] sm:$0xff]  ;;  %v9496_v11 = vld [vmem:[#allocation58_spill] sm:$0xff]  ;;  %v9497_v14 = vld [vmem:[#allocation59_spill] sm:$0xff] }
 0x215   :  { %5517 = vmatprep.subr.bf16.mxu1 %v5516_v6  ;;  %v5540_v6 = vpack.c.bf16 %v9444_v44, %v9443_v40  ;;  %v9457_v4 = vand.u32 4294901760, %v7185_v0  ;;  %v9462_v54 = vand.u32 4294901760, %v9461_v25  ;;  %v9464_v28 = vand.u32 4294901760, %v7255_v36  ;;  %v9475_v36 = vld [vmem:[#allocation76_spill] sm:$0xff]  ;;  %v9491_v40 = vld [vmem:[#allocation53_spill] sm:$0xff]  ;;  %v9493_v44 = vld [vmem:[#allocation55_spill] sm:$0xff] }
 0x216   :  { %v5550_v47 = vpack.c.bf16 %v9454_v58, %v9453_v16  ;;  %v5552_v20 = vpack.c.bf16 %v9456_v42, %v9455_v56  ;;  %v9465_v49 = vand.u32 4294901760, %v7276_v7  ;;  %v9467_v0 = vand.u32 4294901760, %v9466_v27  ;;  %v9499_v22 = vld [vmem:[#allocation61_spill] sm:$0xff]  ;;  %v9500_v62 = vld [vmem:[#allocation62_spill] sm:$0xff]  ;;  %v9509_v42 = vld [vmem:[#allocation79_spill] sm:$0xff] }
 0x217   :  { %v5558_v23 = vpack.c.bf16 %v9464_v28, %v9463_v45  ;;  %v9468_v37 = vand.u32 4294901760, %v7299_v34  ;;  %v9470_v12 = vand.u32 4294901760, %v9469_v26  ;;  %v9472_v61 = vand.u32 4294901760, %v9471_v59  ;;  %v9480_v34 = vld [vmem:[#allocation85_spill] sm:$0xff]  ;;  %v9505_v16 = vld [vmem:[#allocation70_spill] sm:$0xff]  ;;  %v2179_v59 = vld [vmem:[#allocation7 + $0x1f0] sm:$0xff] }
 0x218   :  { %5519 = vmatpush1.bf16.msra.mxu1 %v5518_v3  ;;  %v5548_v3 = vpack.c.bf16 %v9452_v48, %v9451_v2  ;;  %v9476_v51 = vand.u32 4294901760, %v9475_v36  ;;  %v9502_v2 = vld [vmem:[#allocation65_spill] sm:$0xff]  ;;  %v9503_v48 = vld [vmem:[#allocation67_spill] sm:$0xff]  ;;  %v9508_v56 = vld [vmem:[#allocation78_spill] sm:$0xff] }
 0x219   :  { %5521 = vmatprep.subr.bf16.mxu1 %v5520_v33  ;;  %v9458_v33 = vld [vmem:[#allocation64_spill] sm:$0xff]  ;;  %v9506_v58 = vld [vmem:[#allocation73_spill] sm:$0xff]  ;;  %v7729_v25 = vld [vmem:[#allocation7 + $0x28] sm:$0xff] }
 0x21a   :  { %v9459_v31 = vand.u32 4294901760, %v9458_v33  ;;  %v7723_v33 = vld [vmem:[#allocation7 + $0x1a8] sm:$0xff]  ;;  %v2177_v28 = vld [vmem:[#allocation7 + $0x1c0] sm:$0xff] }
 0x21b   :  { %v2164_v36 = vld [vmem:[#allocation7 + $0x88] sm:$0xff] }
 0x21c   :  { %5523 = vmatpush1.bf16.msra.mxu1 %v5522_v13  ;;  %v5554_v53 = vpack.c.bf16 %v9459_v31, %v9457_v4  ;;  %v5556_v13 = vpack.c.bf16 %v9462_v54, %v9460_v21  ;;  %v7721_v4 = vld [vmem:[#allocation7 + $0x190] sm:$0xff] }
 0x21d   :  { %5525 = vmatprep.subr.bf16.mxu1 %v5524_v52  ;;  %v5560_v52 = vpack.c.bf16 %v9467_v0, %v9465_v49  ;;  %v2241_v31 = vand.u32 4294901760, %v7721_v4  ;;  %v7727_v21 = vld [vmem:[#allocation7 + $0x10] sm:$0xff]  ;;  %v2247_v49 = vand.u32 4294901760, %v2177_v28  ;;  %v2161_v0 = vld [vmem:[#allocation7 + $0x40] sm:$0xff] }
 0x21e   :  { %v2193_v54 = vand.u32 4294901760, %v7727_v21 }
 0x220   :  { %5527 = vmatpush1.bf16.msra.mxu1 %v5526_v30  ;;  %v5562_v30 = vpack.c.bf16 %v9470_v12, %v9468_v37  ;;  %v2199_v37 = vand.u32 4294901760, %v2161_v0 }
 0x221   :  { %5529 = vmatprep.subr.bf16.mxu1 %v5528_v1  ;;  %v9473_v1 = vld [vmem:[#allocation74_spill] sm:$0xff] }
 0x222   :  { %v9474_v39 = vand.u32 4294901760, %v9473_v1  ;;  %v2253_v1 = vand.u32 4294901760, %v2179_v59 }
 0x224   :  { %5531 = vmatpush1.bf16.msra.mxu1 %v5530_v46  ;;  %v5564_v19 = vpack.c.bf16 %v9474_v39, %v9472_v61  ;;  %v9477_v46 = vld [vmem:[#allocation77_spill] sm:$0xff]  ;;  %v2180_v61 = vld [vmem:[#allocation7 + $0x208] sm:$0xff] }
 0x225   :  { %5533 = vmatprep.subr.bf16.mxu1 %v5532_v32  ;;  %v9478_v7 = vand.u32 4294901760, %v9477_v46  ;;  %v9481_v32 = vld [vmem:[#allocation32_spill] sm:$0xff]  ;;  %v2256_v39 = vand.u32 4294901760, %v2180_v61  ;;  %v2208_v46 = vand.u32 4294901760, %v2164_v36 }
 0x227   :  { %v5566_v10 = vpack.c.bf16 %v9478_v7, %v9476_v51  ;;  %v7753_v7 = vpack.c.bf16 %v2256_v39, %v2253_v1 }
 0x228   :  { %5535 = vmatpush1.bf16.msra.mxu1 %v5534_v18  ;;  %v9484_v18 = vld [vmem:[#allocation38_spill] sm:$0xff] }
 0x229   :  { %5537 = vmatprep.subr.bf16.mxu1 %v5536_v15  ;;  %v9487_v15 = vld [vmem:[#allocation46_spill] sm:$0xff]  ;;  %9515 = vst [vmem:[#allocation22_spill] sm:$0xff] %v7753_v7 }
 0x22c   :  { %5539 = vmatpush1.bf16.msra.mxu1 %v5538_v35  ;;  %v9490_v35 = vld [vmem:[#allocation52_spill] sm:$0xff] }
 0x22d   :  { %5541 = vmatprep.subr.bf16.mxu1 %v5540_v6  ;;  %v9494_v6 = vld [vmem:[#allocation56_spill] sm:$0xff] }
 0x230   :  { %5543 = vmatpush1.bf16.msra.mxu1 %v5542_v9  ;;  %v9495_v9 = vld [vmem:[#allocation57_spill] sm:$0xff] }
 0x231   :  { %5545 = vmatprep.subr.bf16.mxu1 %v5544_v24  ;;  %v9498_v24 = vld [vmem:[#allocation60_spill] sm:$0xff] }
 0x234   :  { %5547 = vmatpush1.bf16.msra.mxu1 %v5546_v5  ;;  %v9501_v5 = vld [vmem:[#allocation63_spill] sm:$0xff] }
 0x235   :  { %5549 = vmatprep.subr.bf16.mxu1 %v5548_v3  ;;  %v9504_v3 = vld [vmem:[#allocation68_spill] sm:$0xff] }
 0x238   :  { %5551 = vmatpush1.bf16.msra.mxu1 %v5550_v47  ;;  %v9507_v47 = vld [vmem:[#allocation75_spill] sm:$0xff] }
 0x239   :  { %5553 = vmatprep.subr.bf16.mxu1 %v5552_v20  ;;  %v9510_v20 = vld [vmem:[#allocation80_spill] sm:$0xff] }
 0x23c   :  { %5555 = vmatpush1.bf16.msra.mxu1 %v5554_v53  ;;  %v2244_v53 = vand.u32 4294901760, %v7723_v33 }
 0x23d   :  { %5557 = vmatprep.subr.bf16.mxu1 %v5556_v13  ;;  %v2196_v13 = vand.u32 4294901760, %v7729_v25 }
 0x23f   :  { %v7743_v45 = vpack.c.bf16 %v2196_v13, %v2193_v54 }
 0x240   :  { %5559 = vmatpush1.bf16.msra.mxu1 %v5558_v23  ;;  %v2178_v23 = vld [vmem:[#allocation7 + $0x1d8] sm:$0xff] }
 0x241   :  { %5561 = vmatprep.subr.bf16.mxu1 %v5560_v52  ;;  %9512 = vst [vmem:[#allocation19_spill] sm:$0xff] %v7743_v45  ;;  %v2250_v27 = vand.u32 4294901760, %v2178_v23  ;;  %v2162_v52 = vld [vmem:[#allocation7 + $0x58] sm:$0xff] }
 0x242   :  { %v2202_v26 = vand.u32 4294901760, %v2162_v52 }
 0x243   :  { %v7747_v12 = vpack.c.bf16 %v2250_v27, %v2247_v49 }
 0x244   :  { %5563 = vmatpush1.bf16.msra.mxu1 %v5562_v30  ;;  %v7749_v30 = vpack.c.bf16 %v2202_v26, %v2199_v37 }
 0x245   :  { %5565 = vmatprep.subr.bf16.mxu1 %v5564_v19  ;;  %9513 = vst [vmem:[#allocation20_spill] sm:$0xff] %v7747_v12  ;;  %v2163_v19 = vld [vmem:[#allocation7 + $0x70] sm:$0xff] }
 0x246   :  { %9514 = vst [vmem:[#allocation21_spill] sm:$0xff] %v7749_v30  ;;  %v2205_v51 = vand.u32 4294901760, %v2163_v19 }
 0x248   :  { %5567 = vmatpush1.bf16.msra.mxu1 %v5566_v10  ;;  %v7755_v10 = vpack.c.bf16 %v2208_v46, %v2205_v51 }
 0x249   :  { %5569 = vmatprep.subr.bf16.mxu1 %v9479_v8  ;;  %v2181_v8 = vld [vmem:[#allocation7 + $0x220] sm:$0xff] }
 0x24a   :  { %9516 = vst [vmem:[#allocation23_spill] sm:$0xff] %v7755_v10 }
 0x24b   :  { %1906 = vmatmul.mubr.f32.vlgmr.msra.gmra.mrb[2].mxu1 %v9480_v34 }
 0x24c   :  { %5571 = vmatpush1.bf16.msra.mxu1 %v9481_v32  ;;  %2041 = vmatprep.mubr.f32.mxu1 %v7423_v55  ;;  %v9492_v55 = vld [vmem:[#allocation54_spill] sm:$0xff]  ;;  %v2259_v32 = vand.u32 4294901760, %v2181_v8 }
 0x24d   :  { %5573 = vmatprep.subr.bf16.mxu1 %v9482_v50 }
 0x250   :  { %5575 = vmatpush1.bf16.msra.mxu1 %v9483_v57  ;;  %v2165_v57 = vld [vmem:[#allocation7 + $0xa0] sm:$0xff] }
 0x251   :  { %5577 = vmatprep.subr.bf16.mxu1 %v9484_v18  ;;  %v2166_v18 = vld [vmem:[#allocation7 + $0xb8] sm:$0xff] }
 0x254   :  { %5579 = vmatpush1.bf16.msra.mxu1 %v9485_v43  ;;  %v2211_v43 = vand.u32 4294901760, %v2165_v57 }
 0x255   :  { %5581 = vmatprep.subr.bf16.mxu1 %v9486_v41  ;;  %v2214_v41 = vand.u32 4294901760, %v2166_v18 }
 0x258   :  { %5583 = vmatpush1.bf16.msra.mxu1 %v9487_v15 }
 0x259   :  { %5585 = vmatprep.subr.bf16.mxu1 %v9488_v38  ;;  %v7761_v38 = vpack.c.bf16 %v2214_v41, %v2211_v43 }
 0x25b   :  { %9518 = vst [vmem:[#allocation25_spill] sm:$0xff] %v7761_v38 }
 0x25c   :  { %5587 = vmatpush1.bf16.msra.mxu1 %v9489_v63  ;;  %v2183_v63 = vld [vmem:[#allocation7 + $0x250] sm:$0xff] }
 0x25d   :  { %5589 = vmatprep.subr.bf16.mxu1 %v9490_v35  ;;  %v2184_v35 = vld [vmem:[#allocation7 + $0x268] sm:$0xff] }
 0x260   :  { %5591 = vmatpush1.bf16.msra.mxu1 %v9491_v40  ;;  %v2265_v40 = vand.u32 4294901760, %v2183_v63 }
 0x261   :  { %5593 = vmatprep.subr.bf16.mxu1 %v9492_v55  ;;  %v2268_v55 = vand.u32 4294901760, %v2184_v35 }
 0x264   :  { %5595 = vmatpush1.bf16.msra.mxu1 %v9493_v44  ;;  %v2167_v44 = vld [vmem:[#allocation7 + $0xd0] sm:$0xff] }
 0x265   :  { %5597 = vmatprep.subr.bf16.mxu1 %v9494_v6  ;;  %v2168_v6 = vld [vmem:[#allocation7 + $0xe8] sm:$0xff] }
 0x266   :  { %v7699_v60 = vpop.f32.mrb[2].mxu0 }
 0x267   :  { %v7701_v17 = vpop.f32.mrb[3].mxu0 }
 0x268   :  { %5599 = vmatpush1.bf16.msra.mxu1 %v9495_v9  ;;  %v2217_v9 = vand.u32 4294901760, %v2167_v44 }
 0x269   :  { %5601 = vmatprep.subr.bf16.mxu1 %v9496_v11  ;;  %v2220_v11 = vand.u32 4294901760, %v2168_v6 }
 0x26c   :  { %5603 = vmatpush1.bf16.msra.mxu1 %v9497_v14  ;;  %v7765_v14 = vpack.c.bf16 %v2268_v55, %v2265_v40 }
 0x26d   :  { %5605 = vmatprep.subr.bf16.mxu1 %v9498_v24  ;;  %v7767_v24 = vpack.c.bf16 %v2220_v11, %v2217_v9 }
 0x26e   :  { %9519 = vst [vmem:[#allocation30_spill] sm:$0xff] %v7765_v14 }
 0x26f   :  { %9520 = vst [vmem:[#allocation36_spill] sm:$0xff] %v7767_v24 }
 0x270   :  { %5607 = vmatpush1.bf16.msra.mxu1 %v9499_v22  ;;  %v2185_v22 = vld [vmem:[#allocation7 + $0x280] sm:$0xff] }
 0x271   :  { %5609 = vmatprep.subr.bf16.mxu1 %v9500_v62  ;;  %v2186_v62 = vld [vmem:[#allocation7 + $0x298] sm:$0xff] }
 0x274   :  { %5611 = vmatpush1.bf16.msra.mxu1 %v9501_v5  ;;  %v2169_v5 = vld [vmem:[#allocation7 + $0x100] sm:$0xff] }
 0x275   :  { %5613 = vmatprep.subr.bf16.mxu1 %v9502_v2  ;;  %v2170_v2 = vld [vmem:[#allocation7 + $0x118] sm:$0xff] }
 0x278   :  { %5615 = vmatpush1.bf16.msra.mxu1 %v9503_v48  ;;  %v2271_v48 = vand.u32 4294901760, %v2185_v22 }
 0x279   :  { %5617 = vmatprep.subr.bf16.mxu1 %v9504_v3  ;;  %v2274_v3 = vand.u32 4294901760, %v2186_v62 }
 0x27c   :  { %5619 = vmatpush1.bf16.msra.mxu1 %v9505_v16  ;;  %v2223_v16 = vand.u32 4294901760, %v2169_v5 }
 0x27d   :  { %5621 = vmatprep.subr.bf16.mxu1 %v9506_v58  ;;  %v2226_v58 = vand.u32 4294901760, %v2170_v2 }
 0x280   :  { %5623 = vmatpush1.bf16.msra.mxu1 %v9507_v47  ;;  %v7774_v47 = vsub.f32 %v7721_v4, %v2241_v31  ;;  %v7795_v4 = vsub.f32 %v2161_v0, %v2199_v37  ;;  %v7815_v0 = vsub.f32 %v2183_v63, %v2265_v40  ;;  %v7819_v37 = vsub.f32 %v2167_v44, %v2217_v9  ;;  %v2174_v63 = vld [vmem:[#allocation7 + $0x178] sm:$0xff] }
 0x281   :  { %5625 = vmatprep.subr.bf16.mxu1 %v9508_v56  ;;  %v7779_v56 = vsub.f32 %v7723_v33, %v2244_v53  ;;  %v7799_v33 = vsub.f32 %v2179_v59, %v2253_v1  ;;  %v2172_v59 = vld [vmem:[#allocation7 + $0x148] sm:$0xff]  ;;  %v2190_v1 = vld [vmem:[#allocation7 + $0x2f8] sm:$0xff] }
 0x284   :  { %5627 = vmatpush1.bf16.msra.mxu1 %v9509_v42  ;;  %v7784_v42 = vsub.f32 %v7727_v21, %v2193_v54  ;;  %v7805_v21 = vsub.f32 %v2164_v36, %v2208_v46  ;;  %v7807_v54 = vsub.f32 %v2181_v8, %v2259_v32  ;;  %v7827_v36 = vsub.f32 %v2186_v62, %v2274_v3  ;;  %v2173_v46 = vld [vmem:[#allocation7 + $0x160] sm:$0xff] }
 0x285   :  { %5629 = vmatprep.subr.bf16.mxu1 %v9510_v20  ;;  %v7789_v20 = vsub.f32 %v7729_v25, %v2196_v13  ;;  %v7811_v13 = vsub.f32 %v2165_v57, %v2211_v43  ;;  %v7831_v8 = vsub.f32 %v2169_v5, %v2223_v16  ;;  %v2235_v44 = vand.u32 4294901760, %v2173_v46 }
 0x286   :  { %9523 = vst [vmem:[#allocation40_spill] sm:$0xff] %v7827_v36 }
 0x287   :  { %9525 = vst [vmem:[#allocation43_spill] sm:$0xff] %v7831_v8 }
 0x288   :  { %5631 = vmatpush1.bf16.msra.mxu1 %v9402_v29  ;;  %v7737_v29 = vpack.c.bf16 %v2244_v53, %v2241_v31  ;;  %v7797_v31 = vsub.f32 %v2162_v52, %v2202_v26  ;;  %v7801_v53 = vsub.f32 %v2180_v61, %v2256_v39  ;;  %v7817_v52 = vsub.f32 %v2184_v35, %v2268_v55  ;;  %v2189_v61 = vld [vmem:[#allocation7 + $0x2e0] sm:$0xff] }
 0x289   :  { %v7821_v26 = vsub.f32 %v2168_v6, %v2220_v11  ;;  %v7823_v39 = vpack.c.bf16 %v2274_v3, %v2271_v48  ;;  %v2283_v43 = vand.u32 4294901760, %v2189_v61  ;;  %v9078_v3 = vand.u32 4294901760, %v7774_v47 }
 0x28a   :  { %9511 = vst [vmem:[#allocation18_spill] sm:$0xff] %v7737_v29  ;;  %5633 = vmatprep.subr.bf16.mxu0 %v7737_v29 }
 0x28b   :  { %2043 = vmatmul.mubr.f32.vlgmr.msra.gmra.mrb[2].mxu1 %v9480_v34  ;;  %5635 = vmatpush3.bf16.msra.mxu0 %v7743_v45  ;;  %v2182_v34 = vld [vmem:[#allocation7 + $0x238] sm:$0xff]  ;;  %9521 = vst [vmem:[#allocation37_spill] sm:$0xff] %v7823_v39  ;;  %v7852_v62 = vsub.f32 %v2189_v61, %v2283_v43 }
 0x28c   :  { %5637 = vmatprep.subr.bf16.mxu0 %v7747_v12  ;;  %v2262_v50 = vand.u32 4294901760, %v2182_v34 }
 0x28d   :  { %9534 = vst [vmem:[#allocation27_spill] sm:$0xff] %v7852_v62 }
 0x28e   :  { %v7759_v15 = vpack.c.bf16 %v2262_v50, %v2259_v32  ;;  %v7809_v25 = vsub.f32 %v2182_v34, %v2262_v50  ;;  %v7833_v34 = vsub.f32 %v2170_v2, %v2226_v58  ;;  %v2238_v2 = vand.u32 4294901760, %v2174_v63 }
 0x28f   :  { %5639 = vmatpush3.bf16.msra.mxu0 %v7749_v30 }
 0x290   :  { %5641 = vmatprep.subr.bf16.mxu0 %v7753_v7  ;;  %9517 = vst [vmem:[#allocation24_spill] sm:$0xff] %v7759_v15  ;;  %9526 = vst [vmem:[#allocation45_spill] sm:$0xff] %v7833_v34 }
 0x293   :  { %5643 = vmatpush3.bf16.msra.mxu0 %v7755_v10 }
 0x294   :  { %5645 = vmatprep.subr.bf16.mxu0 %v7759_v15 }
 0x297   :  { %5647 = vmatpush3.bf16.msra.mxu0 %v7761_v38  ;;  %v7803_v38 = vsub.f32 %v2163_v19, %v2205_v51  ;;  %v7825_v19 = vsub.f32 %v2185_v22, %v2271_v48  ;;  %v7829_v51 = vpack.c.bf16 %v2226_v58, %v2223_v16  ;;  %v7856_v48 = vsub.f32 %v2173_v46, %v2235_v44 }
 0x298   :  { %5649 = vmatprep.subr.bf16.mxu0 %v7765_v14  ;;  %v7793_v14 = vsub.f32 %v2178_v23, %v2250_v27  ;;  %v2187_v23 = vld [vmem:[#allocation7 + $0x2b0] sm:$0xff]  ;;  %v9074_v16 = vand.u32 4294901760, %v7779_v56  ;;  %v9073_v58 = vand.u32 4294901760, %v7784_v42 }
 0x299   :  { %v2171_v27 = vld [vmem:[#allocation7 + $0x130] sm:$0xff]  ;;  %9522 = vst [vmem:[#allocation39_spill] sm:$0xff] %v7825_v19  ;;  %9524 = vst [vmem:[#allocation42_spill] sm:$0xff] %v7829_v51  ;;  %v2277_v32 = vand.u32 4294901760, %v2187_v23  ;;  %v9125_v7 = vand.u32 4294901760, %v7856_v48 }
 0x29a   :  { %v2229_v57 = vand.u32 4294901760, %v2171_v27  ;;  %9536 = vst [vmem:[#allocation29_spill] sm:$0xff] %v7856_v48  ;;  %v9077_v61 = vand.u32 4294901760, %v7793_v14  ;;  %v2427_v46 = vsub.f32 %v7779_v56, %v9074_v16 }
 0x29b   :  { %5651 = vmatpush3.bf16.msra.mxu0 %v7767_v24  ;;  %v7791_v24 = vsub.f32 %v2177_v28, %v2247_v49  ;;  %v7813_v28 = vsub.f32 %v2166_v18, %v2214_v41  ;;  %v2188_v49 = vld [vmem:[#allocation7 + $0x2c8] sm:$0xff]  ;;  %v2232_v18 = vand.u32 4294901760, %v2172_v59  ;;  %v2286_v41 = vand.u32 4294901760, %v2190_v1 }
 0x29c   :  { %v2280_v50 = vand.u32 4294901760, %v2188_v49  ;;  %5653 = vmatprep.subr.bf16.mxu0 %v7823_v39  ;;  %v7839_v40 = vsub.f32 %v2187_v23, %v2277_v32  ;;  %v7845_v9 = vsub.f32 %v2171_v27, %v2229_v57  ;;  %v9075_v23 = vand.u32 4294901760, %v7789_v20 }
 0x29d   :  { %v7843_v6 = vpack.c.bf16 %v2232_v18, %v2229_v57  ;;  %v7847_v11 = vsub.f32 %v2172_v59, %v2232_v18  ;;  %v7849_v22 = vpack.c.bf16 %v2286_v41, %v2283_v43  ;;  %v7854_v5 = vsub.f32 %v2190_v1, %v2286_v41 }
 0x29e   :  { %v7837_v35 = vpack.c.bf16 %v2280_v50, %v2277_v32  ;;  %9528 = vst [vmem:[#allocation49_spill] sm:$0xff] %v7839_v40  ;;  %v7841_v55 = vsub.f32 %v2188_v49, %v2280_v50  ;;  %9531 = vst [vmem:[#allocation17_spill] sm:$0xff] %v7845_v9  ;;  %v7863_v49 = vpack.c.bf16 %v2238_v2, %v2235_v44  ;;  %v9076_v59 = vand.u32 4294901760, %v7791_v24 }
 0x29f   :  { %5655 = vmatpush3.bf16.msra.mxu0 %v7829_v51  ;;  %9530 = vst [vmem:[#allocation16_spill] sm:$0xff] %v7843_v6  ;;  %9532 = vst [vmem:[#allocation81_spill] sm:$0xff] %v7847_v11  ;;  %v7865_v27 = vsub.f32 %v2174_v63, %v2238_v2  ;;  %v2420_v1 = vsub.f32 %v7774_v47, %v9078_v3  ;;  %v2308_v32 = vsub.f32 %v7784_v42, %v9073_v58 }
 0x2a0   :  { %9527 = vst [vmem:[#allocation47_spill] sm:$0xff] %v7837_v35  ;;  %9529 = vst [vmem:[#allocation50_spill] sm:$0xff] %v7841_v55  ;;  %5657 = vmatprep.subr.bf16.mxu0 %v7837_v35  ;;  %v2315_v50 = vsub.f32 %v7789_v20, %v9075_v23  ;;  %v2434_v57 = vsub.f32 %v7791_v24, %v9076_v59  ;;  %v2441_v18 = vsub.f32 %v7793_v14, %v9077_v61 }
 0x2a1   :  { %9533 = vst [vmem:[#allocation26_spill] sm:$0xff] %v7849_v22  ;;  %9535 = vst [vmem:[#allocation28_spill] sm:$0xff] %v7854_v5  ;;  %v9081_v43 = vand.u32 4294901760, %v7795_v4  ;;  %v9085_v41 = vand.u32 4294901760, %v7797_v31  ;;  %v2421_v63 = vand.u32 4294901760, %v2420_v1  ;;  %v2428_v44 = vand.u32 4294901760, %v2427_v46 }
 0x2a2   :  { %9537 = vst [vmem:[#allocation33_spill] sm:$0xff] %v7863_v49  ;;  %9538 = vst [vmem:[#allocation64_spill] sm:$0xff] %v7865_v27  ;;  %v2309_v2 = vand.u32 4294901760, %v2308_v32  ;;  %v2316_v58 = vand.u32 4294901760, %v2315_v50  ;;  %v2435_v16 = vand.u32 4294901760, %v2434_v57  ;;  %v2442_v23 = vand.u32 4294901760, %v2441_v18 }
 0x2a3   :  { %5659 = vmatpush3.bf16.msra.mxu0 %v7843_v6  ;;  %v2322_v59 = vsub.f32 %v7795_v4, %v9081_v43  ;;  %v2329_v61 = vsub.f32 %v7797_v31, %v9085_v41  ;;  %v5664_v3 = vpack.c.bf16 %v2428_v44, %v2421_v63  ;;  %v9083_v1 = vand.u32 4294901760, %v7799_v33 }
 0x2a4   :  { %5661 = vmatprep.subr.bf16.mxu0 %v7849_v22  ;;  %v7897_v22 = vpack.c.bf16 %v2316_v58, %v2309_v2  ;;  %v9082_v46 = vand.u32 4294901760, %v7801_v53  ;;  %v7901_v32 = vpack.c.bf16 %v2442_v23, %v2435_v16  ;;  %v9084_v18 = vand.u32 4294901760, %v7803_v38 }
 0x2a5   :  { %v2323_v50 = vand.u32 4294901760, %v2322_v59  ;;  %v2330_v57 = vand.u32 4294901760, %v2329_v61  ;;  %v2448_v43 = vsub.f32 %v7799_v33, %v9083_v1  ;;  %v9088_v63 = vand.u32 4294901760, %v7805_v21 }
 0x2a6   :  { %v2455_v58 = vsub.f32 %v7801_v53, %v9082_v46  ;;  %v9094_v44 = vand.u32 4294901760, %v7807_v54  ;;  %v2336_v16 = vsub.f32 %v7803_v38, %v9084_v18  ;;  %v9095_v23 = vand.u32 4294901760, %v7811_v13 }
 0x2a7   :  { %5663 = vmatpush3.bf16.msra.mxu0 %v7863_v49  ;;  %v7912_v2 = vpack.c.bf16 %v2330_v57, %v2323_v50  ;;  %v2449_v59 = vand.u32 4294901760, %v2448_v43  ;;  %v2343_v46 = vsub.f32 %v7805_v21, %v9088_v63  ;;  %v9097_v43 = vand.u32 4294901760, %v7813_v28 }
 0x2a8   :  { %5665 = vmatprep.subr.bf16.mxu0 %v5664_v3  ;;  %v9093_v3 = vand.u32 4294901760, %v7809_v25  ;;  %v2456_v61 = vand.u32 4294901760, %v2455_v58  ;;  %v2462_v1 = vsub.f32 %v7807_v54, %v9094_v44  ;;  %v2337_v50 = vand.u32 4294901760, %v2336_v16 }
 0x2a9   :  { %v2350_v18 = vsub.f32 %v7811_v13, %v9095_v23  ;;  %v2344_v41 = vand.u32 4294901760, %v2343_v46  ;;  %v9096_v63 = vand.u32 4294901760, %v7815_v0  ;;  %v2357_v16 = vsub.f32 %v7813_v28, %v9097_v43 }
 0x2aa   :  { %v2469_v57 = vsub.f32 %v7809_v25, %v9093_v3  ;;  %v7932_v58 = vpack.c.bf16 %v2456_v61, %v2449_v59  ;;  %v2463_v49 = vand.u32 4294901760, %v2462_v1  ;;  %v9100_v3 = vand.u32 4294901760, %v7817_v52 }
 0x2ab   :  { %v2351_v35 = vand.u32 4294901760, %v2350_v18  ;;  %v7939_v44 = vpack.c.bf16 %v2344_v41, %v2337_v50  ;;  %v2476_v23 = vsub.f32 %v7815_v0, %v9096_v63  ;;  %v9101_v59 = vand.u32 4294901760, %v7819_v37 }
 0x2ac   :  { %v2470_v6 = vand.u32 4294901760, %v2469_v57  ;;  %v9105_v1 = vand.u32 4294901760, %v7821_v26  ;;  %v2358_v61 = vand.u32 4294901760, %v2357_v16  ;;  %v2483_v18 = vsub.f32 %v7817_v52, %v9100_v3 }
 0x2ad   :  { %v2477_v57 = vand.u32 4294901760, %v2476_v23  ;;  %v2364_v41 = vsub.f32 %v7819_v37, %v9101_v59  ;;  %v9104_v63 = vand.u32 4294901760, %v7825_v19  ;;  %v9109_v16 = vand.u32 4294901760, %v7831_v8 }
 0x2ae   :  { %v7946_v46 = vpack.c.bf16 %v2470_v6, %v2463_v49  ;;  %v2371_v50 = vsub.f32 %v7821_v26, %v9105_v1  ;;  %v7958_v43 = vpack.c.bf16 %v2358_v61, %v2351_v35  ;;  %v2484_v6 = vand.u32 4294901760, %v2483_v18 }
 0x2af   :  { %v9108_v49 = vand.u32 4294901760, %v7827_v36  ;;  %v2365_v51 = vand.u32 4294901760, %v2364_v41  ;;  %v2490_v23 = vsub.f32 %v7825_v19, %v9104_v63  ;;  %v9110_v59 = vand.u32 4294901760, %v7833_v34 }
 0x2b0   :  { %v2372_v3 = vand.u32 4294901760, %v2371_v50  ;;  %v7966_v39 = vpack.c.bf16 %v2484_v6, %v2477_v57  ;;  %v2378_v61 = vsub.f32 %v7831_v8, %v9109_v16  ;;  %v9111_v63 = vand.u32 4294901760, %v7839_v40 }
 0x2b1   :  { %v2497_v35 = vsub.f32 %v7827_v36, %v9108_v49  ;;  %v2491_v41 = vand.u32 4294901760, %v2490_v23  ;;  %v2385_v50 = vsub.f32 %v7833_v34, %v9110_v59  ;;  %v9116_v6 = vand.u32 4294901760, %v7841_v55 }
 0x2b2   :  { %v7974_v18 = vpack.c.bf16 %v2372_v3, %v2365_v51  ;;  %v2379_v57 = vand.u32 4294901760, %v2378_v61  ;;  %v9117_v15 = vand.u32 4294901760, %v7845_v9  ;;  %v2504_v16 = vsub.f32 %v7839_v40, %v9111_v63 }
 0x2b3   :  { %v2498_v1 = vand.u32 4294901760, %v2497_v35  ;;  %v2386_v49 = vand.u32 4294901760, %v2385_v50  ;;  %v9118_v51 = vand.u32 4294901760, %v7847_v11  ;;  %v2511_v23 = vsub.f32 %v7841_v55, %v9116_v6 }
 0x2b4   :  { %v2392_v35 = vsub.f32 %v7845_v9, %v9117_v15  ;;  %v2505_v59 = vand.u32 4294901760, %v2504_v16  ;;  %v9119_v63 = vand.u32 4294901760, %v7852_v62 }
 0x2b5   :  { %v7986_v3 = vpack.c.bf16 %v2498_v1, %v2491_v41  ;;  %v7994_v61 = vpack.c.bf16 %v2386_v49, %v2379_v57  ;;  %v2399_v50 = vsub.f32 %v7847_v11, %v9118_v51  ;;  %v2512_v10 = vand.u32 4294901760, %v2511_v23 }
 0x2b6   :  { %v2393_v1 = vand.u32 4294901760, %v2392_v35  ;;  %v9124_v41 = vand.u32 4294901760, %v7854_v5  ;;  %v2518_v15 = vsub.f32 %v7852_v62, %v9119_v63  ;;  %v9126_v49 = vand.u32 4294901760, %v7865_v27 }
 0x2b7   :  { %v2400_v6 = vand.u32 4294901760, %v2399_v50  ;;  %v8006_v16 = vpack.c.bf16 %v2512_v10, %v2505_v59  ;;  %v2406_v23 = vsub.f32 %v7856_v48, %v9125_v7 }
 0x2b8   :  { %v2525_v57 = vsub.f32 %v7854_v5, %v9124_v41  ;;  %v2519_v51 = vand.u32 4294901760, %v2518_v15  ;;  %v2413_v50 = vsub.f32 %v7865_v27, %v9126_v49 }
 0x2b9   :  { %v8014_v35 = vpack.c.bf16 %v2400_v6, %v2393_v1  ;;  %v2407_v30 = vand.u32 4294901760, %v2406_v23 }
 0x2ba   :  { %v2526_v63 = vand.u32 4294901760, %v2525_v57  ;;  %v2414_v12 = vand.u32 4294901760, %v2413_v50 }
 0x2bc   :  { %v8019_v10 = vpack.c.bf16 %v2526_v63, %v2519_v51  ;;  %v8021_v59 = vpack.c.bf16 %v2414_v12, %v2407_v30 }
 0x35e   :  { %v2044_v63 = vpop.f32.mrb[2].mxu1 }
 0x35f   :  { %v6114_v30 = vadd.f32 %v2044_v63, %v7699_v60  ;;  %v2046_v1 = vpop.f32.mrb[3].mxu1 }
 0x360   :  { %v6115_v57 = vadd.f32 %v2046_v1, %v7701_v17 }
 0x361   :  { %v2049_v6 = vrot.slane %v6114_v30, 4  ;;  %v2061_v50 = vmul.f32 %v6114_v30, %v6114_v30 }
 0x362   :  { %v2055_v15 = vrot.slane %v6115_v57, 4  ;;  %v2062_v7 = vmul.f32 %v6115_v57, %v6115_v57 }
 0x363   :  { %v2050_v49 = vadd.f32 %v6114_v30, %v2049_v6  ;;  %v2063_v41 = vrot.slane %v2061_v50, 4 }
 0x364   :  { %v2056_v45 = vadd.f32 %v6115_v57, %v2055_v15  ;;  %v2069_v12 = vrot.slane %v2062_v7, 4 }
 0x365   :  { %v2051_v29 = vrot.slane %v2050_v49, 2  ;;  %v2064_v9 = vadd.f32 %v2063_v41, %v2061_v50 }
 0x366   :  { %v2057_v60 = vrot.slane %v2056_v45, 2  ;;  %v2070_v63 = vadd.f32 %v2069_v12, %v2062_v7 }
 0x367   :  { %v2052_v11 = vadd.f32 %v2051_v29, %v2050_v49  ;;  %v2065_v40 = vrot.slane %v2064_v9, 2 }
 0x368   :  { %v2058_v51 = vadd.f32 %v2057_v60, %v2056_v45  ;;  %v2071_v62 = vrot.slane %v2070_v63, 2 }
 0x369   :  { %v2053_v17 = vrot.slane %v2052_v11, 1  ;;  %v2066_v1 = vadd.f32 %v2065_v40, %v2064_v9 }
 0x36a   :  { %v2059_v5 = vrot.slane %v2058_v51, 1  ;;  %v2072_v23 = vadd.f32 %v2071_v62, %v2070_v63  ;;  %v9539_v62 = vld [vmem:[#allocation82_spill] sm:$0xff] }
 0x36b   :  { %v2054_v48 = vadd.f32 %v2053_v17, %v2052_v11  ;;  %v2067_v27 = vrot.slane %v2066_v1, 1 }
 0x36c   :  { %v2060_v55 = vadd.f32 %v2059_v5, %v2058_v51  ;;  %v2073_v8 = vrot.slane %v2072_v23, 1  ;;  %v2084_v51 = vld [vmem:[#allocation10 + $0x2] ss:$8 sm:$0x3] }
 0x36d   :  { %v2068_v6 = vadd.f32 %v2067_v27, %v2066_v1  ;;  %v2075_v34 = vmul.f32 0.125, %v2054_v48 }
 0x36e   :  { %v2074_v15 = vadd.f32 %v2073_v8, %v2072_v23  ;;  %v2076_v19 = vmul.f32 0.125, %v2060_v55  ;;  %v9540_v55 = vld [vmem:[#allocation83_spill] sm:$0xff]  ;;  %v9541_v23 = vld [vmem:[#allocation84_spill] sm:$0xff] }
 0x36f   :  { %v2077_v36 = vmul.f32 0.125, %v2068_v6  ;;  %v2079_v41 = vmul.f32 %v2075_v34, %v2075_v34 }
 0x370   :  { %v2078_v50 = vmul.f32 0.125, %v2074_v15  ;;  %v2080_v7 = vmul.f32 %v2076_v19, %v2076_v19 }
 0x371   :  { %v2081_v29 = vsub.f32 %v2077_v36, %v2079_v41  ;;  %v2086_v41 = vld [vmem:[#allocation10 + $0x3] ss:$8 sm:$0x3] }
 0x372   :  { %v2082_v49 = vsub.f32 %v2078_v50, %v2080_v7 }
 0x373   :  { %v2087_v45 = vadd.f32 1e-05, %v2081_v29 }
 0x374   :  { %v2088_v12 = vadd.f32 1e-05, %v2082_v49 }
 0x375   :  { %6171 = vrsqrt.f32 %v2087_v45 }
 0x376   :  { %6173 = vrsqrt.f32 %v2088_v12 }
 0x37f   :  { %v6172_v40 = vpop.eup %6171 }
 0x380   :  { %v6174_v9 = vpop.eup %6173 }
 0x381   :  { %v2093_v11 = vcombine.low %v6172_v40, %v6174_v9 }
 0x383   :  { %v2100_v5 = vrot.slane %v2093_v11, %v9539_v62 }
 0x385   :  { %v2107_v48 = vrot.slane %v2100_v5, %v9539_v62 }
 0x387   :  { %v2109_v8 = vmul.f32 %v2107_v48, %v2084_v51 }
 0x389   :  { %v2114_v27 = vrot.slane %v2109_v8, %v9540_v55  ;;  %v2118_v60 = vrot.slane %v2109_v8, %v9541_v23 }
 0x38b   :  { %v2121_v63 = vmul.f32 %v6114_v30, %v2114_v27  ;;  %v2122_v36 = vmul.f32 %v6115_v57, %v2118_v60  ;;  %v2123_v17 = vmul.f32 %v2114_v27, %v2075_v34  ;;  %v2124_v1 = vmul.f32 %v2118_v60, %v2076_v19  ;;  %v9558_v27 = vld [vmem:[#allocation50_spill] sm:$0xff] }
 0x38d   :  { %v2127_v6 = vcombine.low %v2123_v17, %v2124_v1  ;;  %v9564_v1 = vld [vmem:[#allocation28_spill] sm:$0xff] }
 0x38f   :  { %v2134_v15 = vrot.slane %v2127_v6, %v9539_v62  ;;  %v9565_v6 = vld [vmem:[#allocation27_spill] sm:$0xff] }
 0x391   :  { %v2141_v50 = vrot.slane %v2134_v15, %v9539_v62  ;;  %v9566_v15 = vpack.c.bf16 %v9564_v1, %v9565_v6 }
 0x393   :  { %v2143_v7 = vsub.f32 %v2086_v41, %v2141_v50  ;;  %v9567_v41 = vld [vmem:[#allocation64_spill] sm:$0xff]  ;;  %v9568_v50 = vld [vmem:[#allocation29_spill] sm:$0xff] }
 0x395   :  { %v2148_v29 = vrot.slane %v2143_v7, %v9540_v55  ;;  %v2152_v49 = vrot.slane %v2143_v7, %v9541_v23  ;;  %v9559_v23 = vld [vmem:[#allocation49_spill] sm:$0xff]  ;;  %v9569_v7 = vpack.c.bf16 %v9567_v41, %v9568_v50 }
 0x396   :  { %v9560_v60 = vpack.c.bf16 %v9558_v27, %v9559_v23 }
 0x397   :  { %v2156_v45 = vadd.f32 %v2152_v49, %v2122_v36  ;;  %v2155_v12 = vadd.f32 %v2148_v29, %v2121_v63  ;;  %v9561_v63 = vld [vmem:[#allocation81_spill] sm:$0xff]  ;;  %v9570_v29 = vld [vmem:[#allocation18_spill] sm:$0xff]  ;;  %v9571_v49 = vld [vmem:[#allocation19_spill] sm:$0xff] }
 0x398   :  { %v9562_v36 = vld [vmem:[#allocation17_spill] sm:$0xff] }
 0x399   :  { %v2158_v40 = vmax.f32 %v2156_v45, 0.0  ;;  %v2157_v9 = vmax.f32 %v2155_v12, 0.0  ;;  %v9563_v17 = vpack.c.bf16 %v9561_v63, %v9562_v36  ;;  %v9572_v45 = vld [vmem:[#allocation20_spill] sm:$0xff]  ;;  %v9573_v12 = vld [vmem:[#allocation21_spill] sm:$0xff] }
 0x39b   :  { %v8065_v11 = vand.u32 4294901760, %v2158_v40  ;;  %v8067_v30 = vand.u32 4294901760, %v2157_v9 }
 0x39d   :  { %v2289_v19 = vsub.f32 %v2158_v40, %v8065_v11  ;;  %v8071_v34 = vsub.f32 %v2157_v9, %v8067_v30  ;;  %v9574_v40 = vld [vmem:[#allocation22_spill] sm:$0xff]  ;;  %v9575_v9 = vld [vmem:[#allocation23_spill] sm:$0xff] }
 0x39f   :  { %v2290_v57 = vand.u32 4294901760, %v2289_v19  ;;  %v2296_v62 = vand.u32 4294901760, %v8071_v34 }
 0x3a1   :  { %v2291_v5 = vsub.f32 %v2289_v19, %v2290_v57  ;;  %v2297_v51 = vsub.f32 %v8071_v34, %v2296_v62 }
 0x3a3   :  { %v2292_v48 = vand.u32 4294901760, %v2291_v5  ;;  %v2298_v8 = vand.u32 4294901760, %v2297_v51  ;;  %v9577_v5 = vld [vmem:[#allocation25_spill] sm:$0xff]  ;;  %v9578_v51 = vld [vmem:[#allocation30_spill] sm:$0xff] }
 0x3a5   :  { %2293 = vmatprep.mubr.f32.mxu0 %v2292_v48  ;;  %v9579_v48 = vld [vmem:[#allocation36_spill] sm:$0xff] }
 0x3a6   :  { %2299 = vmatmul.mubr.f32.vlgmr.msra.gmra.mrb[4].mxu0 %v2298_v8  ;;  %v9580_v8 = vld [vmem:[#allocation37_spill] sm:$0xff] }
 0x3a7   :  { %5667 = vmatpush3.bf16.msra.mxu0 %v7897_v22  ;;  %2529 = vmatprep.mubr.f32.mxu0 %v8065_v11  ;;  %v9542_v22 = vpack.c.bf16 %v7779_v56, %v7774_v47 }
 0x3a8   :  { %5669 = vmatprep.subr.bf16.mxu0 %v7901_v32  ;;  %v9544_v32 = vpack.c.bf16 %v7793_v14, %v7791_v24 }
 0x3ab   :  { %5671 = vmatpush3.bf16.msra.mxu0 %v7912_v2  ;;  %v9546_v2 = vpack.c.bf16 %v7801_v53, %v7799_v33 }
 0x3ac   :  { %5673 = vmatprep.subr.bf16.mxu0 %v7932_v58  ;;  %v9548_v58 = vpack.c.bf16 %v7809_v25, %v7807_v54 }
 0x3af   :  { %5675 = vmatpush3.bf16.msra.mxu0 %v7939_v44  ;;  %v9545_v44 = vpack.c.bf16 %v7797_v31, %v7795_v4 }
 0x3b0   :  { %5677 = vmatprep.subr.bf16.mxu0 %v7946_v46  ;;  %v9549_v46 = vpack.c.bf16 %v7813_v28, %v7811_v13 }
 0x3b3   :  { %5679 = vmatpush3.bf16.msra.mxu0 %v7958_v43  ;;  %v9547_v43 = vpack.c.bf16 %v7805_v21, %v7803_v38 }
 0x3b4   :  { %5681 = vmatprep.subr.bf16.mxu0 %v7966_v39  ;;  %v9543_v39 = vpack.c.bf16 %v7789_v20, %v7784_v42 }
 0x3b7   :  { %5683 = vmatpush3.bf16.msra.mxu0 %v7974_v18  ;;  %v9550_v18 = vpack.c.bf16 %v7817_v52, %v7815_v0 }
 0x3b8   :  { %5685 = vmatprep.subr.bf16.mxu0 %v7986_v3  ;;  %v9551_v3 = vpack.c.bf16 %v7821_v26, %v7819_v37 }
 0x3bb   :  { %5687 = vmatpush3.bf16.msra.mxu0 %v7994_v61  ;;  %v9552_v61 = vld [vmem:[#allocation40_spill] sm:$0xff] }
 0x3bc   :  { %5689 = vmatprep.subr.bf16.mxu0 %v8006_v16  ;;  %v9553_v16 = vld [vmem:[#allocation39_spill] sm:$0xff] }
 0x3bf   :  { %5691 = vmatpush3.bf16.msra.mxu0 %v8014_v35  ;;  %v9554_v35 = vpack.c.bf16 %v9552_v61, %v9553_v16 }
 0x3c0   :  { %5693 = vmatprep.subr.bf16.mxu0 %v8019_v10  ;;  %v9555_v10 = vld [vmem:[#allocation45_spill] sm:$0xff] }
 0x3c3   :  { %5695 = vmatpush3.bf16.msra.mxu0 %v8021_v59  ;;  %v9556_v59 = vld [vmem:[#allocation43_spill] sm:$0xff] }
 0x3c4   :  { %5697 = vmatprep.subr.bf16.mxu0 %v9542_v22  ;;  %v9557_v55 = vpack.c.bf16 %v9555_v10, %v9556_v59  ;;  %v9581_v22 = vld [vmem:[#allocation42_spill] sm:$0xff] }
 0x3c6   :  { %2531 = vmatmul.mubr.f32.vlgmr.msra.gmra.mrb[6].mxu0 %v8067_v30 }
 0x3c7   :  { %5699 = vmatpush3.bf16.msra.mxu0 %v9543_v39  ;;  %2666 = vmatprep.mubr.f32.mxu0 %v2289_v19  ;;  %v9576_v19 = vld [vmem:[#allocation24_spill] sm:$0xff] }
 0x3c8   :  { %5701 = vmatprep.subr.bf16.mxu0 %v9544_v32  ;;  %v9583_v39 = vld [vmem:[#allocation16_spill] sm:$0xff]  ;;  %v9584_v32 = vld [vmem:[#allocation26_spill] sm:$0xff] }
 0x3cb   :  { %5703 = vmatpush3.bf16.msra.mxu0 %v9545_v44  ;;  %v9585_v44 = vand.u32 4294901760, %v7774_v47  ;;  %v9592_v47 = vand.u32 4294901760, %v7795_v4  ;;  %v9599_v4 = vand.u32 4294901760, %v7809_v25  ;;  %v9606_v25 = vand.u32 4294901760, %v9553_v16 }
 0x3cc   :  { %5705 = vmatprep.subr.bf16.mxu0 %v9546_v2  ;;  %v9586_v2 = vand.u32 4294901760, %v7779_v56  ;;  %v9593_v56 = vand.u32 4294901760, %v7797_v31  ;;  %v9600_v31 = vand.u32 4294901760, %v7811_v13  ;;  %v9607_v13 = vand.u32 4294901760, %v9552_v61 }
 0x3cd   :  { %v9613_v16 = vand.u32 4294901760, %v9561_v63  ;;  %v9614_v61 = vand.u32 4294901760, %v9565_v6  ;;  %v3057_v6 = vld [vmem:[#allocation8 + $0x20] sm:$0xff] }
 0x3cf   :  { %5707 = vmatpush3.bf16.msra.mxu0 %v9547_v43  ;;  %v5760_v43 = vpack.c.bf16 %v9586_v2, %v9585_v44 }
 0x3d0   :  { %5709 = vmatprep.subr.bf16.mxu0 %v9548_v58  ;;  %v9587_v58 = vld [vmem:[#allocation33_spill] sm:$0xff] }
 0x3d3   :  { %5711 = vmatpush3.bf16.msra.mxu0 %v9549_v46  ;;  %v9588_v46 = vand.u32 4294901760, %v7784_v42  ;;  %v5766_v42 = vpack.c.bf16 %v9593_v56, %v9592_v47 }
 0x3d4   :  { %5713 = vmatprep.subr.bf16.mxu0 %v9550_v18  ;;  %v9589_v18 = vand.u32 4294901760, %v7789_v20  ;;  %v9594_v20 = vand.u32 4294901760, %v7799_v33  ;;  %v9601_v33 = vand.u32 4294901760, %v7813_v28  ;;  %v9608_v28 = vand.u32 4294901760, %v9556_v59 }
 0x3d5   :  { %v9615_v59 = vand.u32 4294901760, %v9564_v1  ;;  %v3056_v1 = vld [vmem:[#allocation8 + $0x10] sm:$0xff] }
 0x3d6   :  { %v5774_v44 = vpack.c.bf16 %v9601_v33, %v9600_v31 }
 0x3d7   :  { %5715 = vmatpush3.bf16.msra.mxu0 %v9551_v3  ;;  %v5762_v3 = vpack.c.bf16 %v9589_v18, %v9588_v46  ;;  %v5780_v46 = vpack.c.bf16 %v9607_v13, %v9606_v25 }
 0x3d8   :  { %5717 = vmatprep.subr.bf16.mxu0 %v9554_v35  ;;  %v9590_v35 = vand.u32 4294901760, %v7791_v24 }
 0x3db   :  { %5719 = vmatpush3.bf16.msra.mxu0 %v9557_v55  ;;  %v9591_v55 = vand.u32 4294901760, %v7793_v14  ;;  %v9596_v14 = vand.u32 4294901760, %v7803_v38  ;;  %v9603_v38 = vand.u32 4294901760, %v7817_v52  ;;  %v9610_v52 = vand.u32 4294901760, %v9559_v23 }
 0x3dc   :  { %5721 = vmatprep.subr.bf16.mxu0 %v9560_v60  ;;  %v9617_v23 = vand.u32 4294901760, %v9567_v41  ;;  %v6326_v41 = vmov 0.0|0.0  }
 0x3dd   :  { %v5764_v60 = vpack.c.bf16 %v9591_v55, %v9590_v35  ;;  %v5788_v55 = vpack.c.bf16 %v9615_v59, %v9614_v61  ;;  %5992 = vmatprep.subr.bf16.mxu1 %v6326_v41 }
 0x3df   :  { %5723 = vmatpush3.bf16.msra.mxu0 %v9563_v17  ;;  %v9595_v17 = vand.u32 4294901760, %v7801_v53  ;;  %v9602_v53 = vand.u32 4294901760, %v7815_v0  ;;  %v9609_v0 = vand.u32 4294901760, %v9555_v10  ;;  %v9616_v10 = vand.u32 4294901760, %v9568_v50 }
 0x3e0   :  { %5725 = vmatprep.subr.bf16.mxu0 %v9566_v15  ;;  %v9598_v15 = vand.u32 4294901760, %v7807_v54  ;;  %v9605_v54 = vand.u32 4294901760, %v7821_v26  ;;  %v9612_v26 = vand.u32 4294901760, %v9562_v36  ;;  %v3055_v36 = vld [vmem:[#allocation8] sm:$0xff] }
 0x3e1   :  { %v5768_v24 = vpack.c.bf16 %v9595_v17, %v9594_v20  ;;  %v5776_v2 = vpack.c.bf16 %v9603_v38, %v9602_v53  ;;  %v5782_v18 = vpack.c.bf16 %v9609_v0, %v9608_v28  ;;  %v3073_v50 = vand.u32 4294901760, %v3055_v36  ;;  %v3065_v53 = vld [vmem:[#allocation8 + $0xa0] sm:$0xff]  ;;  %v3066_v38 = vld [vmem:[#allocation8 + $0xb0] sm:$0xff] }
 0x3e2   :  { %v5786_v35 = vpack.c.bf16 %v9613_v16, %v9612_v26  ;;  %v3068_v28 = vld [vmem:[#allocation8 + $0xd0] sm:$0xff] }
 0x3e3   :  { %5727 = vmatpush3.bf16.msra.mxu0 %v9569_v7  ;;  %v5772_v7 = vpack.c.bf16 %v9599_v4, %v9598_v15 }
 0x3e4   :  { %5729 = vmatprep.subr.bf16.mxu0 %v9570_v29 }
 0x3e6   :  { %2669 = vmatmul.mubr.f32.vlgmr.msra.gmra.mrb[8].mxu0 %v8071_v34  ;;  %v9597_v34 = vand.u32 4294901760, %v7805_v21  ;;  %v9604_v21 = vand.u32 4294901760, %v7819_v37  ;;  %v9611_v37 = vand.u32 4294901760, %v9558_v27 }
 0x3e7   :  { %5731 = vmatpush3.bf16.msra.mxu0 %v9571_v49  ;;  %2773 = vmatprep.mubr.f32.mxu0 %v2290_v57  ;;  %v9582_v57 = vld [vmem:[#allocation47_spill] sm:$0xff] }
 0x3e8   :  { %5733 = vmatprep.subr.bf16.mxu0 %v9572_v45 }
 0x3eb   :  { %5735 = vmatpush3.bf16.msra.mxu0 %v9573_v12 }
 0x3ec   :  { %5737 = vmatprep.subr.bf16.mxu0 %v9574_v40 }
 0x3ef   :  { %5739 = vmatpush3.bf16.msra.mxu0 %v9575_v9 }
 0x3f0   :  { %5741 = vmatprep.subr.bf16.mxu0 %v9576_v19 }
 0x3f3   :  { %5743 = vmatpush3.bf16.msra.mxu0 %v9577_v5 }
 0x3f4   :  { %5745 = vmatprep.subr.bf16.mxu0 %v9578_v51 }
 0x3f7   :  { %5747 = vmatpush3.bf16.msra.mxu0 %v9579_v48 }
 0x3f8   :  { %5749 = vmatprep.subr.bf16.mxu0 %v9580_v8 }
 0x3fb   :  { %5751 = vmatpush3.bf16.msra.mxu0 %v9581_v22 }
 0x3fc   :  { %5753 = vmatprep.subr.bf16.mxu0 %v9582_v57 }
 0x3ff   :  { %5755 = vmatpush3.bf16.msra.mxu0 %v9583_v39 }
 0x400   :  { %5757 = vmatprep.subr.bf16.mxu0 %v9584_v32 }
 0x403   :  { %5759 = vmatpush3.bf16.msra.mxu0 %v9587_v58 }
 0x404   :  { %5761 = vmatprep.subr.bf16.mxu0 %v5760_v43  ;;  %v5778_v43 = vpack.c.bf16 %v9605_v54, %v9604_v21  ;;  %v3103_v54 = vand.u32 4294901760, %v3065_v53 }
 0x406   :  { %2777 = vmatmul.mubr.f32.vlgmr.msra.gmra.mrb[10].mxu0 %v2296_v62  ;;  %v5770_v62 = vpack.c.bf16 %v9597_v34, %v9596_v14  ;;  %v3063_v34 = vld [vmem:[#allocation8 + $0x80] sm:$0xff] }
 0x407   :  { %5763 = vmatpush3.bf16.msra.mxu0 %v5762_v3  ;;  %2943 = vmatprep.mubr.f32.mxu0 %v8065_v11  ;;  %v5784_v3 = vpack.c.bf16 %v9611_v37, %v9610_v52  ;;  %v3097_v15 = vand.u32 4294901760, %v3063_v34  ;;  %v3069_v37 = vld [vmem:[#allocation8 + $0xe0] sm:$0xff] }
 0x408   :  { %5765 = vmatprep.subr.bf16.mxu0 %v5764_v60  ;;  %v5790_v60 = vpack.c.bf16 %v9617_v23, %v9616_v10  ;;  %v3115_v26 = vand.u32 4294901760, %v3069_v37  ;;  %v8299_v10 = vsub.f32 %v3065_v53, %v3103_v54 }
 0x409   :  { %v8295_v59 = vsub.f32 %v3063_v34, %v3097_v15 }
 0x40b   :  { %5767 = vmatpush3.bf16.msra.mxu0 %v5766_v42 }
 0x40c   :  { %5769 = vmatprep.subr.bf16.mxu0 %v5768_v24 }
 0x40f   :  { %5771 = vmatpush3.bf16.msra.mxu0 %v5770_v62  ;;  %v3064_v62 = vld [vmem:[#allocation8 + $0x90] sm:$0xff] }
 0x410   :  { %5773 = vmatprep.subr.bf16.mxu0 %v5772_v7  ;;  %v3100_v4 = vand.u32 4294901760, %v3064_v62  ;;  %v2191_v7 = vld [vmem:[#allocation10 + $0x4] ss:$0 sm:$0xff] }
 0x412   :  { %v8279_v33 = vpack.c.bf16 %v3100_v4, %v3097_v15 }
 0x413   :  { %5775 = vmatpush3.bf16.msra.mxu0 %v5774_v44 }
 0x414   :  { %5777 = vmatprep.subr.bf16.mxu0 %v5776_v2 }
 0x417   :  { %5779 = vmatpush3.bf16.msra.mxu0 %v5778_v43  ;;  %v3106_v43 = vand.u32 4294901760, %v3066_v38 }
 0x418   :  { %5781 = vmatprep.subr.bf16.mxu0 %v5780_v46  ;;  %v3067_v46 = vld [vmem:[#allocation8 + $0xc0] sm:$0xff] }
 0x419   :  { %v8285_v13 = vpack.c.bf16 %v3106_v43, %v3103_v54  ;;  %v3109_v0 = vand.u32 4294901760, %v3067_v46  ;;  %v8301_v23 = vsub.f32 %v3066_v38, %v3106_v43  ;;  %v9162_v54 = vand.u32 4294901760, %v8295_v59 }
 0x41b   :  { %5783 = vmatpush3.bf16.msra.mxu0 %v5782_v18  ;;  %v3112_v18 = vand.u32 4294901760, %v3068_v28 }
 0x41c   :  { %5785 = vmatprep.subr.bf16.mxu0 %v5784_v3  ;;  %v3070_v3 = vld [vmem:[#allocation8 + $0xf0] sm:$0xff] }
 0x41d   :  { %v8289_v52 = vpack.c.bf16 %v3112_v18, %v3109_v0  ;;  %v3118_v16 = vand.u32 4294901760, %v3070_v3 }
 0x41f   :  { %5787 = vmatpush3.bf16.msra.mxu0 %v5786_v35 }
 0x420   :  { %5789 = vmatprep.subr.bf16.mxu0 %v5788_v55  ;;  %v8297_v55 = vsub.f32 %v3064_v62, %v3100_v4 }
 0x422   :  { %v9161_v43 = vand.u32 4294901760, %v8297_v55 }
 0x423   :  { %5791 = vmatpush3.bf16.msra.mxu0 %v5790_v60  ;;  %v8303_v60 = vsub.f32 %v3067_v46, %v3109_v0 }
 0x424   :  { %5793 = vmatprep.subr.bf16.mxu0 %v9570_v29  ;;  %v3076_v29 = vand.u32 4294901760, %v3056_v1  ;;  %v3230_v0 = vsub.f32 %v8297_v55, %v9161_v43 }
 0x426   :  { %2945 = vmatmul.mubr.f32.vlgmr.msra.gmra.mrb[12].mxu0 %v8067_v30 }
 0x427   :  { %5795 = vmatpush3.bf16.msra.mxu0 %v9571_v49  ;;  %3047 = vmatprep.mubr.f32.mxu0 %v8065_v11  ;;  %v3058_v49 = vld [vmem:[#allocation8 + $0x30] sm:$0xff] }
 0x428   :  { %5797 = vmatprep.subr.bf16.mxu0 %v9572_v45  ;;  %v3079_v45 = vand.u32 4294901760, %v3057_v6 }
 0x42b   :  { %5799 = vmatpush3.bf16.msra.mxu0 %v9573_v12  ;;  %v3059_v12 = vld [vmem:[#allocation8 + $0x40] sm:$0xff] }
 0x42c   :  { %5801 = vmatprep.subr.bf16.mxu0 %v9574_v40  ;;  %v3060_v40 = vld [vmem:[#allocation8 + $0x50] sm:$0xff] }
 0x42f   :  { %5803 = vmatpush3.bf16.msra.mxu0 %v9575_v9  ;;  %v3082_v9 = vand.u32 4294901760, %v3058_v49 }
 0x430   :  { %5805 = vmatprep.subr.bf16.mxu0 %v9576_v19  ;;  %v3085_v19 = vand.u32 4294901760, %v3059_v12 }
 0x433   :  { %5807 = vmatpush3.bf16.msra.mxu0 %v9577_v5  ;;  %v3061_v5 = vld [vmem:[#allocation8 + $0x60] sm:$0xff] }
 0x434   :  { %5809 = vmatprep.subr.bf16.mxu0 %v9578_v51  ;;  %v3062_v51 = vld [vmem:[#allocation8 + $0x70] sm:$0xff]  ;;  %v3091_v56 = vand.u32 4294901760, %v3061_v5 }
 0x435   :  { %v3094_v42 = vand.u32 4294901760, %v3062_v51 }
 0x436   :  { %v8265_v20 = vsub.f32 %v3061_v5, %v3091_v56 }
 0x437   :  { %5811 = vmatpush3.bf16.msra.mxu0 %v9579_v48  ;;  %v8247_v48 = vpack.c.bf16 %v3076_v29, %v3073_v50  ;;  %v8267_v17 = vsub.f32 %v3062_v51, %v3094_v42  ;;  %v8274_v14 = vpack.c.bf16 %v3094_v42, %v3091_v56 }
 0x438   :  { %5813 = vmatprep.subr.bf16.mxu0 %v9580_v8  ;;  %v8249_v8 = vsub.f32 %v3055_v36, %v3073_v50  ;;  %v8311_v36 = vsub.f32 %v3070_v3, %v3118_v16  ;;  %v9618_v50 = vmov 0.0   ;;  %v9160_v3 = vand.u32 4294901760, %v8299_v10 }
 0x439   :  { %5081 = vmatprep.mubr.msk.f32.mxu1 %vm6327_vm2, %v9618_v50 }
 0x43a   :  { %v9175_v35 = vand.u32 4294901760, %v8249_v8 }
 0x43b   :  { %5815 = vmatpush3.bf16.msra.mxu0 %v9581_v22  ;;  %v8251_v22 = vsub.f32 %v3056_v1, %v3076_v29 }
 0x43c   :  { %5817 = vmatprep.subr.bf16.mxu0 %v9582_v57  ;;  %v8253_v57 = vsub.f32 %v3057_v6, %v3079_v45  ;;  %v3167_v1 = vsub.f32 %v8249_v8, %v9175_v35  ;;  %v8486_v35 = vld [vmem:[#allocation8 + $0x98] sm:$0xff] }
 0x43d   :  { %v9173_v61 = vand.u32 4294901760, %v8251_v22 }
 0x43e   :  { %v9168_v29 = vand.u32 4294901760, %v8253_v57 }
 0x43f   :  { %5819 = vmatpush3.bf16.msra.mxu0 %v9583_v39  ;;  %v8255_v39 = vsub.f32 %v3058_v49, %v3082_v9  ;;  %v3174_v6 = vsub.f32 %v8251_v22, %v9173_v61 }
 0x440   :  { %5821 = vmatprep.subr.bf16.mxu0 %v9584_v32  ;;  %v8257_v32 = vsub.f32 %v3059_v12, %v3085_v19 }
 0x441   :  { %v9167_v49 = vand.u32 4294901760, %v8255_v39  ;;  %v3175_v12 = vand.u32 4294901760, %v3174_v6 }
 0x442   :  { %v9166_v51 = vand.u32 4294901760, %v8257_v32 }
 0x443   :  { %5823 = vmatpush3.bf16.msra.mxu0 %v9587_v58  ;;  %v8260_v58 = vpack.c.bf16 %v3082_v9, %v3079_v45  ;;  %v3168_v45 = vand.u32 4294901760, %v3167_v1  ;;  %v3188_v9 = vsub.f32 %v8255_v39, %v9167_v49 }
 0x444   :  { %5824 = vmatprep.subr.bf16.mxu0 %v6326_v41  ;;  %v3195_v34 = vsub.f32 %v8257_v32, %v9166_v51 }
 0x445   :  { %v3189_v5 = vand.u32 4294901760, %v3188_v9 }
 0x446   :  { %3049 = vmatmul.mubr.f32.vlgmr.msra.gmra.mrb[14].mxu0 %v8067_v30  ;;  %v3088_v30 = vand.u32 4294901760, %v3060_v40  ;;  %v3196_v15 = vand.u32 4294901760, %v3195_v34 }
 0x447   :  { %5826 = vmatpush3.bf16.msra.mxu0 %v8247_v48  ;;  %4836 = vmatprep.mubr.msk.f32.mxu0 %vm6327_vm2, %v9618_v50 }
 0x448   :  { %v8262_v47 = vsub.f32 %v3060_v40, %v3088_v30  ;;  %5827 = vmatprep.subr.bf16.mxu0 %v6326_v41  ;;  %v8270_v24 = vpack.c.bf16 %v3088_v30, %v3085_v19  ;;  %v3181_v40 = vsub.f32 %v8253_v57, %v9168_v29  ;;  %v8333_v19 = vpack.c.bf16 %v3175_v12, %v3168_v45 }
 0x449   :  { %v3237_v45 = vsub.f32 %v8299_v10, %v9160_v3 }
 0x44a   :  { %v3182_v30 = vand.u32 4294901760, %v3181_v40  ;;  %v9165_v56 = vand.u32 4294901760, %v8262_v47 }
 0x44b   :  { %5829 = vmatpush3.bf16.msra.mxu0 %v8260_v58  ;;  %v3238_v9 = vand.u32 4294901760, %v3237_v45  ;;  %v5873_v45 = vpack.c.bf16 %v8251_v22, %v8249_v8 }
 0x44c   :  { %5830 = vmatprep.subr.bf16.mxu0 %v6326_v41  ;;  %v8337_v42 = vpack.c.bf16 %v3189_v5, %v3182_v30  ;;  %v3202_v62 = vsub.f32 %v8262_v47, %v9165_v56  ;;  %v9158_v5 = vand.u32 4294901760, %v8303_v60 }
 0x44e   :  { %v3203_v4 = vand.u32 4294901760, %v3202_v62 }
 0x44f   :  { %5832 = vmatpush3.bf16.msra.mxu0 %v8270_v24 }
 0x450   :  { %5833 = vmatprep.subr.bf16.mxu0 %v6326_v41 }
 0x453   :  { %5835 = vmatpush3.bf16.msra.mxu0 %v8274_v14 }
 0x454   :  { %5836 = vmatprep.subr.bf16.mxu0 %v6326_v41 }
 0x457   :  { %5838 = vmatpush3.bf16.msra.mxu0 %v8279_v33 }
 0x458   :  { %5839 = vmatprep.subr.bf16.mxu0 %v6326_v41 }
 0x45b   :  { %5841 = vmatpush3.bf16.msra.mxu0 %v8285_v13 }
 0x45c   :  { %5842 = vmatprep.subr.bf16.mxu0 %v6326_v41 }
 0x45f   :  { %5844 = vmatpush3.bf16.msra.mxu0 %v8289_v52 }
 0x460   :  { %5845 = vmatprep.subr.bf16.mxu0 %v6326_v41 }
 0x479   :  { %v4422_v11 = vpop.f32.mrb[4].mxu0 }
 0x47a   :  { %v4423_v27 = vpop.f32.mrb[5].mxu0 }
 0x47b   :  { %v4424_v63 = vadd.f32 %v4423_v27, %v4422_v11  ;;  %v8305_v11 = vsub.f32 %v3068_v28, %v3112_v18  ;;  %v8307_v27 = vpack.c.bf16 %v3118_v16, %v3115_v26  ;;  %v3223_v28 = vsub.f32 %v8295_v59, %v9162_v54 }
 0x47d   :  { %v2301_v2 = vadd.f32 %v4424_v63, %v2191_v7  ;;  %v8309_v63 = vsub.f32 %v3069_v37, %v3115_v26  ;;  %5847 = vmatpush3.bf16.msra.mxu0 %v8307_v27  ;;  %v9164_v7 = vand.u32 4294901760, %v8265_v20  ;;  %v3224_v18 = vand.u32 4294901760, %v3223_v28 }
 0x47e   :  { %5848 = vmatprep.subr.bf16.mxu0 %v6326_v41  ;;  %v3231_v37 = vand.u32 4294901760, %v3230_v0  ;;  %v9159_v26 = vand.u32 4294901760, %v8301_v23  ;;  %v9157_v34 = vand.u32 4294901760, %v8305_v11  ;;  %v9155_v28 = vand.u32 4294901760, %v8311_v36 }
 0x47f   :  { %v3209_v53 = vsub.f32 %v8265_v20, %v9164_v7 }
 0x480   :  { %v5861_v6 = vpack.c.bf16 %v3231_v37, %v3224_v18  ;;  %v3244_v12 = vsub.f32 %v8301_v23, %v9159_v26  ;;  %v3272_v18 = vsub.f32 %v8311_v36, %v9155_v28 }
 0x482   :  { %v3245_v30 = vand.u32 4294901760, %v3244_v12  ;;  %v5876_v12 = vpack.c.bf16 %v8255_v39, %v8253_v57 }
 0x499   :  { %v4457_v31 = vpop.f32.mrb[6].mxu0 }
 0x49a   :  { %v4458_v44 = vpop.f32.mrb[7].mxu0 }
 0x49b   :  { %v4459_v21 = vadd.f32 %v4458_v44, %v4457_v31  ;;  %v9163_v31 = vand.u32 4294901760, %v8267_v17  ;;  %v8347_v44 = vpack.c.bf16 %v3203_v4, %v3196_v15  ;;  %v5864_v15 = vpack.c.bf16 %v3245_v30, %v3238_v9  ;;  %v8494_v9 = vld [vmem:[#allocation8 + $0xb8] sm:$0xff] }
 0x49c   :  { %v3251_v4 = vsub.f32 %v8303_v60, %v9158_v5 }
 0x49d   :  { %v8283_v25 = vadd.f32 %v4459_v21, %v2301_v2  ;;  %v3216_v38 = vsub.f32 %v8267_v17, %v9163_v31  ;;  %v3210_v2 = vand.u32 4294901760, %v3209_v53  ;;  %v3258_v53 = vsub.f32 %v8305_v11, %v9157_v34 }
 0x49f   :  { %v3217_v21 = vand.u32 4294901760, %v3216_v38  ;;  %v3252_v38 = vand.u32 4294901760, %v3251_v4 }
 0x4a1   :  { %v8357_v46 = vpack.c.bf16 %v3217_v21, %v3210_v2  ;;  %v3259_v2 = vand.u32 4294901760, %v3258_v53  ;;  %v9156_v21 = vand.u32 4294901760, %v8309_v63 }
 0x4a3   :  { %v5867_v0 = vpack.c.bf16 %v3259_v2, %v3252_v38 }
 0x4b9   :  { %v4492_v16 = vpop.f32.mrb[8].mxu0 }
 0x4ba   :  { %v4493_v1 = vpop.f32.mrb[9].mxu0 }
 0x4bb   :  { %v4494_v40 = vadd.f32 %v4493_v1, %v4492_v16  ;;  %v3273_v16 = vand.u32 4294901760, %v3272_v18 }
 0x4bd   :  { %v2671_v62 = vadd.f32 %v4494_v40, %v8283_v25  ;;  %v3265_v25 = vsub.f32 %v8309_v63, %v9156_v21  ;;  %v5879_v40 = vpack.c.bf16 %v8262_v47, %v8257_v32 }
 0x4bf   :  { %v3266_v37 = vand.u32 4294901760, %v3265_v25 }
 0x4c1   :  { %v5870_v1 = vpack.c.bf16 %v3273_v16, %v3266_v37  ;;  %v8489_v37 = vld [vmem:[#allocation8 + $0xa8] sm:$0xff] }
 0x4d9   :  { %v4527_v30 = vpop.f32.mrb[10].mxu0 }
 0x4da   :  { %v4528_v53 = vpop.f32.mrb[11].mxu0 }
 0x4db   :  { %v4529_v38 = vadd.f32 %v4528_v53, %v4527_v30 }
 0x4dd   :  { %v2779_v2 = vadd.f32 %v4529_v38, %v2671_v62 }
 0x4f9   :  { %v4562_v16 = vpop.f32.mrb[12].mxu0 }
 0x4fa   :  { %v4563_v28 = vpop.f32.mrb[13].mxu0 }
 0x4fb   :  { %v4564_v21 = vadd.f32 %v4563_v28, %v4562_v16 }
 0x4fd   :  { %v2947_v34 = vadd.f32 %v4564_v21, %v2779_v2  ;;  %v3721_v21 = vld [vmem:[#allocation8 + $0x78] sm:$0xff] }
 0x4fe   :  { %v3753_v56 = vand.u32 4294901760, %v3721_v21 }
 0x500   :  { %v8468_v49 = vsub.f32 %v3721_v21, %v3753_v56 }
 0x519   :  { %v4597_v5 = vpop.f32.mrb[14].mxu0 }
 0x51a   :  { %v4598_v26 = vpop.f32.mrb[15].mxu0 }
 0x51b   :  { %v4599_v3 = vadd.f32 %v4598_v26, %v4597_v5  ;;  %v3719_v26 = vld [vmem:[#allocation8 + $0x58] sm:$0xff] }
 0x51d   :  { %v3051_v43 = vadd.f32 %v4599_v3, %v2947_v34  ;;  %v3718_v3 = vld [vmem:[#allocation8 + $0x48] sm:$0xff]  ;;  %v3747_v34 = vand.u32 4294901760, %v3719_v26 }
 0x51e   :  { %v3744_v5 = vand.u32 4294901760, %v3718_v3 }
 0x51f   :  { %v3054_v54 = vmax.f32 %v3051_v43, 0.0  ;;  %v3717_v43 = vld [vmem:[#allocation8 + $0x38] sm:$0xff] }
 0x520   :  { %v8443_v16 = vsub.f32 %v3718_v3, %v3744_v5 }
 0x521   :  { %v8406_v30 = vand.u32 4294901760, %v3054_v54 }
 0x523   :  { %v8409_v62 = vsub.f32 %v3054_v54, %v8406_v30 }
 0x525   :  { %v9171_v53 = vand.u32 4294901760, %v8409_v62 }
 0x527   :  { %v3156_v38 = vsub.f32 %v8409_v62, %v9171_v53  ;;  %v8480_v53 = vld [vmem:[#allocation8 + $0x88] sm:$0xff] }
 0x528   :  { %v9181_v4 = vand.u32 4294901760, %v8480_v53 }
 0x529   :  { %v3157_v31 = vand.u32 4294901760, %v3156_v38  ;;  %v8445_v38 = vsub.f32 %v3719_v26, %v3747_v34 }
 0x52b   :  { %4837 = vmatmul.mubr.f32.vlgmr.msra.gmra.mrb[16].mxu0 %v3157_v31  ;;  %v3716_v31 = vld [vmem:[#allocation8 + $0x28] sm:$0xff] }
 0x52c   :  { %5850 = vmatpush3.bf16.msra.mxu0 %v8333_v19  ;;  %4871 = vmatprep.mubr.msk.f32.mxu0 %vm6327_vm2, %v9618_v50  ;;  %v3714_v19 = vld [vmem:[#allocation8 + $0x8] sm:$0xff] }
 0x52d   :  { %5851 = vmatprep.subr.bf16.mxu0 %v6326_v41 }
 0x530   :  { %5853 = vmatpush3.bf16.msra.mxu0 %v8337_v42  ;;  %v3715_v42 = vld [vmem:[#allocation8 + $0x18] sm:$0xff] }
 0x531   :  { %5854 = vmatprep.subr.bf16.mxu0 %v6326_v41  ;;  %v3735_v54 = vand.u32 4294901760, %v3715_v42 }
 0x534   :  { %5856 = vmatpush3.bf16.msra.mxu0 %v8347_v44  ;;  %v3732_v44 = vand.u32 4294901760, %v3714_v19 }
 0x535   :  { %5857 = vmatprep.subr.bf16.mxu0 %v6326_v41 }
 0x536   :  { %v8433_v28 = vsub.f32 %v3714_v19, %v3732_v44 }
 0x538   :  { %5859 = vmatpush3.bf16.msra.mxu0 %v8357_v46  ;;  %v3738_v46 = vand.u32 4294901760, %v3716_v31  ;;  %v9169_v19 = vand.u32 4294901760, %v8433_v28 }
 0x539   :  { %5860 = vmatprep.subr.bf16.mxu0 %v6326_v41 }
 0x53c   :  { %5862 = vmatpush3.bf16.msra.mxu0 %v5861_v6  ;;  %v3741_v6 = vand.u32 4294901760, %v3717_v43 }
 0x53d   :  { %5863 = vmatprep.subr.bf16.mxu0 %v6326_v41 }
 0x53e   :  { %v8441_v2 = vsub.f32 %v3717_v43, %v3741_v6  ;;  %v9177_v43 = vand.u32 4294901760, %v8445_v38  ;;  %v8491_v25 = vpack.c.bf16 %v3741_v6, %v3738_v46  ;;  %v8509_v6 = vsub.f32 %v8480_v53, %v9181_v4 }
 0x540   :  { %5865 = vmatpush3.bf16.msra.mxu0 %v5864_v15  ;;  %v3720_v15 = vld [vmem:[#allocation8 + $0x68] sm:$0xff]  ;;  %9620 = vst [vmem:[#allocation66_spill] sm:$0xff] %v8509_v6 }
 0x541   :  { %5866 = vmatprep.subr.bf16.mxu0 %v6326_v41  ;;  %v3750_v7 = vand.u32 4294901760, %v3720_v15 }
 0x543   :  { %v8457_v3 = vsub.f32 %v3720_v15, %v3750_v7 }
 0x544   :  { %5868 = vmatpush3.bf16.msra.mxu0 %v5867_v0  ;;  %v8435_v0 = vsub.f32 %v3715_v42, %v3735_v54 }
 0x545   :  { %5869 = vmatprep.subr.bf16.mxu0 %v6326_v41 }
 0x546   :  { %v9170_v42 = vand.u32 4294901760, %v8435_v0 }
 0x548   :  { %5871 = vmatpush3.bf16.msra.mxu0 %v5870_v1  ;;  %v8437_v1 = vsub.f32 %v3716_v31, %v3738_v46  ;;  %v3833_v26 = vsub.f32 %v8435_v0, %v9170_v42  ;;  %v9179_v42 = vand.u32 4294901760, %v8457_v3 }
 0x549   :  { %5872 = vmatprep.subr.bf16.mxu0 %v6326_v41 }
 0x54a   :  { %v9172_v31 = vand.u32 4294901760, %v8437_v1 }
 0x54b   :  { %4872 = vmatmul.mubr.f32.vlgmr.msra.gmra.mrb[16].mxu0 %v8406_v30 }
 0x54c   :  { %5874 = vmatpush3.bf16.msra.mxu0 %v5873_v45  ;;  %4906 = vmatprep.mubr.msk.f32.mxu0 %vm6327_vm2, %v9618_v50  ;;  %v8439_v45 = vpack.c.bf16 %v3735_v54, %v3732_v44  ;;  %v9174_v44 = vand.u32 4294901760, %v8441_v2  ;;  %v9176_v54 = vand.u32 4294901760, %v8443_v16  ;;  %v3840_v51 = vsub.f32 %v8437_v1, %v9172_v31 }
 0x54d   :  { %5875 = vmatprep.subr.bf16.mxu0 %v6326_v41  ;;  %v3834_v31 = vand.u32 4294901760, %v3833_v26  ;;  %v9182_v26 = vand.u32 4294901760, %v8489_v37 }
 0x54e   :  { %v3847_v29 = vsub.f32 %v8441_v2, %v9174_v44  ;;  %v3854_v15 = vsub.f32 %v8443_v16, %v9176_v54  ;;  %v3841_v61 = vand.u32 4294901760, %v3840_v51  ;;  %v9178_v44 = vand.u32 4294901760, %v8468_v49 }
 0x54f   :  { %v3868_v51 = vsub.f32 %v8457_v3, %v9179_v42 }
 0x550   :  { %5877 = vmatpush3.bf16.msra.mxu0 %v5876_v12  ;;  %v3826_v12 = vsub.f32 %v8433_v28, %v9169_v19  ;;  %v3861_v19 = vsub.f32 %v8445_v38, %v9177_v43  ;;  %v3848_v54 = vand.u32 4294901760, %v3847_v29  ;;  %v3855_v18 = vand.u32 4294901760, %v3854_v15 }
 0x551   :  { %5878 = vmatprep.subr.bf16.mxu0 %v6326_v41  ;;  %v9180_v29 = vand.u32 4294901760, %v8486_v35  ;;  %v3869_v4 = vand.u32 4294901760, %v3868_v51 }
 0x552   :  { %v3827_v21 = vand.u32 4294901760, %v3826_v12  ;;  %v3875_v12 = vsub.f32 %v8468_v49, %v9178_v44  ;;  %v5996_v46 = vpack.c.bf16 %v3848_v54, %v3841_v61  ;;  %v9183_v61 = vand.u32 4294901760, %v8494_v9 }
 0x553   :  { %v8519_v15 = vsub.f32 %v8486_v35, %v9180_v29  ;;  %v8522_v54 = vpack.c.bf16 %v3753_v56, %v3750_v7  ;;  %v9622_v29 = vpack.c.bf16 %v8297_v55, %v8295_v59 }
 0x554   :  { %5880 = vmatpush3.bf16.msra.mxu0 %v5879_v40  ;;  %v5993_v43 = vpack.c.bf16 %v3834_v31, %v3827_v21  ;;  %v3862_v40 = vand.u32 4294901760, %v3861_v19  ;;  %v9619_v31 = vpack.c.bf16 %v8267_v17, %v8265_v20  ;;  %v8511_v19 = vpack.c.bf16 %v3747_v34, %v3744_v5  ;;  %v8526_v21 = vld [vmem:[#allocation8 + $0xd8] sm:$0xff] }
 0x555   :  { %5881 = vmatprep.subr.bf16.mxu0 %v6326_v41  ;;  %9621 = vst [vmem:[#allocation69_spill] sm:$0xff] %v8519_v15  ;;  %v9184_v5 = vand.u32 4294901760, %v8509_v6  ;;  %v8532_v34 = vsub.f32 %v8489_v37, %v9182_v26  ;;  %v9185_v42 = vand.u32 4294901760, %v8519_v15  ;;  %v8539_v56 = vsub.f32 %v8494_v9, %v9183_v61 }
 0x556   :  { %5994 = vmatpush3.bf16.msra.mxu1 %v5993_v43  ;;  %v8524_v43 = vld [vmem:[#allocation8 + $0xc8] sm:$0xff]  ;;  %v5999_v44 = vpack.c.bf16 %v3862_v40, %v3855_v18  ;;  %v3876_v26 = vand.u32 4294901760, %v3875_v12  ;;  %v9623_v12 = vand.u32 4294901760, %v8526_v21 }
 0x557   :  { %5995 = vmatprep.subr.bf16.mxu1 %v6326_v41  ;;  %v3882_v18 = vsub.f32 %v8509_v6, %v9184_v5  ;;  %v3889_v61 = vsub.f32 %v8519_v15, %v9185_v42  ;;  %v9626_v15 = vand.u32 4294901760, %v8539_v56 }
 0x558   :  { %5883 = vmatpush3.bf16.msra.mxu0 %v9619_v31  ;;  %v9186_v31 = vand.u32 4294901760, %v8524_v43  ;;  %v6002_v5 = vpack.c.bf16 %v3876_v26, %v3869_v4  ;;  %v9627_v4 = vpack.c.bf16 %v8305_v11, %v8303_v60 }
 0x559   :  { %5884 = vmatprep.subr.bf16.mxu0 %v6326_v41  ;;  %v3883_v40 = vand.u32 4294901760, %v3882_v18  ;;  %v3890_v42 = vand.u32 4294901760, %v3889_v61  ;;  %v9628_v18 = vpack.c.bf16 %v8311_v36, %v8309_v63 }
 0x55a   :  { %5997 = vmatpush3.bf16.msra.mxu1 %v5996_v46  ;;  %v8558_v51 = vsub.f32 %v8524_v43, %v9186_v31  ;;  %v9624_v46 = vpack.c.bf16 %v8301_v23, %v8299_v10  ;;  %v9625_v31 = vand.u32 4294901760, %v8532_v34 }
 0x55b   :  { %5998 = vmatprep.subr.bf16.mxu1 %v6326_v41 }
 0x55c   :  { %5886 = vmatpush3.bf16.msra.mxu0 %v9622_v29  ;;  %v8563_v29 = vsub.f32 %v8526_v21, %v9623_v12  ;;  %v3896_v7 = vsub.f32 %v8532_v34, %v9625_v31  ;;  %v3903_v12 = vsub.f32 %v8539_v56, %v9626_v15  ;;  %v3909_v6 = vand.u32 4294901760, %v8558_v51 }
 0x55d   :  { %5887 = vmatprep.subr.bf16.mxu0 %v6326_v41 }
 0x55e   :  { %6000 = vmatpush3.bf16.msra.mxu1 %v5999_v44  ;;  %v6005_v44 = vpack.c.bf16 %v3890_v42, %v3883_v40  ;;  %v3897_v26 = vand.u32 4294901760, %v3896_v7  ;;  %v3904_v61 = vand.u32 4294901760, %v3903_v12  ;;  %v3910_v15 = vsub.f32 %v8558_v51, %v3909_v6 }
 0x55f   :  { %6001 = vmatprep.subr.bf16.mxu1 %v6326_v41  ;;  %v9629_v12 = vand.u32 4294901760, %v8249_v8  ;;  %v9634_v8 = vand.u32 4294901760, %v8257_v32  ;;  %v9640_v32 = vand.u32 4294901760, %v8299_v10 }
 0x560   :  { %5889 = vmatpush3.bf16.msra.mxu0 %v9624_v46  ;;  %v3916_v46 = vand.u32 4294901760, %v8563_v29  ;;  %v6008_v42 = vpack.c.bf16 %v3904_v61, %v3897_v26  ;;  %v9631_v26 = vand.u32 4294901760, %v8409_v62  ;;  %v9632_v61 = vand.u32 4294901760, %v8253_v57 }
 0x561   :  { %5890 = vmatprep.subr.bf16.mxu0 %v6326_v41  ;;  %v9637_v57 = vand.u32 4294901760, %v8267_v17  ;;  %v9643_v17 = vand.u32 4294901760, %v8305_v11  ;;  %v9646_v11 = vand.u32 4294901760, %v8480_v53  ;;  %v9651_v53 = vand.u32 4294901760, %v8526_v21 }
 0x562   :  { %6003 = vmatpush3.bf16.msra.mxu1 %v6002_v5  ;;  %v3917_v31 = vsub.f32 %v8563_v29, %v3916_v46  ;;  %v3911_v5 = vand.u32 4294901760, %v3910_v15  ;;  %v9633_v15 = vand.u32 4294901760, %v8255_v39  ;;  %v6017_v21 = vpack.c.bf16 %v8435_v0, %v8433_v28 }
 0x563   :  { %6004 = vmatprep.subr.bf16.mxu1 %v6326_v41 }
 0x564   :  { %5892 = vmatpush3.bf16.msra.mxu0 %v9627_v4  ;;  %v3918_v7 = vand.u32 4294901760, %v3917_v31  ;;  %v9630_v4 = vand.u32 4294901760, %v8251_v22  ;;  %v5924_v31 = vpack.c.bf16 %v9633_v15, %v9632_v61  ;;  %v9635_v22 = vand.u32 4294901760, %v8262_v47 }
 0x565   :  { %5893 = vmatprep.subr.bf16.mxu0 %v6326_v41  ;;  %v9641_v47 = vand.u32 4294901760, %v8301_v23  ;;  %v9649_v61 = vand.u32 4294901760, %v8494_v9 }
 0x566   :  { %6006 = vmatpush3.bf16.msra.mxu1 %v6005_v44  ;;  %v6011_v40 = vpack.c.bf16 %v3918_v7, %v3911_v5  ;;  %v5921_v44 = vpack.c.bf16 %v9630_v4, %v9629_v12  ;;  %v9639_v5 = vand.u32 4294901760, %v8297_v55  ;;  %v9645_v55 = vand.u32 4294901760, %v8311_v36 }
 0x567   :  { %6007 = vmatprep.subr.bf16.mxu1 %v6326_v41 }
 0x568   :  { %5895 = vmatpush3.bf16.msra.mxu0 %v9628_v18  ;;  %v5927_v18 = vpack.c.bf16 %v9635_v22, %v9634_v8  ;;  %v3071_v8 = vld [vmem:[#allocation10 + $0x5] ss:$0 sm:$0xff] }
 0x569   :  { %5896 = vmatprep.subr.bf16.mxu0 %v6326_v41 }
 0x56a   :  { %6009 = vmatpush3.bf16.msra.mxu1 %v6008_v42  ;;  %v9638_v42 = vand.u32 4294901760, %v8295_v59  ;;  %v9644_v59 = vand.u32 4294901760, %v8309_v63 }
 0x56b   :  { %4907 = vmatmul.mubr.f32.vlgmr.msra.gmra.mrb[16].mxu0 %v8409_v62  ;;  %6010 = vmatprep.subr.bf16.mxu1 %v6326_v41  ;;  %v9636_v62 = vand.u32 4294901760, %v8265_v20  ;;  %v9642_v20 = vand.u32 4294901760, %v8303_v60 }
 0x56c   :  { %5898 = vmatpush3.bf16.msra.mxu0 %v8247_v48  ;;  %4941 = vmatprep.mubr.msk.f32.mxu0 %vm6327_vm2, %v9618_v50  ;;  %v5933_v7 = vpack.c.bf16 %v9639_v5, %v9638_v42  ;;  %v5942_v4 = vpack.c.bf16 %v9645_v55, %v9644_v59  ;;  %v6020_v42 = vpack.c.bf16 %v8441_v2, %v8437_v1 }
 0x56d   :  { %5899 = vmatprep.subr.bf16.mxu0 %v6326_v41  ;;  %v5930_v39 = vpack.c.bf16 %v9637_v57, %v9636_v62  ;;  %v5939_v12 = vpack.c.bf16 %v9643_v17, %v9642_v20  ;;  %v9652_v20 = vld [vmem:[#allocation66_spill] sm:$0xff]  ;;  %v9653_v17 = vld [vmem:[#allocation69_spill] sm:$0xff]  ;;  %v6032_v59 = vpack.c.bf16 %v8539_v56, %v8532_v34  ;;  %v6035_v55 = vpack.c.bf16 %v8563_v29, %v8558_v51 }
 0x56e   :  { %6012 = vmatpush3.bf16.msra.mxu1 %v6011_v40  ;;  %v5936_v40 = vpack.c.bf16 %v9641_v47, %v9640_v32  ;;  %v6023_v32 = vpack.c.bf16 %v8445_v38, %v8443_v16 }
 0x56f   :  { %6013 = vmatprep.subr.bf16.mxu1 %v6326_v41 }
 0x570   :  { %5901 = vmatpush3.bf16.msra.mxu0 %v8260_v58 }
 0x571   :  { %5902 = vmatprep.subr.bf16.mxu0 %v6326_v41 }
 0x574   :  { %5904 = vmatpush3.bf16.msra.mxu0 %v8270_v24 }
 0x575   :  { %5905 = vmatprep.subr.bf16.mxu0 %v6326_v41 }
 0x578   :  { %5907 = vmatpush3.bf16.msra.mxu0 %v8274_v14 }
 0x579   :  { %5908 = vmatprep.subr.bf16.mxu0 %v6326_v41 }
 0x57c   :  { %5910 = vmatpush3.bf16.msra.mxu0 %v8279_v33 }
 0x57d   :  { %5911 = vmatprep.subr.bf16.mxu0 %v6326_v41 }
 0x580   :  { %5913 = vmatpush3.bf16.msra.mxu0 %v8285_v13 }
 0x581   :  { %5914 = vmatprep.subr.bf16.mxu0 %v6326_v41 }
 0x584   :  { %5916 = vmatpush3.bf16.msra.mxu0 %v8289_v52 }
 0x585   :  { %5917 = vmatprep.subr.bf16.mxu0 %v6326_v41 }
 0x588   :  { %5919 = vmatpush3.bf16.msra.mxu0 %v8307_v27 }
 0x589   :  { %5920 = vmatprep.subr.bf16.mxu0 %v6326_v41 }
 0x58b   :  { %4942 = vmatmul.mubr.f32.vlgmr.msra.gmra.mrb[16].mxu0 %v9631_v26  ;;  %v9648_v26 = vand.u32 4294901760, %v8489_v37 }
 0x58c   :  { %5922 = vmatpush3.bf16.msra.mxu0 %v5921_v44  ;;  %4976 = vmatprep.mubr.msk.f32.mxu0 %vm6327_vm2, %v9618_v50 }
 0x58d   :  { %5923 = vmatprep.subr.bf16.mxu0 %v6326_v41  ;;  %v8713_v15 = vpack.c.bf16 %v9649_v61, %v9648_v26 }
 0x590   :  { %5925 = vmatpush3.bf16.msra.mxu0 %v5924_v31 }
 0x591   :  { %5926 = vmatprep.subr.bf16.mxu0 %v6326_v41 }
 0x594   :  { %5928 = vmatpush3.bf16.msra.mxu0 %v5927_v18 }
 0x595   :  { %5929 = vmatprep.subr.bf16.mxu0 %v6326_v41 }
 0x598   :  { %5931 = vmatpush3.bf16.msra.mxu0 %v5930_v39 }
 0x599   :  { %5932 = vmatprep.subr.bf16.mxu0 %v6326_v41 }
 0x59c   :  { %5934 = vmatpush3.bf16.msra.mxu0 %v5933_v7 }
 0x59d   :  { %5935 = vmatprep.subr.bf16.mxu0 %v6326_v41 }
 0x5a0   :  { %5937 = vmatpush3.bf16.msra.mxu0 %v5936_v40  ;;  %v6026_v40 = vpack.c.bf16 %v8468_v49, %v8457_v3 }
 0x5a1   :  { %5938 = vmatprep.subr.bf16.mxu0 %v6326_v41 }
 0x5a4   :  { %5940 = vmatpush3.bf16.msra.mxu0 %v5939_v12  ;;  %v6029_v12 = vpack.c.bf16 %v9653_v17, %v9652_v20 }
 0x5a5   :  { %5941 = vmatprep.subr.bf16.mxu0 %v6326_v41 }
 0x5a8   :  { %5943 = vmatpush3.bf16.msra.mxu0 %v5942_v4  ;;  %v9654_v4 = vand.u32 4294901760, %v8433_v28  ;;  %v9658_v28 = vand.u32 4294901760, %v8443_v16  ;;  %v9664_v16 = vand.u32 4294901760, %v8532_v34 }
 0x5a9   :  { %5944 = vmatprep.subr.bf16.mxu0 %v6326_v41 }
 0x5ab   :  { %4977 = vmatmul.mubr.f32.vlgmr.msra.gmra.mrb[16].mxu0 %v8406_v30 }
 0x5ac   :  { %5946 = vmatpush3.bf16.msra.mxu0 %v8247_v48  ;;  %5011 = vmatprep.mubr.msk.f32.mxu0 %vm6327_vm2, %v9618_v50  ;;  %v3728_v48 = vld [vmem:[#allocation8 + $0xe8] sm:$0xff] }
 0x5ad   :  { %5947 = vmatprep.subr.bf16.mxu0 %v6326_v41 }
 0x5b0   :  { %5949 = vmatpush3.bf16.msra.mxu0 %v8260_v58  ;;  %v3729_v58 = vld [vmem:[#allocation8 + $0xf8] sm:$0xff] }
 0x5b1   :  { %5950 = vmatprep.subr.bf16.mxu0 %v6326_v41 }
 0x5b4   :  { %5952 = vmatpush3.bf16.msra.mxu0 %v8270_v24  ;;  %v3774_v24 = vand.u32 4294901760, %v3728_v48 }
 0x5b5   :  { %5953 = vmatprep.subr.bf16.mxu0 %v6326_v41 }
 0x5b8   :  { %5955 = vmatpush3.bf16.msra.mxu0 %v8274_v14  ;;  %v3777_v14 = vand.u32 4294901760, %v3729_v58 }
 0x5b9   :  { %5956 = vmatprep.subr.bf16.mxu0 %v6326_v41 }
 0x5ba   :  { %v8726_v9 = vpack.c.bf16 %v3777_v14, %v3774_v24 }
 0x5bc   :  { %5958 = vmatpush3.bf16.msra.mxu0 %v8279_v33  ;;  %v8689_v33 = vsub.f32 %v3728_v48, %v3774_v24  ;;  %v9655_v48 = vand.u32 4294901760, %v8435_v0  ;;  %v9656_v24 = vand.u32 4294901760, %v8437_v1  ;;  %v9659_v0 = vand.u32 4294901760, %v8445_v38 }
 0x5bd   :  { %5959 = vmatprep.subr.bf16.mxu0 %v6326_v41  ;;  %v9661_v1 = vand.u32 4294901760, %v8468_v49  ;;  %v9665_v38 = vand.u32 4294901760, %v8539_v56  ;;  %v6083_v49 = vpack.c.bf16 %v3916_v46, %v3909_v6 }
 0x5c0   :  { %5961 = vmatpush3.bf16.msra.mxu0 %v8285_v13  ;;  %v8691_v13 = vsub.f32 %v3729_v58, %v3777_v14  ;;  %v6065_v58 = vpack.c.bf16 %v9655_v48, %v9654_v4  ;;  %v9657_v14 = vand.u32 4294901760, %v8441_v2 }
 0x5c1   :  { %5962 = vmatprep.subr.bf16.mxu0 %v6326_v41 }
 0x5c2   :  { %v3930_v10 = vand.u32 4294901760, %v8691_v13  ;;  %v6038_v37 = vpack.c.bf16 %v8691_v13, %v8689_v33 }
 0x5c4   :  { %5964 = vmatpush3.bf16.msra.mxu0 %v8289_v52  ;;  %v3923_v52 = vand.u32 4294901760, %v8689_v33  ;;  %v3931_v60 = vsub.f32 %v8691_v13, %v3930_v10 }
 0x5c5   :  { %5965 = vmatprep.subr.bf16.mxu0 %v6326_v41 }
 0x5c6   :  { %v3924_v23 = vsub.f32 %v8689_v33, %v3923_v52 }
 0x5c8   :  { %5967 = vmatpush3.bf16.msra.mxu0 %v8307_v27  ;;  %v9647_v27 = vand.u32 4294901760, %v8486_v35  ;;  %v3925_v36 = vand.u32 4294901760, %v3924_v23  ;;  %v9650_v35 = vand.u32 4294901760, %v8524_v43  ;;  %v6068_v23 = vpack.c.bf16 %v9657_v14, %v9656_v24 }
 0x5c9   :  { %5968 = vmatprep.subr.bf16.mxu0 %v6326_v41 }
 0x5ca   :  { %v8705_v63 = vpack.c.bf16 %v9647_v27, %v9646_v11  ;;  %v8722_v31 = vpack.c.bf16 %v9651_v53, %v9650_v35  ;;  %v9660_v11 = vand.u32 4294901760, %v8457_v3  ;;  %v9662_v27 = vand.u32 4294901760, %v9652_v20 }
 0x5cb   :  { %5012 = vmatmul.mubr.f32.vlgmr.msra.gmra.mrb[16].mxu0 %v8406_v30  ;;  %v3932_v30 = vand.u32 4294901760, %v3931_v60  ;;  %v6071_v60 = vpack.c.bf16 %v9659_v0, %v9658_v28  ;;  %v6086_v3 = vpack.c.bf16 %v3930_v10, %v3923_v52 }
 0x5cc   :  { %5970 = vmatpush3.bf16.msra.mxu0 %v8439_v45  ;;  %5046 = vmatprep.mubr.msk.f32.mxu0 %vm6327_vm2, %v9618_v50  ;;  %v6074_v2 = vpack.c.bf16 %v9661_v1, %v9660_v11 }
 0x5cd   :  { %5971 = vmatprep.subr.bf16.mxu0 %v6326_v41  ;;  %v6014_v44 = vpack.c.bf16 %v3932_v30, %v3925_v36  ;;  %v9663_v36 = vand.u32 4294901760, %v9653_v17 }
 0x5cf   :  { %6015 = vmatpush3.bf16.msra.mxu1 %v6014_v44  ;;  %v6077_v30 = vpack.c.bf16 %v9663_v36, %v9662_v27  ;;  %v6080_v44 = vpack.c.bf16 %v9665_v38, %v9664_v16 }
 0x5d0   :  { %5973 = vmatpush3.bf16.msra.mxu0 %v8491_v25  ;;  %6016 = vmatprep.subr.bf16.mxu1 %v6326_v41 }
 0x5d1   :  { %5974 = vmatprep.subr.bf16.mxu0 %v6326_v41 }
 0x5d4   :  { %5976 = vmatpush3.bf16.msra.mxu0 %v8511_v19 }
 0x5d5   :  { %5977 = vmatprep.subr.bf16.mxu0 %v6326_v41 }
 0x5d8   :  { %5979 = vmatpush3.bf16.msra.mxu0 %v8522_v54 }
 0x5d9   :  { %5980 = vmatprep.subr.bf16.mxu0 %v6326_v41 }
 0x5dc   :  { %5982 = vmatpush3.bf16.msra.mxu0 %v8705_v63 }
 0x5dd   :  { %5983 = vmatprep.subr.bf16.mxu0 %v6326_v41 }
 0x5e0   :  { %5985 = vmatpush3.bf16.msra.mxu0 %v8713_v15 }
 0x5e1   :  { %5986 = vmatprep.subr.bf16.mxu0 %v6326_v41 }
 0x5e4   :  { %5988 = vmatpush3.bf16.msra.mxu0 %v8722_v31 }
 0x5e5   :  { %5989 = vmatprep.subr.bf16.mxu0 %v6326_v41 }
 0x5e8   :  { %5991 = vmatpush3.bf16.msra.mxu0 %v8726_v9 }
 0x69e   :  { %v3709_v22 = vpop.f32.mrb[16].mxu0 }
 0x69f   :  { %v6116_v18 = vadd.f32 %v3709_v22, %v3071_v8  ;;  %v5013_v62 = vpop.f32.mrb[17].mxu0 }
 0x6a1   :  { %v3713_v43 = vmax.f32 %v6116_v18, 0.0 }
 0x6a3   :  { %v8733_v57 = vand.u32 4294901760, %v3713_v43 }
 0x6a5   :  { %v3813_v39 = vsub.f32 %v3713_v43, %v8733_v57  ;;  %5082 = vmatmul.mubr.f32.vlgmr.msra.gmra.mrb[4].mxu1 %v8733_v57 }
 0x6a6   :  { %6018 = vmatpush3.bf16.msra.mxu1 %v6017_v21  ;;  %5116 = vmatprep.mubr.msk.f32.mxu1 %vm6327_vm2, %v9618_v50 }
 0x6a7   :  { %v3814_v5 = vand.u32 4294901760, %v3813_v39  ;;  %6019 = vmatprep.subr.bf16.mxu1 %v6326_v41 }
 0x6a9   :  { %v3815_v7 = vsub.f32 %v3813_v39, %v3814_v5 }
 0x6aa   :  { %6021 = vmatpush3.bf16.msra.mxu1 %v6020_v42 }
 0x6ab   :  { %6022 = vmatprep.subr.bf16.mxu1 %v6326_v41  ;;  %v3816_v47 = vand.u32 4294901760, %v3815_v7 }
 0x6ad   :  { %5047 = vmatmul.mubr.f32.vlgmr.msra.gmra.mrb[18].mxu0 %v3816_v47 }
 0x6ae   :  { %6024 = vmatpush3.bf16.msra.mxu1 %v6023_v32 }
 0x6af   :  { %6025 = vmatprep.subr.bf16.mxu1 %v6326_v41 }
 0x6b2   :  { %6027 = vmatpush3.bf16.msra.mxu1 %v6026_v40 }
 0x6b3   :  { %6028 = vmatprep.subr.bf16.mxu1 %v6326_v41 }
 0x6b6   :  { %6030 = vmatpush3.bf16.msra.mxu1 %v6029_v12 }
 0x6b7   :  { %6031 = vmatprep.subr.bf16.mxu1 %v6326_v41 }
 0x6ba   :  { %6033 = vmatpush3.bf16.msra.mxu1 %v6032_v59 }
 0x6bb   :  { %6034 = vmatprep.subr.bf16.mxu1 %v6326_v41 }
 0x6be   :  { %6036 = vmatpush3.bf16.msra.mxu1 %v6035_v55 }
 0x6bf   :  { %6037 = vmatprep.subr.bf16.mxu1 %v6326_v41 }
 0x6c2   :  { %6039 = vmatpush3.bf16.msra.mxu1 %v6038_v37 }
 0x6c3   :  { %6040 = vmatprep.subr.bf16.mxu1 %v6326_v41 }
 0x6c5   :  { %5117 = vmatmul.mubr.f32.vlgmr.msra.gmra.mrb[4].mxu1 %v3813_v39 }
 0x6c6   :  { %6042 = vmatpush3.bf16.msra.mxu1 %v8439_v45  ;;  %5151 = vmatprep.mubr.msk.f32.mxu1 %vm6327_vm2, %v9618_v50 }
 0x6c7   :  { %6043 = vmatprep.subr.bf16.mxu1 %v6326_v41 }
 0x6ca   :  { %6045 = vmatpush3.bf16.msra.mxu1 %v8491_v25 }
 0x6cb   :  { %6046 = vmatprep.subr.bf16.mxu1 %v6326_v41 }
 0x6ce   :  { %6048 = vmatpush3.bf16.msra.mxu1 %v8511_v19 }
 0x6cf   :  { %6049 = vmatprep.subr.bf16.mxu1 %v6326_v41 }
 0x6d2   :  { %6051 = vmatpush3.bf16.msra.mxu1 %v8522_v54 }
 0x6d3   :  { %6052 = vmatprep.subr.bf16.mxu1 %v6326_v41 }
 0x6d6   :  { %6054 = vmatpush3.bf16.msra.mxu1 %v8705_v63 }
 0x6d7   :  { %6055 = vmatprep.subr.bf16.mxu1 %v6326_v41 }
 0x6da   :  { %6057 = vmatpush3.bf16.msra.mxu1 %v8713_v15 }
 0x6db   :  { %6058 = vmatprep.subr.bf16.mxu1 %v6326_v41 }
 0x6de   :  { %6060 = vmatpush3.bf16.msra.mxu1 %v8722_v31 }
 0x6df   :  { %6061 = vmatprep.subr.bf16.mxu1 %v6326_v41 }
 0x6e2   :  { %6063 = vmatpush3.bf16.msra.mxu1 %v8726_v9 }
 0x6e3   :  { %6064 = vmatprep.subr.bf16.mxu1 %v6326_v41 }
 0x6e5   :  { %5152 = vmatmul.mubr.f32.vlgmr.msra.gmra.mrb[4].mxu1 %v3814_v5 }
 0x6e6   :  { %6066 = vmatpush3.bf16.msra.mxu1 %v6065_v58  ;;  %5186 = vmatprep.mubr.msk.f32.mxu1 %vm6327_vm2, %v9618_v50 }
 0x6e7   :  { %6067 = vmatprep.subr.bf16.mxu1 %v6326_v41 }
 0x6ea   :  { %6069 = vmatpush3.bf16.msra.mxu1 %v6068_v23 }
 0x6eb   :  { %6070 = vmatprep.subr.bf16.mxu1 %v6326_v41 }
 0x6ee   :  { %6072 = vmatpush3.bf16.msra.mxu1 %v6071_v60 }
 0x6ef   :  { %6073 = vmatprep.subr.bf16.mxu1 %v6326_v41 }
 0x6f2   :  { %6075 = vmatpush3.bf16.msra.mxu1 %v6074_v2 }
 0x6f3   :  { %6076 = vmatprep.subr.bf16.mxu1 %v6326_v41 }
 0x6f6   :  { %6078 = vmatpush3.bf16.msra.mxu1 %v6077_v30 }
 0x6f7   :  { %6079 = vmatprep.subr.bf16.mxu1 %v6326_v41 }
 0x6fa   :  { %6081 = vmatpush3.bf16.msra.mxu1 %v6080_v44 }
 0x6fb   :  { %6082 = vmatprep.subr.bf16.mxu1 %v6326_v41 }
 0x6fe   :  { %6084 = vmatpush3.bf16.msra.mxu1 %v6083_v49 }
 0x6ff   :  { %6085 = vmatprep.subr.bf16.mxu1 %v6326_v41 }
 0x702   :  { %6087 = vmatpush3.bf16.msra.mxu1 %v6086_v3 }
 0x703   :  { %6088 = vmatprep.subr.bf16.mxu1 %v6326_v41 }
 0x705   :  { %5187 = vmatmul.mubr.f32.vlgmr.msra.gmra.mrb[4].mxu1 %v8733_v57 }
 0x706   :  { %6090 = vmatpush3.bf16.msra.mxu1 %v8439_v45  ;;  %5221 = vmatprep.mubr.msk.f32.mxu1 %vm6327_vm2, %v9618_v50  ;;  %v3730_v45 = vld [vmem:[#allocation10 + $0x6] ss:$0 sm:$0xff] }
 0x707   :  { %6091 = vmatprep.subr.bf16.mxu1 %v6326_v41 }
 0x70a   :  { %6093 = vmatpush3.bf16.msra.mxu1 %v8491_v25 }
 0x70b   :  { %6094 = vmatprep.subr.bf16.mxu1 %v6326_v41 }
 0x70e   :  { %6096 = vmatpush3.bf16.msra.mxu1 %v8511_v19 }
 0x70f   :  { %6097 = vmatprep.subr.bf16.mxu1 %v6326_v41 }
 0x712   :  { %6099 = vmatpush3.bf16.msra.mxu1 %v8522_v54 }
 0x713   :  { %6100 = vmatprep.subr.bf16.mxu1 %v6326_v41 }
 0x716   :  { %6102 = vmatpush3.bf16.msra.mxu1 %v8705_v63 }
 0x717   :  { %6103 = vmatprep.subr.bf16.mxu1 %v6326_v41 }
 0x71a   :  { %6105 = vmatpush3.bf16.msra.mxu1 %v8713_v15 }
 0x71b   :  { %6106 = vmatprep.subr.bf16.mxu1 %v6326_v41 }
 0x71e   :  { %6108 = vmatpush3.bf16.msra.mxu1 %v8722_v31 }
 0x71f   :  { %6109 = vmatprep.subr.bf16.mxu1 %v6326_v41 }
 0x722   :  { %6111 = vmatpush3.bf16.msra.mxu1 %v8726_v9 }
 0x725   :  { %5222 = vmatmul.mubr.f32.vlgmr.msra.gmra.mrb[4].mxu1 %v8733_v57 }
 0x780   :  { %v3818_v50 = vpop.f32.mrb[18].mxu0 }
 0x781   :  { %v5048_v25 = vpop.f32.mrb[19].mxu0  ;;  %v3819_v6 = vadd.f32 %v3818_v50, %v3730_v45 }
 0x7f8   :  { %v4368_v19 = vpop.f32.mrb[4].mxu1 }
 0x7f9   :  { %v6118_v54 = vadd.f32 %v4368_v19, %v3819_v6  ;;  %v5223_v34 = vpop.f32.mrb[5].mxu1 }
 0x7fb   :  { %4372 = vst [vmem:[#allocation11] sm:$0xff] %v6118_v54 }
 0x7fc   :  { %6296 = shalt.err (!%p6293_p2)
}
 0x7fd   :  { %s6297_s30 = scalar_lea.hbm %s8855_s5, 128 }
 0x7fe   :  { %p6298_p3 = scmp.ne.s32.totalorder %s8855_s5, %s6297_s30  ;;  %p6301_p4 = scmp.lt.u32.totalorder %s6297_s30, %s8855_s5 }
 0x800   :  { %p6303_p5 = pnand %p6301_p4, %p6298_p3 }
 0x802   :  { %6306 = shalt.err (!%p6303_p5)
}
 0x803   :  { %4382 = dma.vmem_to_hbm [thread:$0]  %s4380_s27, 128, %s8855_s5, [#allocation4]  }
 0x804   :  { %6313 = dma.done.wait [#allocation4], 128  }
 0x805   :  { %6314 = vsyncadd [#allocation4], 4294967168 }
 0x806   :  { %4386 = vsyncpa [#allocation3], 1 }
 0x807   :  { %4387 = vsyncpa [#allocation6], 1 }
 0x808   :  { %4388 = vsyncpa [#allocation9], 1 }
 0x809   :  { %4389 = vsyncpa [#allocation4], 1 }

</bundles_post_ra>
